<compile_context>
chip_gen: v7x
topology: tpu7x:2x2x1
jax: 0.10.0
libtpu: 0.0.40
codegen_flags: <defaults>
</compile_context>

<pallas_src>
import functools

import jax
import jax.numpy as jnp
from jax import lax
from jax.experimental import pallas as pl
from jax.experimental.pallas import tpu as pltpu

LANE = 128
_EPS = 1e-5

_CPARAMS = pltpu.CompilerParams(
    dimension_semantics=("parallel",),          # megacore-shard P tiles on v7x
    vmem_limit_bytes=32 * 1024 * 1024,          # safe on v5e/v6e/v7x
)


def _round_up(x, m):
    return (x + m - 1) // m * m


def _tile_rows(P, row_bytes, max_tp=256, budget=6 << 20):
    """Pick a P-tile size (multiple of 16) whose double-buffered working set
    stays well under the scoped VMEM limit on every TPU generation."""
    tp = max_tp
    while tp > 16 and 2 * tp * row_bytes > budget:
        tp //= 2
    tp = min(tp, _round_up(P, 16))
    p_pad = _round_up(P, tp)
    return tp, p_pad


# ----------------------------------------------------------------------------
# Pallas kernels
# ----------------------------------------------------------------------------
def conv_stats_kernel(taps_ref, w_ref, conv_ref, stats_ref):
    """3x3 conv as a single K=9*Cin MXU matmul + per-tile BN partial stats.

    taps_ref  : (TP, 9*Cin)   bf16 im2col rows for this tile
    w_ref     : (9*Cin, Cpad) bf16 packed conv weights (Cout zero-padded to 128)
    conv_ref  : (TP, Cpad)    f32 conv output tile (pre-BN)
    stats_ref : (8, Cpad)     f32: row0 = per-tile sum, row1 = per-tile sum-sq
    """
    acc = jnp.dot(taps_ref[...], w_ref[...], preferred_element_type=jnp.float32)
    conv_ref[...] = acc
    s = jnp.sum(acc, axis=0, keepdims=True)
    q = jnp.sum(acc * acc, axis=0, keepdims=True)
    pad = jnp.zeros((6, acc.shape[1]), jnp.float32)
    stats_ref[...] = jnp.concatenate([s, q, pad], axis=0)


def bn_relu_kernel(conv_ref, scale_ref, shift_ref, o_ref):
    """y = relu(conv * scale + shift)   (BN folded into a per-channel affine)."""
    o_ref[...] = jnp.maximum(conv_ref[...] * scale_ref[...] + shift_ref[...], 0.0)


def bn_relu_skip_kernel(conv_ref, scale_ref, shift_ref, skip_ref, o_ref):
    """Same as bn_relu_kernel plus the post-ReLU residual add (x += skip)."""
    y = jnp.maximum(conv_ref[...] * scale_ref[...] + shift_ref[...], 0.0)
    o_ref[...] = y + skip_ref[...]


def head_kernel(x_ref, w_ref, b_ref, o_ref,
                *, n_classes: int, n_anchors: int, anchor_size: float):
    """last_conv (1x1 conv == matmul) fused with the YOLO head nonlinearities.

    channels [0, tmp2)    -> sigmoid   (class_preds, objectness, offsets)
    channels [tmp2, tmp3) -> exp(.) * anchor_size   (boxes)
    channels >= tmp3      -> zero padding, passed through raw (discarded later)
    """
    y = jnp.dot(x_ref[...], w_ref[...],
                preferred_element_type=jnp.float32) + b_ref[...]
    tmp2 = n_classes + 1 + 2 * n_anchors
    tmp3 = tmp2 + 2 * n_anchors
    ch = lax.broadcasted_iota(jnp.int32, y.shape, 1)
    sig = pl.reciprocal(1.0 + jnp.exp(-y), approx=True)
    box = jnp.exp(y) * anchor_size
    o_ref[...] = jnp.where(ch < tmp2, sig, jnp.where(ch < tmp3, box, y))


# ----------------------------------------------------------------------------
# Glue: im2col taps, per-layer pallas_call wrappers
# ----------------------------------------------------------------------------
def _make_taps(x_nhwc, stride):
    """ZeroPad2d(1) + pack the 9 taps of a 3x3 conv into one (P, 9*Cin) matrix."""
    N, H, W, C = x_nhwc.shape
    xp = jnp.pad(x_nhwc, ((0, 0), (1, 1), (1, 1), (0, 0)))
    Ho = (H + 2 - 3) // stride + 1
    Wo = (W + 2 - 3) // stride + 1
    taps = []
    for kh in range(3):
        for kw in range(3):
            taps.append(xp[:, kh:kh + (Ho - 1) * stride + 1:stride,
                              kw:kw + (Wo - 1) * stride + 1:stride, :])
    taps = jnp.concatenate(taps, axis=-1)          # (N, Ho, Wo, 9*C), kh-major
    return taps.reshape(N * Ho * Wo, 9 * C), (N, Ho, Wo)


def _run_conv_layer(x_nhwc, layer_params, stride, has_skip, cout):
    w_packed, gamma, beta = layer_params           # w: (9*Cin, Cpad) bf16
    K, Cpad = w_packed.shape
    taps, (N, Ho, Wo) = _make_taps(x_nhwc, stride)
    P = N * Ho * Wo

    row_bytes = K * 2 + 3 * Cpad * 4               # taps + conv + skip + out
    TP, P_pad = _tile_rows(P, row_bytes)
    num_tiles = P_pad // TP

    taps = jnp.pad(taps, ((0, P_pad - P), (0, 0))).astype(jnp.bfloat16)

    # ---- pass 1: conv matmul + per-tile BN partial sums (fully parallel) ----
    conv_out, stats = pl.pallas_call(
        conv_stats_kernel,
        out_shape=(jax.ShapeDtypeStruct((P_pad, Cpad), jnp.float32),
                   jax.ShapeDtypeStruct((num_tiles * 8, Cpad), jnp.float32)),
        grid=(num_tiles,),
        in_specs=[
            pl.BlockSpec((TP, K), lambda i: (i, 0)),
            pl.BlockSpec((K, Cpad), lambda i: (0, 0)),
        ],
        out_specs=(
            pl.BlockSpec((TP, Cpad), lambda i: (i, 0)),
            pl.BlockSpec((8, Cpad), lambda i: (i, 0)),
        ),
        compiler_params=_CPARAMS,
    )(taps, w_packed)

    # ---- tiny O(Cout) plain-JAX step: exact batch stats -> affine ----
    stats = stats.reshape(num_tiles, 8, Cpad)
    total = jnp.sum(stats[:, 0, :], axis=0)
    total_sq = jnp.sum(stats[:, 1, :], axis=0)
    inv_p = 1.0 / float(P)                         # zero pad rows contribute 0
    mean = total * inv_p
    var = jnp.maximum(total_sq * inv_p - mean * mean, 0.0)   # biased (train BN)
    scale_v = gamma.reshape(-1) * lax.rsqrt(var + _EPS)
    shift_v = beta.reshape(-1) - mean * scale_v
    scale = scale_v.reshape(1, Cpad)
    shift = shift_v.reshape(1, Cpad)

    # ---- pass 2: affine + ReLU (+ residual), fully parallel over P tiles ----
    common = dict(
        out_shape=jax.ShapeDtypeStruct((P_pad, Cpad), jnp.float32),
        grid=(num_tiles,),
        out_specs=pl.BlockSpec((TP, Cpad), lambda i: (i, 0)),
        compiler_params=_CPARAMS,
    )
    if has_skip:  # inc == outc and stride == 1 -> shapes match
        skip = x_nhwc.reshape(P, -1)
        skip = jnp.pad(skip, ((0, P_pad - P), (0, Cpad - skip.shape[1])))
        y = pl.pallas_call(
            bn_relu_skip_kernel,
            in_specs=[
                pl.BlockSpec((TP, Cpad), lambda i: (i, 0)),
                pl.BlockSpec((1, Cpad), lambda i: (0, 0)),
                pl.BlockSpec((1, Cpad), lambda i: (0, 0)),
                pl.BlockSpec((TP, Cpad), lambda i: (i, 0)),
            ],
            **common,
        )(conv_out, scale, shift, skip)
    else:
        y = pl.pallas_call(
            bn_relu_kernel,
            in_specs=[
                pl.BlockSpec((TP, Cpad), lambda i: (i, 0)),
                pl.BlockSpec((1, Cpad), lambda i: (0, 0)),
                pl.BlockSpec((1, Cpad), lambda i: (0, 0)),
            ],
            **common,
        )(conv_out, scale, shift)

    return y[:P, :cout].reshape(N, Ho, Wo, cout)


def _run_head(x_nhwc, w, b, n_classes, n_anchors, anchor_size):
    N, H, W, Cin = x_nhwc.shape
    Cpad = w.shape[-1]
    P = N * H * W
    row_bytes = Cin * 2 + 2 * Cpad * 4
    TP, P_pad = _tile_rows(P, row_bytes)
    num_tiles = P_pad // TP

    xf = jnp.pad(x_nhwc.reshape(P, Cin), ((0, P_pad - P), (0, 0)))
    xf = xf.astype(jnp.bfloat16)

    kernel = functools.partial(head_kernel, n_classes=n_classes,
                               n_anchors=n_anchors, anchor_size=anchor_size)
    out = pl.pallas_call(
        kernel,
        out_shape=jax.ShapeDtypeStruct((P_pad, Cpad), jnp.float32),
        grid=(num_tiles,),
        in_specs=[
            pl.BlockSpec((TP, Cin), lambda i: (i, 0)),
            pl.BlockSpec((Cin, Cpad), lambda i: (0, 0)),
            pl.BlockSpec((1, Cpad), lambda i: (0, 0)),
        ],
        out_specs=pl.BlockSpec((TP, Cpad), lambda i: (i, 0)),
        compiler_params=_CPARAMS,
    )(xf, w, b)
    return out[:P].reshape(N, H, W, Cpad)


# ----------------------------------------------------------------------------
# Full Yolo forward
# ----------------------------------------------------------------------------
def yolo_forward(x_nchw, params, conv_list, *, n_classes=91, n_anchors=1,
                 default_anchor_size=0.3, separate=True):
    x = jnp.transpose(x_nchw, (0, 2, 3, 1)).astype(jnp.float32)  # NCHW -> NHWC
    for layer_params, (inc, _), (outc, stride) in zip(
            params["layers"], conv_list[:-1], conv_list[1:]):
        has_skip = (inc == outc) and (stride == 1)
        x = _run_conv_layer(x, layer_params, stride, has_skip, outc)

    y = _run_head(x, params["last_w"], params["last_b"],
                  n_classes, n_anchors, default_anchor_size)
    y = jnp.transpose(y, (0, 3, 1, 2))             # back to NCHW (padded chans)

    tmp = n_classes + 1
    tmp2 = tmp + n_anchors * 2
    tmp3 = tmp2 + n_anchors * 2
    class_preds = y[:, :n_classes, :, :]
    objectness = y[:, n_classes:tmp, :, :]         # == unsqueeze(1) of channel n_classes
    offsets = y[:, tmp:tmp2, :, :]
    boxes = y[:, tmp2:tmp3, :, :]
    if separate:
        return class_preds, objectness, offsets, boxes
    return jnp.concatenate([class_preds, objectness, offsets, boxes], axis=1)


def init_params(key, conv_list, nc_last_conv):
    params = {"layers": []}
    for li, ((cin, _), (cout, _)) in enumerate(zip(conv_list[:-1], conv_list[1:])):
        k = jax.random.fold_in(key, li)
        k_w, k_g, k_bt = jax.random.split(k, 3)
        cpad = _round_up(cout, LANE)
        w = 0.1 * jax.random.normal(k_w, (3, 3, cin, cout), jnp.float32)
        # Packed (kh, kw, cin)-major to match _make_taps concat order; output
        # channels zero-padded to 128 lanes; bf16 MXU operands.
        w_packed = jnp.pad(w.reshape(9 * cin, cout),
                           ((0, 0), (0, cpad - cout))).astype(jnp.bfloat16)
        gamma = 1.0 + 0.1 * jax.random.normal(k_g, (cout,), jnp.float32)
        beta = 0.01 * jax.random.normal(k_bt, (cout,), jnp.float32)
        gamma = jnp.pad(gamma, (0, cpad - cout)).reshape(1, cpad)
        beta = jnp.pad(beta, (0, cpad - cout)).reshape(1, cpad)
        # NOTE: the reference Conv2d bias is omitted on purpose — a per-channel
        # constant added right before a train-mode BatchNorm is exactly
        # cancelled by the mean subtraction (mathematical no-op).
        params["layers"].append((w_packed, gamma, beta))

    k_lw, k_lb = jax.random.split(jax.random.fold_in(key, 10_000))
    cin_last = conv_list[-1][0]
    cpad = _round_up(nc_last_conv, LANE)
    lw = 0.1 * jax.random.normal(k_lw, (cin_last, nc_last_conv), jnp.float32)
    lb = 0.01 * jax.random.normal(k_lb, (nc_last_conv,), jnp.float32)
    params["last_w"] = jnp.pad(lw, ((0, 0), (0, cpad - nc_last_conv))
                               ).astype(jnp.bfloat16)
    params["last_b"] = jnp.pad(lb, (0, cpad - nc_last_conv)).reshape(1, cpad)
    return params


if __name__ == "__main__":
    key = jax.random.PRNGKey(0)

    # Small synthetic config: conv_list of (channels, stride) pairs.
    conv_list = ((3, 1), (16, 1), (16, 1), (32, 2), (32, 1))
    n_classes, n_anchors = 91, 1
    nc_last_conv = n_classes + 1 + 4 * n_anchors  # 96

    params = init_params(jax.random.fold_in(key, 1), conv_list, nc_last_conv)
    x = jax.random.normal(jax.random.fold_in(key, 2), (2, 3, 16, 16), jnp.float32)

    fwd = jax.jit(functools.partial(
        yolo_forward, conv_list=conv_list, n_classes=n_classes,
        n_anchors=n_anchors, default_anchor_size=0.3, separate=True))

    class_preds, objectness, offsets, boxes = fwd(x, params)
    jax.block_until_ready((class_preds, objectness, offsets, boxes))

    assert class_preds.shape == (2, 91, 8, 8)
    assert objectness.shape == (2, 1, 8, 8)
    assert offsets.shape == (2, 2, 8, 8)
    assert boxes.shape == (2, 2, 8, 8)
    print("KERNEL_OK")
</pallas_src>

<mosaic_0001>
module attributes {stable_mosaic.version = 11 : i64} {
  func.func @bn_relu_kernel(%arg0: i32, %arg1: memref<256x128xf32, #tpu.memory_space<vmem>>, %arg2: memref<1x128xf32, #tpu.memory_space<vmem>>, %arg3: memref<1x128xf32, #tpu.memory_space<vmem>>, %arg4: memref<256x128xf32, #tpu.memory_space<vmem>>) attributes {dimension_semantics = [#tpu.dimension_semantics<parallel>], iteration_bounds = array<i64: 2>, scalar_prefetch = 0 : i64, scratch_operands = 0 : i64, tpu.core_type = #tpu.core_type<tc>, window_params = [{transform_indices = @transform_0, window_bounds = array<i64: 256, 128>}, {pipeline_mode = #tpu.pipeline_mode<synchronous>, transform_indices = @transform_1, window_bounds = array<i64: 1, 128>}, {pipeline_mode = #tpu.pipeline_mode<synchronous>, transform_indices = @transform_2, window_bounds = array<i64: 1, 128>}, {transform_indices = @transform_3, window_bounds = array<i64: 256, 128>}]} {
    %c0 = arith.constant 0 : index
    %c0_0 = arith.constant 0 : index
    %0 = vector.load %arg1[%c0, %c0_0] : memref<256x128xf32, #tpu.memory_space<vmem>>, vector<256x128xf32>
    %c0_1 = arith.constant 0 : index
    %c0_2 = arith.constant 0 : index
    %1 = vector.load %arg2[%c0_1, %c0_2] : memref<1x128xf32, #tpu.memory_space<vmem>>, vector<1x128xf32>
    %2 = vector.broadcast %1 : vector<1x128xf32> to vector<256x128xf32>
    %3 = arith.mulf %0, %2 : vector<256x128xf32>
    %c0_3 = arith.constant 0 : index
    %c0_4 = arith.constant 0 : index
    %4 = vector.load %arg3[%c0_3, %c0_4] : memref<1x128xf32, #tpu.memory_space<vmem>>, vector<1x128xf32>
    %5 = vector.broadcast %4 : vector<1x128xf32> to vector<256x128xf32>
    %6 = arith.addf %3, %5 : vector<256x128xf32>
    %cst = arith.constant 0.000000e+00 : f32
    %7 = vector.broadcast %cst : f32 to vector<256x128xf32>
    %8 = arith.maximumf %6, %7 : vector<256x128xf32>
    %c0_5 = arith.constant 0 : index
    %c0_6 = arith.constant 0 : index
    %9 = vector.load %arg4[%c0_5, %c0_6] : memref<256x128xf32, #tpu.memory_space<vmem>>, vector<256x128xf32>
    tpu.vector_store %arg4[%c0_5, %c0_6], %8 {strides = array<i32>} : memref<256x128xf32, #tpu.memory_space<vmem>>, vector<256x128xf32>,
    return
  }
  func.func @transform_0(%arg0: i32) -> (i32, i32) {
    %c0_i32 = arith.constant 0 : i32
    %c0_i32_0 = arith.constant 0 : i32
    return %arg0, %c0_i32 : i32, i32
  }
  func.func @transform_1(%arg0: i32) -> (i32, i32) {
    %c0_i32 = arith.constant 0 : i32
    %c0_i32_0 = arith.constant 0 : i32
    %c0_i32_1 = arith.constant 0 : i32
    return %c0_i32, %c0_i32_0 : i32, i32
  }
  func.func @transform_2(%arg0: i32) -> (i32, i32) {
    %c0_i32 = arith.constant 0 : i32
    %c0_i32_0 = arith.constant 0 : i32
    %c0_i32_1 = arith.constant 0 : i32
    return %c0_i32, %c0_i32_0 : i32, i32
  }
  func.func @transform_3(%arg0: i32) -> (i32, i32) {
    %c0_i32 = arith.constant 0 : i32
    %c0_i32_0 = arith.constant 0 : i32
    return %arg0, %c0_i32 : i32, i32
  }
}

module attributes {stable_mosaic.version = 11 : i64} {
  func.func @conv_stats_kernel(%arg0: i32, %arg1: memref<256x27xbf16, #tpu.memory_space<vmem>>, %arg2: memref<27x128xbf16, #tpu.memory_space<vmem>>, %arg3: memref<256x128xf32, #tpu.memory_space<vmem>>, %arg4: memref<8x128xf32, #tpu.memory_space<vmem>>) attributes {dimension_semantics = [#tpu.dimension_semantics<parallel>], iteration_bounds = array<i64: 2>, scalar_prefetch = 0 : i64, scratch_operands = 0 : i64, tpu.core_type = #tpu.core_type<tc>, window_params = [{transform_indices = @transform_0, window_bounds = array<i64: 256, 27>}, {pipeline_mode = #tpu.pipeline_mode<synchronous>, transform_indices = @transform_1, window_bounds = array<i64: 27, 128>}, {transform_indices = @transform_2, window_bounds = array<i64: 256, 128>}, {transform_indices = @transform_3, window_bounds = array<i64: 8, 128>}]} {
    %c0 = arith.constant 0 : index
    %c0_0 = arith.constant 0 : index
    %0 = vector.load %arg1[%c0, %c0_0] : memref<256x27xbf16, #tpu.memory_space<vmem>>, vector<256x27xbf16>
    %c0_1 = arith.constant 0 : index
    %c0_2 = arith.constant 0 : index
    %1 = vector.load %arg2[%c0_1, %c0_2] : memref<27x128xbf16, #tpu.memory_space<vmem>>, vector<27x128xbf16>
    %cst = arith.constant dense<0.000000e+00> : vector<256x128xf32>
    %2 = tpu.matmul %0, %1, %cst {dimension_numbers = #tpu.dot_dimension_numbers<[1], [0], [0], [1], [0, 0, 1, 1], [], []>} : vector<256x27xbf16>, vector<27x128xbf16>, vector<256x128xf32> -> vector<256x128xf32>
    %c0_3 = arith.constant 0 : index
    %c0_4 = arith.constant 0 : index
    %3 = vector.load %arg3[%c0_3, %c0_4] : memref<256x128xf32, #tpu.memory_space<vmem>>, vector<256x128xf32>
    tpu.vector_store %arg3[%c0_3, %c0_4], %2 {strides = array<i32>} : memref<256x128xf32, #tpu.memory_space<vmem>>, vector<256x128xf32>,
    %cst_5 = arith.constant dense<0.000000e+00> : vector<128xf32>
    %4 = vector.multi_reduction <add>, %2, %cst_5 [0] : vector<256x128xf32> to vector<128xf32>
    %5 = vector.shape_cast %4 : vector<128xf32> to vector<1x128xf32>
    %6 = arith.mulf %2, %2 : vector<256x128xf32>
    %cst_6 = arith.constant dense<0.000000e+00> : vector<128xf32>
    %7 = vector.multi_reduction <add>, %6, %cst_6 [0] : vector<256x128xf32> to vector<128xf32>
    %8 = vector.shape_cast %7 : vector<128xf32> to vector<1x128xf32>
    %cst_7 = arith.constant 0.000000e+00 : f32
    %9 = vector.broadcast %cst_7 : f32 to vector<6x128xf32>
    %10 = tpu.concatenate %5, %8, %9 in 0 : vector<1x128xf32>, vector<1x128xf32>, vector<6x128xf32> -> vector<8x128xf32>
    %c0_8 = arith.constant 0 : index
    %c0_9 = arith.constant 0 : index
    %11 = vector.load %arg4[%c0_8, %c0_9] : memref<8x128xf32, #tpu.memory_space<vmem>>, vector<8x128xf32>
    tpu.vector_store %arg4[%c0_8, %c0_9], %10 {strides = array<i32>} : memref<8x128xf32, #tpu.memory_space<vmem>>, vector<8x128xf32>,
    return
  }
  func.func @transform_0(%arg0: i32) -> (i32, i32) {
    %c0_i32 = arith.constant 0 : i32
    %c0_i32_0 = arith.constant 0 : i32
    return %arg0, %c0_i32 : i32, i32
  }
  func.func @transform_1(%arg0: i32) -> (i32, i32) {
    %c0_i32 = arith.constant 0 : i32
    %c0_i32_0 = arith.constant 0 : i32
    %c0_i32_1 = arith.constant 0 : i32
    return %c0_i32, %c0_i32_0 : i32, i32
  }
  func.func @transform_2(%arg0: i32) -> (i32, i32) {
    %c0_i32 = arith.constant 0 : i32
    %c0_i32_0 = arith.constant 0 : i32
    return %arg0, %c0_i32 : i32, i32
  }
  func.func @transform_3(%arg0: i32) -> (i32, i32) {
    %c0_i32 = arith.constant 0 : i32
    %c0_i32_0 = arith.constant 0 : i32
    return %arg0, %c0_i32 : i32, i32
  }
}

module attributes {stable_mosaic.version = 11 : i64} {
  func.func @conv_stats_kernel(%arg0: i32, %arg1: memref<256x144xbf16, #tpu.memory_space<vmem>>, %arg2: memref<144x128xbf16, #tpu.memory_space<vmem>>, %arg3: memref<256x128xf32, #tpu.memory_space<vmem>>, %arg4: memref<8x128xf32, #tpu.memory_space<vmem>>) attributes {dimension_semantics = [#tpu.dimension_semantics<parallel>], iteration_bounds = array<i64: 2>, scalar_prefetch = 0 : i64, scratch_operands = 0 : i64, tpu.core_type = #tpu.core_type<tc>, window_params = [{transform_indices = @transform_0, window_bounds = array<i64: 256, 144>}, {pipeline_mode = #tpu.pipeline_mode<synchronous>, transform_indices = @transform_1, window_bounds = array<i64: 144, 128>}, {transform_indices = @transform_2, window_bounds = array<i64: 256, 128>}, {transform_indices = @transform_3, window_bounds = array<i64: 8, 128>}]} {
    %c0 = arith.constant 0 : index
    %c0_0 = arith.constant 0 : index
    %0 = vector.load %arg1[%c0, %c0_0] : memref<256x144xbf16, #tpu.memory_space<vmem>>, vector<256x144xbf16>
    %c0_1 = arith.constant 0 : index
    %c0_2 = arith.constant 0 : index
    %1 = vector.load %arg2[%c0_1, %c0_2] : memref<144x128xbf16, #tpu.memory_space<vmem>>, vector<144x128xbf16>
    %cst = arith.constant dense<0.000000e+00> : vector<256x128xf32>
    %2 = tpu.matmul %0, %1, %cst {dimension_numbers = #tpu.dot_dimension_numbers<[1], [0], [0], [1], [0, 0, 1, 1], [], []>} : vector<256x144xbf16>, vector<144x128xbf16>, vector<256x128xf32> -> vector<256x128xf32>
    %c0_3 = arith.constant 0 : index
    %c0_4 = arith.constant 0 : index
    %3 = vector.load %arg3[%c0_3, %c0_4] : memref<256x128xf32, #tpu.memory_space<vmem>>, vector<256x128xf32>
    tpu.vector_store %arg3[%c0_3, %c0_4], %2 {strides = array<i32>} : memref<256x128xf32, #tpu.memory_space<vmem>>, vector<256x128xf32>,
    %cst_5 = arith.constant dense<0.000000e+00> : vector<128xf32>
    %4 = vector.multi_reduction <add>, %2, %cst_5 [0] : vector<256x128xf32> to vector<128xf32>
    %5 = vector.shape_cast %4 : vector<128xf32> to vector<1x128xf32>
    %6 = arith.mulf %2, %2 : vector<256x128xf32>
    %cst_6 = arith.constant dense<0.000000e+00> : vector<128xf32>
    %7 = vector.multi_reduction <add>, %6, %cst_6 [0] : vector<256x128xf32> to vector<128xf32>
    %8 = vector.shape_cast %7 : vector<128xf32> to vector<1x128xf32>
    %cst_7 = arith.constant 0.000000e+00 : f32
    %9 = vector.broadcast %cst_7 : f32 to vector<6x128xf32>
    %10 = tpu.concatenate %5, %8, %9 in 0 : vector<1x128xf32>, vector<1x128xf32>, vector<6x128xf32> -> vector<8x128xf32>
    %c0_8 = arith.constant 0 : index
    %c0_9 = arith.constant 0 : index
    %11 = vector.load %arg4[%c0_8, %c0_9] : memref<8x128xf32, #tpu.memory_space<vmem>>, vector<8x128xf32>
    tpu.vector_store %arg4[%c0_8, %c0_9], %10 {strides = array<i32>} : memref<8x128xf32, #tpu.memory_space<vmem>>, vector<8x128xf32>,
    return
  }
  func.func @transform_0(%arg0: i32) -> (i32, i32) {
    %c0_i32 = arith.constant 0 : i32
    %c0_i32_0 = arith.constant 0 : i32
    return %arg0, %c0_i32 : i32, i32
  }
  func.func @transform_1(%arg0: i32) -> (i32, i32) {
    %c0_i32 = arith.constant 0 : i32
    %c0_i32_0 = arith.constant 0 : i32
    %c0_i32_1 = arith.constant 0 : i32
    return %c0_i32, %c0_i32_0 : i32, i32
  }
  func.func @transform_2(%arg0: i32) -> (i32, i32) {
    %c0_i32 = arith.constant 0 : i32
    %c0_i32_0 = arith.constant 0 : i32
    return %arg0, %c0_i32 : i32, i32
  }
  func.func @transform_3(%arg0: i32) -> (i32, i32) {
    %c0_i32 = arith.constant 0 : i32
    %c0_i32_0 = arith.constant 0 : i32
    return %arg0, %c0_i32 : i32, i32
  }
}

module attributes {stable_mosaic.version = 11 : i64} {
  func.func @bn_relu_skip_kernel(%arg0: i32, %arg1: memref<256x128xf32, #tpu.memory_space<vmem>>, %arg2: memref<1x128xf32, #tpu.memory_space<vmem>>, %arg3: memref<1x128xf32, #tpu.memory_space<vmem>>, %arg4: memref<256x128xf32, #tpu.memory_space<vmem>>, %arg5: memref<256x128xf32, #tpu.memory_space<vmem>>) attributes {dimension_semantics = [#tpu.dimension_semantics<parallel>], iteration_bounds = array<i64: 2>, scalar_prefetch = 0 : i64, scratch_operands = 0 : i64, tpu.core_type = #tpu.core_type<tc>, window_params = [{transform_indices = @transform_0, window_bounds = array<i64: 256, 128>}, {pipeline_mode = #tpu.pipeline_mode<synchronous>, transform_indices = @transform_1, window_bounds = array<i64: 1, 128>}, {pipeline_mode = #tpu.pipeline_mode<synchronous>, transform_indices = @transform_2, window_bounds = array<i64: 1, 128>}, {transform_indices = @transform_3, window_bounds = array<i64: 256, 128>}, {transform_indices = @transform_4, window_bounds = array<i64: 256, 128>}]} {
    %c0 = arith.constant 0 : index
    %c0_0 = arith.constant 0 : index
    %0 = vector.load %arg1[%c0, %c0_0] : memref<256x128xf32, #tpu.memory_space<vmem>>, vector<256x128xf32>
    %c0_1 = arith.constant 0 : index
    %c0_2 = arith.constant 0 : index
    %1 = vector.load %arg2[%c0_1, %c0_2] : memref<1x128xf32, #tpu.memory_space<vmem>>, vector<1x128xf32>
    %2 = vector.broadcast %1 : vector<1x128xf32> to vector<256x128xf32>
    %3 = arith.mulf %0, %2 : vector<256x128xf32>
    %c0_3 = arith.constant 0 : index
    %c0_4 = arith.constant 0 : index
    %4 = vector.load %arg3[%c0_3, %c0_4] : memref<1x128xf32, #tpu.memory_space<vmem>>, vector<1x128xf32>
    %5 = vector.broadcast %4 : vector<1x128xf32> to vector<256x128xf32>
    %6 = arith.addf %3, %5 : vector<256x128xf32>
    %cst = arith.constant 0.000000e+00 : f32
    %7 = vector.broadcast %cst : f32 to vector<256x128xf32>
    %8 = arith.maximumf %6, %7 : vector<256x128xf32>
    %c0_5 = arith.constant 0 : index
    %c0_6 = arith.constant 0 : index
    %9 = vector.load %arg4[%c0_5, %c0_6] : memref<256x128xf32, #tpu.memory_space<vmem>>, vector<256x128xf32>
    %10 = arith.addf %8, %9 : vector<256x128xf32>
    %c0_7 = arith.constant 0 : index
    %c0_8 = arith.constant 0 : index
    %11 = vector.load %arg5[%c0_7, %c0_8] : memref<256x128xf32, #tpu.memory_space<vmem>>, vector<256x128xf32>
    tpu.vector_store %arg5[%c0_7, %c0_8], %10 {strides = array<i32>} : memref<256x128xf32, #tpu.memory_space<vmem>>, vector<256x128xf32>,
    return
  }
  func.func @transform_0(%arg0: i32) -> (i32, i32) {
    %c0_i32 = arith.constant 0 : i32
    %c0_i32_0 = arith.constant 0 : i32
    return %arg0, %c0_i32 : i32, i32
  }
  func.func @transform_1(%arg0: i32) -> (i32, i32) {
    %c0_i32 = arith.constant 0 : i32
    %c0_i32_0 = arith.constant 0 : i32
    %c0_i32_1 = arith.constant 0 : i32
    return %c0_i32, %c0_i32_0 : i32, i32
  }
  func.func @transform_2(%arg0: i32) -> (i32, i32) {
    %c0_i32 = arith.constant 0 : i32
    %c0_i32_0 = arith.constant 0 : i32
    %c0_i32_1 = arith.constant 0 : i32
    return %c0_i32, %c0_i32_0 : i32, i32
  }
  func.func @transform_3(%arg0: i32) -> (i32, i32) {
    %c0_i32 = arith.constant 0 : i32
    %c0_i32_0 = arith.constant 0 : i32
    return %arg0, %c0_i32 : i32, i32
  }
  func.func @transform_4(%arg0: i32) -> (i32, i32) {
    %c0_i32 = arith.constant 0 : i32
    %c0_i32_0 = arith.constant 0 : i32
    return %arg0, %c0_i32 : i32, i32
  }
}

module attributes {stable_mosaic.version = 11 : i64} {
  func.func @conv_stats_kernel(%arg0: i32, %arg1: memref<128x144xbf16, #tpu.memory_space<vmem>>, %arg2: memref<144x128xbf16, #tpu.memory_space<vmem>>, %arg3: memref<128x128xf32, #tpu.memory_space<vmem>>, %arg4: memref<8x128xf32, #tpu.memory_space<vmem>>) attributes {dimension_semantics = [#tpu.dimension_semantics<parallel>], iteration_bounds = array<i64: 1>, scalar_prefetch = 0 : i64, scratch_operands = 0 : i64, tpu.core_type = #tpu.core_type<tc>, window_params = [{transform_indices = @transform_0, window_bounds = array<i64: 128, 144>}, {pipeline_mode = #tpu.pipeline_mode<synchronous>, transform_indices = @transform_1, window_bounds = array<i64: 144, 128>}, {transform_indices = @transform_2, window_bounds = array<i64: 128, 128>}, {transform_indices = @transform_3, window_bounds = array<i64: 8, 128>}]} {
    %c0 = arith.constant 0 : index
    %c0_0 = arith.constant 0 : index
    %0 = vector.load %arg1[%c0, %c0_0] : memref<128x144xbf16, #tpu.memory_space<vmem>>, vector<128x144xbf16>
    %c0_1 = arith.constant 0 : index
    %c0_2 = arith.constant 0 : index
    %1 = vector.load %arg2[%c0_1, %c0_2] : memref<144x128xbf16, #tpu.memory_space<vmem>>, vector<144x128xbf16>
    %cst = arith.constant dense<0.000000e+00> : vector<128x128xf32>
    %2 = tpu.matmul %0, %1, %cst {dimension_numbers = #tpu.dot_dimension_numbers<[1], [0], [0], [1], [0, 0, 1, 1], [], []>} : vector<128x144xbf16>, vector<144x128xbf16>, vector<128x128xf32> -> vector<128x128xf32>
    %c0_3 = arith.constant 0 : index
    %c0_4 = arith.constant 0 : index
    %3 = vector.load %arg3[%c0_3, %c0_4] : memref<128x128xf32, #tpu.memory_space<vmem>>, vector<128x128xf32>
    tpu.vector_store %arg3[%c0_3, %c0_4], %2 {strides = array<i32>} : memref<128x128xf32, #tpu.memory_space<vmem>>, vector<128x128xf32>,
    %cst_5 = arith.constant dense<0.000000e+00> : vector<128xf32>
    %4 = vector.multi_reduction <add>, %2, %cst_5 [0] : vector<128x128xf32> to vector<128xf32>
    %5 = vector.shape_cast %4 : vector<128xf32> to vector<1x128xf32>
    %6 = arith.mulf %2, %2 : vector<128x128xf32>
    %cst_6 = arith.constant dense<0.000000e+00> : vector<128xf32>
    %7 = vector.multi_reduction <add>, %6, %cst_6 [0] : vector<128x128xf32> to vector<128xf32>
    %8 = vector.shape_cast %7 : vector<128xf32> to vector<1x128xf32>
    %cst_7 = arith.constant 0.000000e+00 : f32
    %9 = vector.broadcast %cst_7 : f32 to vector<6x128xf32>
    %10 = tpu.concatenate %5, %8, %9 in 0 : vector<1x128xf32>, vector<1x128xf32>, vector<6x128xf32> -> vector<8x128xf32>
    %c0_8 = arith.constant 0 : index
    %c0_9 = arith.constant 0 : index
    %11 = vector.load %arg4[%c0_8, %c0_9] : memref<8x128xf32, #tpu.memory_space<vmem>>, vector<8x128xf32>
    tpu.vector_store %arg4[%c0_8, %c0_9], %10 {strides = array<i32>} : memref<8x128xf32, #tpu.memory_space<vmem>>, vector<8x128xf32>,
    return
  }
  func.func @transform_0(%arg0: i32) -> (i32, i32) {
    %c0_i32 = arith.constant 0 : i32
    %c0_i32_0 = arith.constant 0 : i32
    return %arg0, %c0_i32 : i32, i32
  }
  func.func @transform_1(%arg0: i32) -> (i32, i32) {
    %c0_i32 = arith.constant 0 : i32
    %c0_i32_0 = arith.constant 0 : i32
    %c0_i32_1 = arith.constant 0 : i32
    return %c0_i32, %c0_i32_0 : i32, i32
  }
  func.func @transform_2(%arg0: i32) -> (i32, i32) {
    %c0_i32 = arith.constant 0 : i32
    %c0_i32_0 = arith.constant 0 : i32
    return %arg0, %c0_i32 : i32, i32
  }
  func.func @transform_3(%arg0: i32) -> (i32, i32) {
    %c0_i32 = arith.constant 0 : i32
    %c0_i32_0 = arith.constant 0 : i32
    return %arg0, %c0_i32 : i32, i32
  }
}

module attributes {stable_mosaic.version = 11 : i64} {
  func.func @bn_relu_kernel(%arg0: i32, %arg1: memref<128x128xf32, #tpu.memory_space<vmem>>, %arg2: memref<1x128xf32, #tpu.memory_space<vmem>>, %arg3: memref<1x128xf32, #tpu.memory_space<vmem>>, %arg4: memref<128x128xf32, #tpu.memory_space<vmem>>) attributes {dimension_semantics = [#tpu.dimension_semantics<parallel>], iteration_bounds = array<i64: 1>, scalar_prefetch = 0 : i64, scratch_operands = 0 : i64, tpu.core_type = #tpu.core_type<tc>, window_params = [{transform_indices = @transform_0, window_bounds = array<i64: 128, 128>}, {pipeline_mode = #tpu.pipeline_mode<synchronous>, transform_indices = @transform_1, window_bounds = array<i64: 1, 128>}, {pipeline_mode = #tpu.pipeline_mode<synchronous>, transform_indices = @transform_2, window_bounds = array<i64: 1, 128>}, {transform_indices = @transform_3, window_bounds = array<i64: 128, 128>}]} {
    %c0 = arith.constant 0 : index
    %c0_0 = arith.constant 0 : index
    %0 = vector.load %arg1[%c0, %c0_0] : memref<128x128xf32, #tpu.memory_space<vmem>>, vector<128x128xf32>
    %c0_1 = arith.constant 0 : index
    %c0_2 = arith.constant 0 : index
    %1 = vector.load %arg2[%c0_1, %c0_2] : memref<1x128xf32, #tpu.memory_space<vmem>>, vector<1x128xf32>
    %2 = vector.broadcast %1 : vector<1x128xf32> to vector<128x128xf32>
    %3 = arith.mulf %0, %2 : vector<128x128xf32>
    %c0_3 = arith.constant 0 : index
    %c0_4 = arith.constant 0 : index
    %4 = vector.load %arg3[%c0_3, %c0_4] : memref<1x128xf32, #tpu.memory_space<vmem>>, vector<1x128xf32>
    %5 = vector.broadcast %4 : vector<1x128xf32> to vector<128x128xf32>
    %6 = arith.addf %3, %5 : vector<128x128xf32>
    %cst = arith.constant 0.000000e+00 : f32
    %7 = vector.broadcast %cst : f32 to vector<128x128xf32>
    %8 = arith.maximumf %6, %7 : vector<128x128xf32>
    %c0_5 = arith.constant 0 : index
    %c0_6 = arith.constant 0 : index
    %9 = vector.load %arg4[%c0_5, %c0_6] : memref<128x128xf32, #tpu.memory_space<vmem>>, vector<128x128xf32>
    tpu.vector_store %arg4[%c0_5, %c0_6], %8 {strides = array<i32>} : memref<128x128xf32, #tpu.memory_space<vmem>>, vector<128x128xf32>,
    return
  }
  func.func @transform_0(%arg0: i32) -> (i32, i32) {
    %c0_i32 = arith.constant 0 : i32
    %c0_i32_0 = arith.constant 0 : i32
    return %arg0, %c0_i32 : i32, i32
  }
  func.func @transform_1(%arg0: i32) -> (i32, i32) {
    %c0_i32 = arith.constant 0 : i32
    %c0_i32_0 = arith.constant 0 : i32
    %c0_i32_1 = arith.constant 0 : i32
    return %c0_i32, %c0_i32_0 : i32, i32
  }
  func.func @transform_2(%arg0: i32) -> (i32, i32) {
    %c0_i32 = arith.constant 0 : i32
    %c0_i32_0 = arith.constant 0 : i32
    %c0_i32_1 = arith.constant 0 : i32
    return %c0_i32, %c0_i32_0 : i32, i32
  }
  func.func @transform_3(%arg0: i32) -> (i32, i32) {
    %c0_i32 = arith.constant 0 : i32
    %c0_i32_0 = arith.constant 0 : i32
    return %arg0, %c0_i32 : i32, i32
  }
}

module attributes {stable_mosaic.version = 11 : i64} {
  func.func @conv_stats_kernel(%arg0: i32, %arg1: memref<128x288xbf16, #tpu.memory_space<vmem>>, %arg2: memref<288x128xbf16, #tpu.memory_space<vmem>>, %arg3: memref<128x128xf32, #tpu.memory_space<vmem>>, %arg4: memref<8x128xf32, #tpu.memory_space<vmem>>) attributes {dimension_semantics = [#tpu.dimension_semantics<parallel>], iteration_bounds = array<i64: 1>, scalar_prefetch = 0 : i64, scratch_operands = 0 : i64, tpu.core_type = #tpu.core_type<tc>, window_params = [{transform_indices = @transform_0, window_bounds = array<i64: 128, 288>}, {pipeline_mode = #tpu.pipeline_mode<synchronous>, transform_indices = @transform_1, window_bounds = array<i64: 288, 128>}, {transform_indices = @transform_2, window_bounds = array<i64: 128, 128>}, {transform_indices = @transform_3, window_bounds = array<i64: 8, 128>}]} {
    %c0 = arith.constant 0 : index
    %c0_0 = arith.constant 0 : index
    %0 = vector.load %arg1[%c0, %c0_0] : memref<128x288xbf16, #tpu.memory_space<vmem>>, vector<128x288xbf16>
    %c0_1 = arith.constant 0 : index
    %c0_2 = arith.constant 0 : index
    %1 = vector.load %arg2[%c0_1, %c0_2] : memref<288x128xbf16, #tpu.memory_space<vmem>>, vector<288x128xbf16>
    %cst = arith.constant dense<0.000000e+00> : vector<128x128xf32>
    %2 = tpu.matmul %0, %1, %cst {dimension_numbers = #tpu.dot_dimension_numbers<[1], [0], [0], [1], [0, 0, 1, 1], [], []>} : vector<128x288xbf16>, vector<288x128xbf16>, vector<128x128xf32> -> vector<128x128xf32>
    %c0_3 = arith.constant 0 : index
    %c0_4 = arith.constant 0 : index
    %3 = vector.load %arg3[%c0_3, %c0_4] : memref<128x128xf32, #tpu.memory_space<vmem>>, vector<128x128xf32>
    tpu.vector_store %arg3[%c0_3, %c0_4], %2 {strides = array<i32>} : memref<128x128xf32, #tpu.memory_space<vmem>>, vector<128x128xf32>,
    %cst_5 = arith.constant dense<0.000000e+00> : vector<128xf32>
    %4 = vector.multi_reduction <add>, %2, %cst_5 [0] : vector<128x128xf32> to vector<128xf32>
    %5 = vector.shape_cast %4 : vector<128xf32> to vector<1x128xf32>
    %6 = arith.mulf %2, %2 : vector<128x128xf32>
    %cst_6 = arith.constant dense<0.000000e+00> : vector<128xf32>
    %7 = vector.multi_reduction <add>, %6, %cst_6 [0] : vector<128x128xf32> to vector<128xf32>
    %8 = vector.shape_cast %7 : vector<128xf32> to vector<1x128xf32>
    %cst_7 = arith.constant 0.000000e+00 : f32
    %9 = vector.broadcast %cst_7 : f32 to vector<6x128xf32>
    %10 = tpu.concatenate %5, %8, %9 in 0 : vector<1x128xf32>, vector<1x128xf32>, vector<6x128xf32> -> vector<8x128xf32>
    %c0_8 = arith.constant 0 : index
    %c0_9 = arith.constant 0 : index
    %11 = vector.load %arg4[%c0_8, %c0_9] : memref<8x128xf32, #tpu.memory_space<vmem>>, vector<8x128xf32>
    tpu.vector_store %arg4[%c0_8, %c0_9], %10 {strides = array<i32>} : memref<8x128xf32, #tpu.memory_space<vmem>>, vector<8x128xf32>,
    return
  }
  func.func @transform_0(%arg0: i32) -> (i32, i32) {
    %c0_i32 = arith.constant 0 : i32
    %c0_i32_0 = arith.constant 0 : i32
    return %arg0, %c0_i32 : i32, i32
  }
  func.func @transform_1(%arg0: i32) -> (i32, i32) {
    %c0_i32 = arith.constant 0 : i32
    %c0_i32_0 = arith.constant 0 : i32
    %c0_i32_1 = arith.constant 0 : i32
    return %c0_i32, %c0_i32_0 : i32, i32
  }
  func.func @transform_2(%arg0: i32) -> (i32, i32) {
    %c0_i32 = arith.constant 0 : i32
    %c0_i32_0 = arith.constant 0 : i32
    return %arg0, %c0_i32 : i32, i32
  }
  func.func @transform_3(%arg0: i32) -> (i32, i32) {
    %c0_i32 = arith.constant 0 : i32
    %c0_i32_0 = arith.constant 0 : i32
    return %arg0, %c0_i32 : i32, i32
  }
}

module attributes {stable_mosaic.version = 11 : i64} {
  func.func @bn_relu_skip_kernel(%arg0: i32, %arg1: memref<128x128xf32, #tpu.memory_space<vmem>>, %arg2: memref<1x128xf32, #tpu.memory_space<vmem>>, %arg3: memref<1x128xf32, #tpu.memory_space<vmem>>, %arg4: memref<128x128xf32, #tpu.memory_space<vmem>>, %arg5: memref<128x128xf32, #tpu.memory_space<vmem>>) attributes {dimension_semantics = [#tpu.dimension_semantics<parallel>], iteration_bounds = array<i64: 1>, scalar_prefetch = 0 : i64, scratch_operands = 0 : i64, tpu.core_type = #tpu.core_type<tc>, window_params = [{transform_indices = @transform_0, window_bounds = array<i64: 128, 128>}, {pipeline_mode = #tpu.pipeline_mode<synchronous>, transform_indices = @transform_1, window_bounds = array<i64: 1, 128>}, {pipeline_mode = #tpu.pipeline_mode<synchronous>, transform_indices = @transform_2, window_bounds = array<i64: 1, 128>}, {transform_indices = @transform_3, window_bounds = array<i64: 128, 128>}, {transform_indices = @transform_4, window_bounds = array<i64: 128, 128>}]} {
    %c0 = arith.constant 0 : index
    %c0_0 = arith.constant 0 : index
    %0 = vector.load %arg1[%c0, %c0_0] : memref<128x128xf32, #tpu.memory_space<vmem>>, vector<128x128xf32>
    %c0_1 = arith.constant 0 : index
    %c0_2 = arith.constant 0 : index
    %1 = vector.load %arg2[%c0_1, %c0_2] : memref<1x128xf32, #tpu.memory_space<vmem>>, vector<1x128xf32>
    %2 = vector.broadcast %1 : vector<1x128xf32> to vector<128x128xf32>
    %3 = arith.mulf %0, %2 : vector<128x128xf32>
    %c0_3 = arith.constant 0 : index
    %c0_4 = arith.constant 0 : index
    %4 = vector.load %arg3[%c0_3, %c0_4] : memref<1x128xf32, #tpu.memory_space<vmem>>, vector<1x128xf32>
    %5 = vector.broadcast %4 : vector<1x128xf32> to vector<128x128xf32>
    %6 = arith.addf %3, %5 : vector<128x128xf32>
    %cst = arith.constant 0.000000e+00 : f32
    %7 = vector.broadcast %cst : f32 to vector<128x128xf32>
    %8 = arith.maximumf %6, %7 : vector<128x128xf32>
    %c0_5 = arith.constant 0 : index
    %c0_6 = arith.constant 0 : index
    %9 = vector.load %arg4[%c0_5, %c0_6] : memref<128x128xf32, #tpu.memory_space<vmem>>, vector<128x128xf32>
    %10 = arith.addf %8, %9 : vector<128x128xf32>
    %c0_7 = arith.constant 0 : index
    %c0_8 = arith.constant 0 : index
    %11 = vector.load %arg5[%c0_7, %c0_8] : memref<128x128xf32, #tpu.memory_space<vmem>>, vector<128x128xf32>
    tpu.vector_store %arg5[%c0_7, %c0_8], %10 {strides = array<i32>} : memref<128x128xf32, #tpu.memory_space<vmem>>, vector<128x128xf32>,
    return
  }
  func.func @transform_0(%arg0: i32) -> (i32, i32) {
    %c0_i32 = arith.constant 0 : i32
    %c0_i32_0 = arith.constant 0 : i32
    return %arg0, %c0_i32 : i32, i32
  }
  func.func @transform_1(%arg0: i32) -> (i32, i32) {
    %c0_i32 = arith.constant 0 : i32
    %c0_i32_0 = arith.constant 0 : i32
    %c0_i32_1 = arith.constant 0 : i32
    return %c0_i32, %c0_i32_0 : i32, i32
  }
  func.func @transform_2(%arg0: i32) -> (i32, i32) {
    %c0_i32 = arith.constant 0 : i32
    %c0_i32_0 = arith.constant 0 : i32
    %c0_i32_1 = arith.constant 0 : i32
    return %c0_i32, %c0_i32_0 : i32, i32
  }
  func.func @transform_3(%arg0: i32) -> (i32, i32) {
    %c0_i32 = arith.constant 0 : i32
    %c0_i32_0 = arith.constant 0 : i32
    return %arg0, %c0_i32 : i32, i32
  }
  func.func @transform_4(%arg0: i32) -> (i32, i32) {
    %c0_i32 = arith.constant 0 : i32
    %c0_i32_0 = arith.constant 0 : i32
    return %arg0, %c0_i32 : i32, i32
  }
}

module attributes {stable_mosaic.version = 11 : i64} {
  func.func @head_kernel(%arg0: i32, %arg1: memref<128x32xbf16, #tpu.memory_space<vmem>>, %arg2: memref<32x128xbf16, #tpu.memory_space<vmem>>, %arg3: memref<1x128xf32, #tpu.memory_space<vmem>>, %arg4: memref<128x128xf32, #tpu.memory_space<vmem>>) attributes {dimension_semantics = [#tpu.dimension_semantics<parallel>], iteration_bounds = array<i64: 1>, scalar_prefetch = 0 : i64, scratch_operands = 0 : i64, tpu.core_type = #tpu.core_type<tc>, window_params = [{transform_indices = @transform_0, window_bounds = array<i64: 128, 32>}, {pipeline_mode = #tpu.pipeline_mode<synchronous>, transform_indices = @transform_1, window_bounds = array<i64: 32, 128>}, {pipeline_mode = #tpu.pipeline_mode<synchronous>, transform_indices = @transform_2, window_bounds = array<i64: 1, 128>}, {transform_indices = @transform_3, window_bounds = array<i64: 128, 128>}]} {
    %c0 = arith.constant 0 : index
    %c0_0 = arith.constant 0 : index
    %0 = vector.load %arg1[%c0, %c0_0] : memref<128x32xbf16, #tpu.memory_space<vmem>>, vector<128x32xbf16>
    %c0_1 = arith.constant 0 : index
    %c0_2 = arith.constant 0 : index
    %1 = vector.load %arg2[%c0_1, %c0_2] : memref<32x128xbf16, #tpu.memory_space<vmem>>, vector<32x128xbf16>
    %cst = arith.constant dense<0.000000e+00> : vector<128x128xf32>
    %2 = tpu.matmul %0, %1, %cst {dimension_numbers = #tpu.dot_dimension_numbers<[1], [0], [0], [1], [0, 0, 1, 1], [], []>} : vector<128x32xbf16>, vector<32x128xbf16>, vector<128x128xf32> -> vector<128x128xf32>
    %c0_3 = arith.constant 0 : index
    %c0_4 = arith.constant 0 : index
    %3 = vector.load %arg3[%c0_3, %c0_4] : memref<1x128xf32, #tpu.memory_space<vmem>>, vector<1x128xf32>
    %4 = vector.broadcast %3 : vector<1x128xf32> to vector<128x128xf32>
    %5 = arith.addf %2, %4 : vector<128x128xf32>
    %6 = tpu.iota {dimensions = array<i32: 1>} : vector<128x128xi32>
    %cst_5 = arith.constant 0.000000e+00 : f32
    %7 = vector.broadcast %cst_5 : f32 to vector<128x128xf32>
    %8 = arith.subf %7, %5 : vector<128x128xf32>
    %9 = math.exp %8 : vector<128x128xf32>
    %cst_6 = arith.constant 1.000000e+00 : f32
    %10 = vector.broadcast %cst_6 : f32 to vector<128x128xf32>
    %11 = arith.addf %10, %9 : vector<128x128xf32>
    %12 = tpu.reciprocal %11 {approx = true} : vector<128x128xf32> -> vector<128x128xf32>
    %13 = math.exp %5 : vector<128x128xf32>
    %cst_7 = arith.constant 3.000000e-01 : f32
    %14 = vector.broadcast %cst_7 : f32 to vector<128x128xf32>
    %15 = arith.mulf %13, %14 : vector<128x128xf32>
    %c94_i32 = arith.constant 94 : i32
    %16 = vector.broadcast %c94_i32 : i32 to vector<128x128xi32>
    %17 = arith.cmpi slt, %6, %16 : vector<128x128xi32>
    %c96_i32 = arith.constant 96 : i32
    %18 = vector.broadcast %c96_i32 : i32 to vector<128x128xi32>
    %19 = arith.cmpi slt, %6, %18 : vector<128x128xi32>
    %20 = arith.select %19, %15, %5 : vector<128x128xi1>, vector<128x128xf32>
    %21 = arith.select %17, %12, %20 : vector<128x128xi1>, vector<128x128xf32>
    %c0_8 = arith.constant 0 : index
    %c0_9 = arith.constant 0 : index
    %22 = vector.load %arg4[%c0_8, %c0_9] : memref<128x128xf32, #tpu.memory_space<vmem>>, vector<128x128xf32>
    tpu.vector_store %arg4[%c0_8, %c0_9], %21 {strides = array<i32>} : memref<128x128xf32, #tpu.memory_space<vmem>>, vector<128x128xf32>,
    return
  }
  func.func @transform_0(%arg0: i32) -> (i32, i32) {
    %c0_i32 = arith.constant 0 : i32
    %c0_i32_0 = arith.constant 0 : i32
    return %arg0, %c0_i32 : i32, i32
  }
  func.func @transform_1(%arg0: i32) -> (i32, i32) {
    %c0_i32 = arith.constant 0 : i32
    %c0_i32_0 = arith.constant 0 : i32
    %c0_i32_1 = arith.constant 0 : i32
    return %c0_i32, %c0_i32_0 : i32, i32
  }
  func.func @transform_2(%arg0: i32) -> (i32, i32) {
    %c0_i32 = arith.constant 0 : i32
    %c0_i32_0 = arith.constant 0 : i32
    %c0_i32_1 = arith.constant 0 : i32
    return %c0_i32, %c0_i32_0 : i32, i32
  }
  func.func @transform_3(%arg0: i32) -> (i32, i32) {
    %c0_i32 = arith.constant 0 : i32
    %c0_i32_0 = arith.constant 0 : i32
    return %arg0, %c0_i32 : i32, i32
  }
}

</mosaic_0001>

<bundles_post_ra>
// kernel: yolo_forward.10
= control target key start
LH: loop header
LB: loop body
LE: loop exit
PB: predicated region body
PF: predicated region fallthrough
CT: control target
= control target key end

     0   :  { %s453_s12 = smov 0   ;;  %s612_s0 = inlined_call_operand.vmem [shape: f32[512,128], index: 0, kind: input, shape index: {}]   ;;  %s613_s1 = inlined_call_operand.vmem [shape: f32[1,128], index: 1, kind: input, shape index: {}]   ;;  %s614_s2 = inlined_call_operand.vmem [shape: f32[1,128], index: 2, kind: input, shape index: {}]   ;;  %s615_s3 = inlined_call_operand.vmem [shape: f32[512,128], index: 3, kind: output, shape index: {}]  }
   0x1 LB: > { %s404_s13 = sadd.s32 4294967295, %s431_s12   ;;  %p408_p0 = scmp.ge.s32.totalorder %s431_s12, 1  ;;  %s431_s12 = sphi %s453_s12, %s13_s12  }
   0x2   : > { %p138_p1 = scmp.lt.s32.totalorder %s431_s12, 3 }
   0x4   : > { %p139_p2 = pnand %p408_p0, %p138_p1 }
   0x5   : > { %s409_s14 = sshll.u32 (!%p139_p2), %s404_s13, 5  ;;  %v464_v0 = vld [vmem:[%s613_s1] ss:$0 sm:$0xff] (!%p139_p2) }
   0x6   : > { %142 = sbr.rel (%p139_p2) target bundleno = 46 (0x2e), region = 32  ;;  %p163_p3 = scmp.lt.s32.totalorder (!%p139_p2), %s409_s14, 63  ;;  %v474_v1 = vld [vmem:[%s614_s2] ss:$0 sm:$0xff] (!%p139_p2) }
   0xd   : > { %s617_s14 = smov (!%p163_p3, %s409_s14), 63 }
   0xe   : > { %s410_s15 = sshll.u32 %s617_s14, 3 }
   0xf   : > { %s469_s20 = scalar_lea.vmem %s612_s0, %s410_s15  ;;  %s497_s25 = scalar_lea.vmem %s615_s3, %s410_s15 }
  0x10   : > { %v174_v2 = vld [vmem:[%s469_s20] sm:$0xff]  ;;  %v175_v3 = vld [vmem:[%s469_s20 + $0x8] sm:$0xff]  ;;  %v176_v4 = vld [vmem:[%s469_s20 + $0x10] sm:$0xff] }
  0x11   : > { %v213_v5 = vmul.f32 %v464_v0, %v174_v2  ;;  %v214_v6 = vmul.f32 %v464_v0, %v175_v3  ;;  %v215_v7 = vmul.f32 %v464_v0, %v176_v4  ;;  %v177_v8 = vld [vmem:[%s469_s20 + $0x18] sm:$0xff]  ;;  %v178_v9 = vld [vmem:[%s469_s20 + $0x20] sm:$0xff]  ;;  %v179_v10 = vld [vmem:[%s469_s20 + $0x28] sm:$0xff] }
  0x12   : > { %v216_v11 = vmul.f32 %v464_v0, %v177_v8  ;;  %v217_v12 = vmul.f32 %v464_v0, %v178_v9  ;;  %v218_v13 = vmul.f32 %v464_v0, %v179_v10  ;;  %v180_v14 = vld [vmem:[%s469_s20 + $0x30] sm:$0xff]  ;;  %v181_v15 = vld [vmem:[%s469_s20 + $0x38] sm:$0xff]  ;;  %v182_v24 = vld [vmem:[%s469_s20 + $0x40] sm:$0xff] }
  0x13   : > { %v252_v16 = vadd.f32 %v474_v1, %v213_v5  ;;  %v253_v17 = vadd.f32 %v474_v1, %v214_v6  ;;  %v254_v18 = vadd.f32 %v474_v1, %v215_v7  ;;  %v219_v19 = vmul.f32 %v464_v0, %v180_v14  ;;  %v183_v25 = vld [vmem:[%s469_s20 + $0x48] sm:$0xff]  ;;  %v184_v26 = vld [vmem:[%s469_s20 + $0x50] sm:$0xff]  ;;  %v185_v31 = vld [vmem:[%s469_s20 + $0x58] sm:$0xff] }
  0x14   : > { %v255_v20 = vadd.f32 %v474_v1, %v216_v11  ;;  %v256_v21 = vadd.f32 %v474_v1, %v217_v12  ;;  %v257_v22 = vadd.f32 %v474_v1, %v218_v13  ;;  %v220_v23 = vmul.f32 %v464_v0, %v181_v15  ;;  %v186_v32 = vld [vmem:[%s469_s20 + $0x60] sm:$0xff]  ;;  %v187_v33 = vld [vmem:[%s469_s20 + $0x68] sm:$0xff]  ;;  %v188_v38 = vld [vmem:[%s469_s20 + $0x70] sm:$0xff] }
  0x15   : > { %v284_v27 = vmax.f32 %v252_v16, 0.0  ;;  %v285_v28 = vmax.f32 %v253_v17, 0.0  ;;  %v286_v29 = vmax.f32 %v254_v18, 0.0  ;;  %v258_v30 = vadd.f32 %v474_v1, %v219_v19  ;;  %v189_v43 = vld [vmem:[%s469_s20 + $0x78] sm:$0xff]  ;;  %v190_v56 = vld [vmem:[%s469_s20 + $0x80] sm:$0xff]  ;;  %v191_v57 = vld [vmem:[%s469_s20 + $0x88] sm:$0xff] }
  0x16   : > { %v287_v34 = vmax.f32 %v255_v20, 0.0  ;;  %v288_v35 = vmax.f32 %v256_v21, 0.0  ;;  %v289_v36 = vmax.f32 %v257_v22, 0.0  ;;  %v259_v37 = vadd.f32 %v474_v1, %v220_v23  ;;  %v192_v58 = vld [vmem:[%s469_s20 + $0x90] sm:$0xff]  ;;  %v193_v63 = vld [vmem:[%s469_s20 + $0x98] sm:$0xff]  ;;  %v194_v2 = vld [vmem:[%s469_s20 + $0xa0] sm:$0xff] }
  0x17   : > { %316 = vst [vmem:[%s497_s25] sm:$0xff] %v284_v27  ;;  %317 = vst [vmem:[%s497_s25 + $0x8] sm:$0xff] %v285_v28  ;;  %v290_v39 = vmax.f32 %v258_v30, 0.0  ;;  %v221_v40 = vmul.f32 %v464_v0, %v182_v24  ;;  %v222_v41 = vmul.f32 %v464_v0, %v183_v25  ;;  %v223_v42 = vmul.f32 %v464_v0, %v184_v26  ;;  %v195_v3 = vld [vmem:[%s469_s20 + $0xa8] sm:$0xff]  ;;  %v196_v8 = vld [vmem:[%s469_s20 + $0xb0] sm:$0xff] }
  0x18   : > { %318 = vst [vmem:[%s497_s25 + $0x10] sm:$0xff] %v286_v29  ;;  %319 = vst [vmem:[%s497_s25 + $0x18] sm:$0xff] %v287_v34  ;;  %v291_v44 = vmax.f32 %v259_v37, 0.0  ;;  %v224_v45 = vmul.f32 %v464_v0, %v185_v31  ;;  %v225_v46 = vmul.f32 %v464_v0, %v186_v32  ;;  %v226_v47 = vmul.f32 %v464_v0, %v187_v33  ;;  %v197_v13 = vld [vmem:[%s469_s20 + $0xb8] sm:$0xff]  ;;  %v198_v26 = vld [vmem:[%s469_s20 + $0xc0] sm:$0xff] }
  0x19   : > { %320 = vst [vmem:[%s497_s25 + $0x20] sm:$0xff] %v288_v35  ;;  %321 = vst [vmem:[%s497_s25 + $0x28] sm:$0xff] %v289_v36  ;;  %v260_v48 = vadd.f32 %v474_v1, %v221_v40  ;;  %v261_v49 = vadd.f32 %v474_v1, %v222_v41  ;;  %v262_v50 = vadd.f32 %v474_v1, %v223_v42  ;;  %v199_v27 = vld [vmem:[%s469_s20 + $0xc8] sm:$0xff]  ;;  %v200_v28 = vld [vmem:[%s469_s20 + $0xd0] sm:$0xff] }
  0x1a   : > { %322 = vst [vmem:[%s497_s25 + $0x30] sm:$0xff] %v290_v39  ;;  %v227_v51 = vmul.f32 %v464_v0, %v188_v38  ;;  %323 = vst [vmem:[%s497_s25 + $0x38] sm:$0xff] %v291_v44  ;;  %v263_v52 = vadd.f32 %v474_v1, %v224_v45  ;;  %v264_v53 = vadd.f32 %v474_v1, %v225_v46  ;;  %v201_v33 = vld [vmem:[%s469_s20 + $0xd8] sm:$0xff]  ;;  %v202_v34 = vld [vmem:[%s469_s20 + $0xe0] sm:$0xff] }
  0x1b   : > { %v265_v54 = vadd.f32 %v474_v1, %v226_v47  ;;  %v228_v55 = vmul.f32 %v464_v0, %v189_v43  ;;  %v292_v59 = vmax.f32 %v260_v48, 0.0  ;;  %v293_v60 = vmax.f32 %v261_v49, 0.0  ;;  %v203_v35 = vld [vmem:[%s469_s20 + $0xe8] sm:$0xff]  ;;  %v204_v40 = vld [vmem:[%s469_s20 + $0xf0] sm:$0xff]  ;;  %v205_v45 = vld [vmem:[%s469_s20 + $0xf8] sm:$0xff] }
  0x1c   : > { %v294_v61 = vmax.f32 %v262_v50, 0.0  ;;  %v266_v62 = vadd.f32 %v474_v1, %v227_v51  ;;  %v295_v4 = vmax.f32 %v263_v52, 0.0  ;;  %v296_v5 = vmax.f32 %v264_v53, 0.0 }
  0x1d   : > { %v297_v6 = vmax.f32 %v265_v54, 0.0  ;;  %v267_v7 = vadd.f32 %v474_v1, %v228_v55  ;;  %324 = vst [vmem:[%s497_s25 + $0x40] sm:$0xff] %v292_v59  ;;  %325 = vst [vmem:[%s497_s25 + $0x48] sm:$0xff] %v293_v60  ;;  %v229_v10 = vmul.f32 %v464_v0, %v190_v56  ;;  %v230_v11 = vmul.f32 %v464_v0, %v191_v57 }
  0x1e   : > { %326 = vst [vmem:[%s497_s25 + $0x50] sm:$0xff] %v294_v61  ;;  %v298_v9 = vmax.f32 %v266_v62, 0.0  ;;  %v231_v12 = vmul.f32 %v464_v0, %v192_v58  ;;  %327 = vst [vmem:[%s497_s25 + $0x58] sm:$0xff] %v295_v4  ;;  %v232_v15 = vmul.f32 %v464_v0, %v193_v63  ;;  %v233_v16 = vmul.f32 %v464_v0, %v194_v2 }
  0x1f   : > { %328 = vst [vmem:[%s497_s25 + $0x60] sm:$0xff] %v296_v5  ;;  %329 = vst [vmem:[%s497_s25 + $0x68] sm:$0xff] %v297_v6  ;;  %v299_v14 = vmax.f32 %v267_v7, 0.0  ;;  %v234_v17 = vmul.f32 %v464_v0, %v195_v3  ;;  %v268_v18 = vadd.f32 %v474_v1, %v229_v10  ;;  %v269_v19 = vadd.f32 %v474_v1, %v230_v11 }
  0x20   : > { %330 = vst [vmem:[%s497_s25 + $0x70] sm:$0xff] %v298_v9  ;;  %v270_v20 = vadd.f32 %v474_v1, %v231_v12  ;;  %v235_v21 = vmul.f32 %v464_v0, %v196_v8  ;;  %v271_v22 = vadd.f32 %v474_v1, %v232_v15  ;;  %v272_v23 = vadd.f32 %v474_v1, %v233_v16 }
  0x21   : > { %331 = vst [vmem:[%s497_s25 + $0x78] sm:$0xff] %v299_v14  ;;  %v273_v24 = vadd.f32 %v474_v1, %v234_v17  ;;  %v236_v25 = vmul.f32 %v464_v0, %v197_v13  ;;  %v300_v29 = vmax.f32 %v268_v18, 0.0  ;;  %v301_v30 = vmax.f32 %v269_v19, 0.0 }
  0x22   : > { %v302_v31 = vmax.f32 %v270_v20, 0.0  ;;  %v274_v32 = vadd.f32 %v474_v1, %v235_v21  ;;  %v303_v36 = vmax.f32 %v271_v22, 0.0  ;;  %v304_v37 = vmax.f32 %v272_v23, 0.0 }
  0x23   : > { %v305_v38 = vmax.f32 %v273_v24, 0.0  ;;  %v275_v39 = vadd.f32 %v474_v1, %v236_v25  ;;  %332 = vst [vmem:[%s497_s25 + $0x80] sm:$0xff] %v300_v29  ;;  %333 = vst [vmem:[%s497_s25 + $0x88] sm:$0xff] %v301_v30  ;;  %v237_v42 = vmul.f32 %v464_v0, %v198_v26  ;;  %v238_v43 = vmul.f32 %v464_v0, %v199_v27 }
  0x24   : > { %334 = vst [vmem:[%s497_s25 + $0x90] sm:$0xff] %v302_v31  ;;  %v306_v41 = vmax.f32 %v274_v32, 0.0  ;;  %v239_v44 = vmul.f32 %v464_v0, %v200_v28  ;;  %335 = vst [vmem:[%s497_s25 + $0x98] sm:$0xff] %v303_v36  ;;  %v240_v47 = vmul.f32 %v464_v0, %v201_v33  ;;  %v241_v48 = vmul.f32 %v464_v0, %v202_v34 }
  0x25   : > { %336 = vst [vmem:[%s497_s25 + $0xa0] sm:$0xff] %v304_v37  ;;  %337 = vst [vmem:[%s497_s25 + $0xa8] sm:$0xff] %v305_v38  ;;  %v307_v46 = vmax.f32 %v275_v39, 0.0  ;;  %v242_v49 = vmul.f32 %v464_v0, %v203_v35  ;;  %v276_v50 = vadd.f32 %v474_v1, %v237_v42  ;;  %v277_v51 = vadd.f32 %v474_v1, %v238_v43 }
  0x26   : > { %338 = vst [vmem:[%s497_s25 + $0xb0] sm:$0xff] %v306_v41  ;;  %v278_v52 = vadd.f32 %v474_v1, %v239_v44  ;;  %v243_v53 = vmul.f32 %v464_v0, %v204_v40  ;;  %v279_v54 = vadd.f32 %v474_v1, %v240_v47  ;;  %v280_v55 = vadd.f32 %v474_v1, %v241_v48 }
  0x27   : > { %339 = vst [vmem:[%s497_s25 + $0xb8] sm:$0xff] %v307_v46  ;;  %v281_v56 = vadd.f32 %v474_v1, %v242_v49  ;;  %v244_v57 = vmul.f32 %v464_v0, %v205_v45  ;;  %v308_v58 = vmax.f32 %v276_v50, 0.0  ;;  %v309_v59 = vmax.f32 %v277_v51, 0.0 }
  0x28   : > { %v310_v60 = vmax.f32 %v278_v52, 0.0  ;;  %v282_v61 = vadd.f32 %v474_v1, %v243_v53  ;;  %v311_v62 = vmax.f32 %v279_v54, 0.0  ;;  %v312_v63 = vmax.f32 %v280_v55, 0.0 }
  0x29   : > { %v313_v2 = vmax.f32 %v281_v56, 0.0  ;;  %v283_v3 = vadd.f32 %v474_v1, %v244_v57  ;;  %340 = vst [vmem:[%s497_s25 + $0xc0] sm:$0xff] %v308_v58  ;;  %341 = vst [vmem:[%s497_s25 + $0xc8] sm:$0xff] %v309_v59 }
  0x2a   : > { %342 = vst [vmem:[%s497_s25 + $0xd0] sm:$0xff] %v310_v60  ;;  %v314_v4 = vmax.f32 %v282_v61, 0.0  ;;  %343 = vst [vmem:[%s497_s25 + $0xd8] sm:$0xff] %v311_v62 }
  0x2b   : > { %344 = vst [vmem:[%s497_s25 + $0xe0] sm:$0xff] %v312_v63  ;;  %345 = vst [vmem:[%s497_s25 + $0xe8] sm:$0xff] %v313_v2  ;;  %v315_v0 = vmax.f32 %v283_v3, 0.0 }
  0x2c   : > { %346 = vst [vmem:[%s497_s25 + $0xf0] sm:$0xff] %v314_v4 }
  0x2d   : > { %347 = vst [vmem:[%s497_s25 + $0xf8] sm:$0xff] %v315_v0 }
  0x2e PF: > { %s13_s12 = sadd.s32 1, %s431_s12  }
  0x2f   : > { %p10_p4 = scmp.ge.s32.totalorder %s13_s12, 4  }
  0x31   :  { %12 = sbr.rel (!%p10_p4) target bundleno = 1 (0x1), region = 62 }

// kernel: yolo_forward.9
= control target key start
LH: loop header
LB: loop body
LE: loop exit
PB: predicated region body
PF: predicated region fallthrough
CT: control target
= control target key end

     0   :  { %s920_s12 = smov 0   ;;  %s1077_s0 = inlined_call_operand.vmem [shape: bf16[512,27], index: 0, kind: input, shape index: {}]   ;;  %s1078_s1 = inlined_call_operand.vmem [shape: bf16[27,128], index: 1, kind: input, shape index: {}]   ;;  %s1079_s2 = inlined_call_operand.vmem [shape: f32[512,128], index: 2, kind: output, shape index: {0}]   ;;  %s1080_s3 = inlined_call_operand.vmem [shape: f32[16,128], index: 3, kind: output, shape index: {1}]  }
   0x1 LB: > { %s926_s13 = sadd.s32 4294967295, %s897_s12   ;;  %p764_p0 = scmp.ge.s32.totalorder %s897_s12, 1  ;;  %s897_s12 = sphi %s920_s12, %s14_s12  }
   0x2   : > { %p141_p1 = scmp.lt.s32.totalorder %s897_s12, 3 }
   0x4   : > { %p142_p2 = pnand %p764_p0, %p141_p1 }
   0x5   : > { %v873_v0 = vld [vmem:[%s1078_s1] sm:$0xff] (!%p142_p2)   ;;  %vm362_vm0 = vcmask (!%p142_p2), 1044480   ;;  %v874_v1 = vld [vmem:[%s1078_s1 + $0x8] sm:$0x3f] (!%p142_p2)   ;;  %vm363_vm1 = vcmask (!%p142_p2), 1045504   ;;  %s765_s18 = sshll.u32 (!%p142_p2), %s926_s13, 5 }
   0x6   : > { %145 = sbr.rel (%p142_p2) target bundleno = 312 (0x138), region = 28  ;;  %824 = vmatprep.subr.bf16.mxu0 (!%p142_p2), %v873_v0  ;;  %860 = vmatprep.subr.bf16.mxu1 (!%p142_p2), %v873_v0  ;;  %v899_v2 = vmov (!%p142_p2), 65535   ;;  %p170_p3 = scmp.lt.s32.totalorder (!%p142_p2), %s765_s18, 63  ;;  %vm313_vm2 = vcmask (!%p142_p2), 220160   ;;  %vm668_vm3 = vcmask (!%p142_p2), 1040384   ;;  %vm670_vm4 = vcmask (!%p142_p2), 1041408  }
   0x7   : > { %825 = vmatpush3.bf16.msra.mxu0 (!%p142_p2), %v873_v0  ;;  %v364_v3 = vsel (!%p142_p2), %vm362_vm0, 4294967295, %v899_v2  ;;  %862 = vmatpush3.bf16.msra.mxu1 (!%p142_p2), %v873_v0  ;;  %p181_p4 = scmp.lt.s32.totalorder (!%p142_p2), %s926_s13, 1 }
   0x8   : > { %v365_v4 = vsel (!%p142_p2), %vm363_vm1, %v364_v3, 0 }
   0x9   : > { %v367_v5 = vand.u32 (!%p142_p2), %v874_v1, %v365_v4 }
   0xb   : > { %826 = vmatprep.subr.bf16.mxu0 (!%p142_p2), %v367_v5  ;;  %861 = vmatprep.subr.bf16.mxu1 (!%p142_p2), %v367_v5 }
   0xc   : > { %827 = vmatpush3.bf16.msra.mxu0 (!%p142_p2), %v367_v5  ;;  %863 = vmatpush3.bf16.msra.mxu1 (!%p142_p2), %v367_v5 }
   0xd   : > { %s1082_s18 = smov (!%p170_p3, %s765_s18), 63  ;;  %s1084_s13 = smov (!%p181_p4, %s926_s13), 1 }
   0xe   : > { %s766_s19 = sshll.u32 %s1082_s18, 2  ;;  %s768_s23 = sshll.u32 %s1082_s18, 3 }
   0xf   : > { %s943_s22 = scalar_lea.vmem %s1077_s0, %s766_s19  ;;  %s981_s26 = scalar_lea.vmem %s1079_s2, %s768_s23 }
  0x10   : > { %v875_v6 = vld [vmem:[%s943_s22] sm:$0xff]   ;;  %v876_v7 = vld [vmem:[%s943_s22 + $0x8] sm:$0xff]   ;;  %v877_v8 = vld [vmem:[%s943_s22 + $0x10] sm:$0xff]   ;;  %s769_s27 = sshll.u32 %s1084_s13, 3 }
  0x11   : > { %828 = vmatprep.mubr.msk.bf16.mxu0 %vm313_vm2, %v875_v6  ;;  %v878_v9 = vld [vmem:[%s943_s22 + $0x18] sm:$0xff]   ;;  %v879_v10 = vld [vmem:[%s943_s22 + $0x20] sm:$0xff]   ;;  %v884_v12 = vld [vmem:[%s943_s22 + $0x48] sm:$0xff]   ;;  %s184_s30 = scalar_lea.vmem %s1080_s3, %s769_s27 }
  0x12   : > { %829 = vmatmul.mubr.msk.bf16.vlgmr.msra.gmra.mrb[0].mxu0 %vm313_vm2, %v876_v7  ;;  %v883_v11 = vld [vmem:[%s943_s22 + $0x40] sm:$0xff]   ;;  %v885_v13 = vld [vmem:[%s943_s22 + $0x50] sm:$0xff]   ;;  %v880_v14 = vld [vmem:[%s943_s22 + $0x28] sm:$0xff]  }
  0x13   : > { %832 = vmatprep.mubr.msk.bf16.mxu0 %vm313_vm2, %v877_v8  ;;  %844 = vmatprep.mubr.msk.bf16.mxu1 %vm313_vm2, %v883_v11  ;;  %v886_v15 = vld [vmem:[%s943_s22 + $0x58] sm:$0xff]   ;;  %v881_v16 = vld [vmem:[%s943_s22 + $0x30] sm:$0xff]   ;;  %v887_v17 = vld [vmem:[%s943_s22 + $0x60] sm:$0xff]  }
  0x14   : > { %845 = vmatmul.mubr.msk.bf16.vlgmr.msra.gmra.mrb[0].mxu1 %vm313_vm2, %v884_v12  ;;  %v882_v18 = vld [vmem:[%s943_s22 + $0x38] sm:$0xff]   ;;  %v888_v19 = vld [vmem:[%s943_s22 + $0x68] sm:$0xff]   ;;  %v889_v20 = vld [vmem:[%s943_s22 + $0x70] sm:$0xff]  }
  0x15   : > { %848 = vmatprep.mubr.msk.bf16.mxu1 %vm313_vm2, %v885_v13  ;;  %v890_v21 = vld [vmem:[%s943_s22 + $0x78] sm:$0xff]  }
  0x1a   : > { %833 = vmatmul.mubr.msk.bf16.gmra.mrb[4].mxu0 %vm313_vm2, %v878_v9 }
  0x1b   : > { %836 = vmatprep.mubr.msk.bf16.mxu0 %vm313_vm2, %v879_v10 }
  0x1c   : > { %849 = vmatmul.mubr.msk.bf16.gmra.mrb[4].mxu1 %vm313_vm2, %v886_v15 }
  0x1d   : > { %852 = vmatprep.mubr.msk.bf16.mxu1 %vm313_vm2, %v887_v17 }
  0x22   : > { %837 = vmatmul.mubr.msk.bf16.gmra.mrb[8].mxu0 %vm313_vm2, %v880_v14 }
  0x23   : > { %840 = vmatprep.mubr.msk.bf16.mxu0 %vm313_vm2, %v881_v16 }
  0x24   : > { %853 = vmatmul.mubr.msk.bf16.gmra.mrb[8].mxu1 %vm313_vm2, %v888_v19 }
  0x25   : > { %856 = vmatprep.mubr.msk.bf16.mxu1 %vm313_vm2, %v889_v20 }
  0x2a   : > { %841 = vmatmul.mubr.msk.bf16.gmra.mrb[12].mxu0 %vm313_vm2, %v882_v18 }
  0x2c   : > { %857 = vmatmul.mubr.msk.bf16.gmra.mrb[12].mxu1 %vm313_vm2, %v890_v21 }
  0xe5   : > { %v830_v22 = vpop.f32.mrb[0].mxu0 }
  0xe6   : > { %532 = vst [vmem:[%s981_s26 + $0x10] sm:$0xff] %v830_v22  ;;  %v403_v23 = vpop.f32.mrb[1].mxu0  ;;  %v601_v29 = vmul.f32 %v830_v22, %v830_v22 }
  0xe7   : > { %530 = vst [vmem:[%s981_s26] sm:$0xff] %v403_v23  ;;  %v831_v24 = vpop.f32.mrb[2].mxu0  ;;  %v599_v26 = vmul.f32 %v403_v23, %v403_v23  ;;  %v987_v36 = vpop.f32.mrb[0].mxu1 }
  0xe8   : > { %533 = vst [vmem:[%s981_s26 + $0x18] sm:$0xff] %v831_v24  ;;  %v406_v25 = vpop.f32.mrb[3].mxu0  ;;  %v602_v32 = vmul.f32 %v831_v24, %v831_v24  ;;  %548 = vst [vmem:[%s981_s26 + $0x90] sm:$0xff] %v987_v36  ;;  %v992_v38 = vpop.f32.mrb[1].mxu1 }
  0xe9   : > { %531 = vst [vmem:[%s981_s26 + $0x8] sm:$0xff] %v406_v25  ;;  %v562_v27 = vadd.f32 %v406_v25, %v403_v23  ;;  %v600_v28 = vmul.f32 %v406_v25, %v406_v25  ;;  %546 = vst [vmem:[%s981_s26 + $0x80] sm:$0xff] %v992_v38  ;;  %v997_v43 = vpop.f32.mrb[2].mxu1 }
  0xea   : > { %549 = vst [vmem:[%s981_s26 + $0x98] sm:$0xff] %v997_v43  ;;  %v1002_v45 = vpop.f32.mrb[3].mxu1 }
  0xeb   : > { %v563_v30 = vadd.f32 %v830_v22, %v562_v27  ;;  %v631_v31 = vadd.f32 %v600_v28, %v599_v26  ;;  %547 = vst [vmem:[%s981_s26 + $0x88] sm:$0xff] %v1002_v45 }
  0xed   : > { %v632_v33 = vadd.f32 %v631_v31, %v601_v29  ;;  %v834_v34 = vpop.f32.mrb[4].mxu0  ;;  %v564_v35 = vadd.f32 %v831_v24, %v563_v30  ;;  %v615_v31 = vmul.f32 %v992_v38, %v992_v38 }
  0xee   : > { %536 = vst [vmem:[%s981_s26 + $0x30] sm:$0xff] %v834_v34  ;;  %v419_v37 = vpop.f32.mrb[5].mxu0  ;;  %v605_v49 = vmul.f32 %v834_v34, %v834_v34 }
  0xef   : > { %534 = vst [vmem:[%s981_s26 + $0x20] sm:$0xff] %v419_v37  ;;  %v565_v39 = vadd.f32 %v564_v35, %v419_v37  ;;  %v603_v40 = vmul.f32 %v419_v37, %v419_v37  ;;  %v633_v41 = vadd.f32 %v632_v33, %v602_v32  ;;  %v835_v42 = vpop.f32.mrb[6].mxu0  ;;  %v1007_v56 = vpop.f32.mrb[4].mxu1 }
  0xf0   : > { %537 = vst [vmem:[%s981_s26 + $0x38] sm:$0xff] %v835_v42  ;;  %v422_v44 = vpop.f32.mrb[7].mxu0  ;;  %v606_v52 = vmul.f32 %v835_v42, %v835_v42  ;;  %552 = vst [vmem:[%s981_s26 + $0xb0] sm:$0xff] %v1007_v56  ;;  %v1012_v58 = vpop.f32.mrb[5].mxu1 }
  0xf1   : > { %v634_v46 = vadd.f32 %v633_v41, %v603_v40  ;;  %535 = vst [vmem:[%s981_s26 + $0x28] sm:$0xff] %v422_v44  ;;  %v566_v47 = vadd.f32 %v565_v39, %v422_v44  ;;  %v604_v48 = vmul.f32 %v422_v44, %v422_v44  ;;  %550 = vst [vmem:[%s981_s26 + $0xa0] sm:$0xff] %v1012_v58  ;;  %v1017_v63 = vpop.f32.mrb[6].mxu1 }
  0xf2   : > { %553 = vst [vmem:[%s981_s26 + $0xb8] sm:$0xff] %v1017_v63  ;;  %v1022_v1 = vpop.f32.mrb[7].mxu1  ;;  %v617_v44 = vmul.f32 %v987_v36, %v987_v36 }
  0xf3   : > { %v567_v50 = vadd.f32 %v834_v34, %v566_v47  ;;  %v635_v51 = vadd.f32 %v634_v46, %v604_v48  ;;  %551 = vst [vmem:[%s981_s26 + $0xa8] sm:$0xff] %v1022_v1 }
  0xf5   : > { %v636_v53 = vadd.f32 %v635_v51, %v605_v49  ;;  %v838_v54 = vpop.f32.mrb[8].mxu0  ;;  %v568_v55 = vadd.f32 %v835_v42, %v567_v50  ;;  %v616_v42 = vmul.f32 %v1002_v45, %v1002_v45  ;;  %v619_v50 = vmul.f32 %v1012_v58, %v1012_v58 }
  0xf6   : > { %540 = vst [vmem:[%s981_s26 + $0x50] sm:$0xff] %v838_v54  ;;  %v435_v57 = vpop.f32.mrb[9].mxu0  ;;  %v609_v5 = vmul.f32 %v838_v54, %v838_v54 }
  0xf7   : > { %538 = vst [vmem:[%s981_s26 + $0x40] sm:$0xff] %v435_v57  ;;  %v569_v59 = vadd.f32 %v568_v55, %v435_v57  ;;  %v607_v60 = vmul.f32 %v435_v57, %v435_v57  ;;  %v637_v61 = vadd.f32 %v636_v53, %v606_v52  ;;  %v839_v62 = vpop.f32.mrb[10].mxu0  ;;  %v1027_v12 = vpop.f32.mrb[8].mxu1 }
  0xf8   : > { %541 = vst [vmem:[%s981_s26 + $0x58] sm:$0xff] %v839_v62  ;;  %v438_v0 = vpop.f32.mrb[11].mxu0  ;;  %v610_v8 = vmul.f32 %v839_v62, %v839_v62  ;;  %556 = vst [vmem:[%s981_s26 + $0xd0] sm:$0xff] %v1027_v12  ;;  %v499_v14 = vpop.f32.mrb[9].mxu1 }
  0xf9   : > { %v638_v2 = vadd.f32 %v637_v61, %v607_v60  ;;  %539 = vst [vmem:[%s981_s26 + $0x48] sm:$0xff] %v438_v0  ;;  %v570_v3 = vadd.f32 %v569_v59, %v438_v0  ;;  %v608_v4 = vmul.f32 %v438_v0, %v438_v0  ;;  %554 = vst [vmem:[%s981_s26 + $0xc0] sm:$0xff] %v499_v14  ;;  %v855_v19 = vpop.f32.mrb[10].mxu1 }
  0xfa   : > { %557 = vst [vmem:[%s981_s26 + $0xd8] sm:$0xff] %v855_v19  ;;  %v502_v21 = vpop.f32.mrb[11].mxu1 }
  0xfb   : > { %v571_v6 = vadd.f32 %v838_v54, %v570_v3  ;;  %v639_v7 = vadd.f32 %v638_v2, %v608_v4  ;;  %555 = vst [vmem:[%s981_s26 + $0xc8] sm:$0xff] %v502_v21  ;;  %v620_v54 = vmul.f32 %v1022_v1, %v1022_v1  ;;  %v624_v3 = vmul.f32 %v502_v21, %v502_v21 }
  0xfd   : > { %v640_v9 = vadd.f32 %v639_v7, %v609_v5  ;;  %v842_v10 = vpop.f32.mrb[12].mxu0  ;;  %v572_v11 = vadd.f32 %v839_v62, %v571_v6 }
  0xfe   : > { %544 = vst [vmem:[%s981_s26 + $0x70] sm:$0xff] %v842_v10  ;;  %v451_v13 = vpop.f32.mrb[13].mxu0  ;;  %v613_v25 = vmul.f32 %v842_v10, %v842_v10 }
  0xff   : > { %542 = vst [vmem:[%s981_s26 + $0x60] sm:$0xff] %v451_v13  ;;  %v573_v15 = vadd.f32 %v572_v11, %v451_v13  ;;  %v611_v16 = vmul.f32 %v451_v13, %v451_v13  ;;  %v641_v17 = vadd.f32 %v640_v9, %v610_v8  ;;  %v843_v18 = vpop.f32.mrb[14].mxu0  ;;  %v858_v32 = vpop.f32.mrb[12].mxu1 }
 0x100   : > { %545 = vst [vmem:[%s981_s26 + $0x78] sm:$0xff] %v843_v18  ;;  %v454_v20 = vpop.f32.mrb[15].mxu0  ;;  %v614_v28 = vmul.f32 %v843_v18, %v843_v18  ;;  %560 = vst [vmem:[%s981_s26 + $0xf0] sm:$0xff] %v858_v32  ;;  %v515_v33 = vpop.f32.mrb[13].mxu1 }
 0x101   : > { %v642_v22 = vadd.f32 %v641_v17, %v611_v16  ;;  %543 = vst [vmem:[%s981_s26 + $0x68] sm:$0xff] %v454_v20  ;;  %v574_v23 = vadd.f32 %v573_v15, %v454_v20  ;;  %v612_v24 = vmul.f32 %v454_v20, %v454_v20  ;;  %558 = vst [vmem:[%s981_s26 + $0xe0] sm:$0xff] %v515_v33  ;;  %v859_v37 = vpop.f32.mrb[14].mxu1 }
 0x102   : > { %561 = vst [vmem:[%s981_s26 + $0xf8] sm:$0xff] %v859_v37  ;;  %v518_v39 = vpop.f32.mrb[15].mxu1  ;;  %v627_v8 = vmul.f32 %v515_v33, %v515_v33  ;;  %v630_v17 = vmul.f32 %v859_v37, %v859_v37 }
 0x103   : > { %v575_v26 = vadd.f32 %v842_v10, %v574_v23  ;;  %v643_v27 = vadd.f32 %v642_v22, %v612_v24  ;;  %559 = vst [vmem:[%s981_s26 + $0xe8] sm:$0xff] %v518_v39  ;;  %v628_v13 = vmul.f32 %v518_v39, %v518_v39 }
 0x105   : > { %v644_v29 = vadd.f32 %v643_v27, %v613_v25  ;;  %v576_v30 = vadd.f32 %v843_v18, %v575_v26 }
 0x107   : > { %v577_v34 = vadd.f32 %v576_v30, %v992_v38  ;;  %v645_v35 = vadd.f32 %v644_v29, %v614_v28  ;;  %v618_v38 = vmul.f32 %v997_v43, %v997_v43 }
 0x109   : > { %v646_v40 = vadd.f32 %v645_v35, %v615_v31  ;;  %v578_v41 = vadd.f32 %v577_v34, %v1002_v45 }
 0x10b   : > { %v579_v46 = vadd.f32 %v987_v36, %v578_v41  ;;  %v647_v47 = vadd.f32 %v646_v40, %v616_v42  ;;  %v621_v36 = vmul.f32 %v1007_v56, %v1007_v56 }
 0x10d   : > { %v648_v48 = vadd.f32 %v647_v47, %v617_v44  ;;  %v580_v49 = vadd.f32 %v997_v43, %v579_v46  ;;  %v622_v43 = vmul.f32 %v1017_v63, %v1017_v63 }
 0x10f   : > { %v581_v51 = vadd.f32 %v580_v49, %v1012_v58  ;;  %v649_v52 = vadd.f32 %v648_v48, %v618_v38  ;;  %v623_v58 = vmul.f32 %v499_v14, %v499_v14 }
 0x111   : > { %v650_v45 = vadd.f32 %v649_v52, %v619_v50  ;;  %v582_v53 = vadd.f32 %v581_v51, %v1022_v1  ;;  %v625_v1 = vmul.f32 %v1027_v12, %v1027_v12 }
 0x113   : > { %v583_v55 = vadd.f32 %v1007_v56, %v582_v53  ;;  %v651_v57 = vadd.f32 %v650_v45, %v620_v54  ;;  %v626_v56 = vmul.f32 %v855_v19, %v855_v19 }
 0x115   : > { %v652_v59 = vadd.f32 %v651_v57, %v621_v36  ;;  %v584_v60 = vadd.f32 %v1017_v63, %v583_v55 }
 0x117   : > { %v585_v61 = vadd.f32 %v584_v60, %v499_v14  ;;  %v653_v62 = vadd.f32 %v652_v59, %v622_v43  ;;  %v629_v14 = vmul.f32 %v858_v32, %v858_v32 }
 0x119   : > { %v654_v0 = vadd.f32 %v653_v62, %v623_v58  ;;  %v586_v2 = vadd.f32 %v585_v61, %v502_v21 }
 0x11b   : > { %v587_v4 = vadd.f32 %v1027_v12, %v586_v2  ;;  %v655_v5 = vadd.f32 %v654_v0, %v624_v3 }
 0x11d   : > { %v656_v6 = vadd.f32 %v655_v5, %v625_v1  ;;  %v588_v7 = vadd.f32 %v855_v19, %v587_v4 }
 0x11f   : > { %v589_v9 = vadd.f32 %v588_v7, %v515_v33  ;;  %v657_v10 = vadd.f32 %v656_v6, %v626_v56 }
 0x121   : > { %v658_v63 = vadd.f32 %v657_v10, %v627_v8  ;;  %v590_v11 = vadd.f32 %v589_v9, %v518_v39 }
 0x123   : > { %v591_v15 = vadd.f32 %v858_v32, %v590_v11  ;;  %v659_v16 = vadd.f32 %v658_v63, %v628_v13 }
 0x125   : > { %v592_v18 = vadd.f32 %v859_v37, %v591_v15  ;;  %v660_v20 = vadd.f32 %v659_v16, %v629_v14 }
 0x127   : > { %v593_v21 = vrot.slane %v592_v18, 4  ;;  %v661_v12 = vadd.f32 %v660_v20, %v630_v17 }
 0x129   : > { %v594_v22 = vadd.f32 %v593_v21, %v592_v18  ;;  %v662_v23 = vrot.slane %v661_v12, 4 }
 0x12b   : > { %v595_v24 = vrot.slane %v594_v22, 2  ;;  %v663_v19 = vadd.f32 %v662_v23, %v661_v12 }
 0x12d   : > { %v596_v25 = vadd.f32 %v595_v24, %v594_v22  ;;  %v664_v26 = vrot.slane %v663_v19, 2 }
 0x12f   : > { %v597_v27 = vrot.slane %v596_v25, 1  ;;  %v665_v28 = vadd.f32 %v664_v26, %v663_v19 }
 0x131   : > { %v666_v29 = vrot.slane %v665_v28, 1  ;;  %v598_v30 = vadd.f32 %v597_v27, %v596_v25 }
 0x133   : > { %v667_v31 = vadd.f32 %v666_v29, %v665_v28 }
 0x135   : > { %v669_v32 = vsel %vm668_vm3, %v598_v30, %v667_v31 }
 0x136   : > { %v671_v33 = vsel %vm670_vm4, %v669_v32, 0.0 }
 0x137   : > { %672 = vst [vmem:[%s184_s30] sm:$0xff] %v671_v33 }
 0x138 PF: > { %s14_s12 = sadd.s32 1, %s897_s12  }
 0x139   : > { %p11_p5 = scmp.ge.s32.totalorder %s14_s12, 4  }
 0x13b   :  { %13 = sbr.rel (!%p11_p5) target bundleno = 1 (0x1), region = 70 }

// kernel: yolo_forward.12
= control target key start
LH: loop header
LB: loop body
LE: loop exit
PB: predicated region body
PF: predicated region fallthrough
CT: control target
= control target key end

     0   :  { %s585_s15 = smov 0   ;;  %s786_s0 = inlined_call_operand.vmem [shape: f32[512,128], index: 0, kind: input, shape index: {}]   ;;  %s787_s1 = inlined_call_operand.vmem [shape: f32[1,128], index: 1, kind: input, shape index: {}]   ;;  %s788_s2 = inlined_call_operand.vmem [shape: f32[1,128], index: 2, kind: input, shape index: {}]   ;;  %s789_s3 = inlined_call_operand.vmem [shape: f32[512,128], index: 3, kind: input, shape index: {}]   ;;  %s790_s4 = inlined_call_operand.vmem [shape: f32[512,128], index: 4, kind: output, shape index: {}]  }
   0x1 LB: > { %s529_s16 = sadd.s32 4294967295, %s558_s15   ;;  %p533_p0 = scmp.ge.s32.totalorder %s558_s15, 1  ;;  %s558_s15 = sphi %s585_s15, %s14_s15  }
   0x2   : > { %p174_p1 = scmp.lt.s32.totalorder %s558_s15, 3 }
   0x4   : > { %p175_p2 = pnand %p533_p0, %p174_p1 }
   0x5   : > { %s534_s17 = sshll.u32 (!%p175_p2), %s529_s16, 5  ;;  %v598_v0 = vld [vmem:[%s787_s1] ss:$0 sm:$0xff] (!%p175_p2) }
   0x6   : > { %178 = sbr.rel (%p175_p2) target bundleno = 54 (0x36), region = 36  ;;  %p206_p3 = scmp.lt.s32.totalorder (!%p175_p2), %s534_s17, 63  ;;  %v616_v2 = vld [vmem:[%s788_s2] ss:$0 sm:$0xff] (!%p175_p2) }
   0xd   : > { %s792_s17 = smov (!%p206_p3, %s534_s17), 63 }
   0xe   : > { %s593_s18 = sshll.u32 %s792_s17, 3 }
   0xf   : > { %s604_s23 = scalar_lea.vmem %s786_s0, %s593_s18  ;;  %s610_s26 = scalar_lea.vmem %s789_s3, %s593_s18 }
  0x10   : > { %v223_v1 = vld [vmem:[%s604_s23] sm:$0xff]  ;;  %v224_v3 = vld [vmem:[%s604_s23 + $0x8] sm:$0xff]  ;;  %v225_v6 = vld [vmem:[%s604_s23 + $0x10] sm:$0xff]  ;;  %s644_s5 = scalar_lea.vmem %s790_s4, %s593_s18 }
  0x11   : > { %v262_v4 = vmul.f32 %v598_v0, %v223_v1  ;;  %v263_v5 = vmul.f32 %v598_v0, %v224_v3  ;;  %v264_v7 = vmul.f32 %v598_v0, %v225_v6  ;;  %v226_v8 = vld [vmem:[%s604_s23 + $0x18] sm:$0xff]  ;;  %v227_v9 = vld [vmem:[%s604_s23 + $0x20] sm:$0xff]  ;;  %v228_v15 = vld [vmem:[%s604_s23 + $0x28] sm:$0xff] }
  0x12   : > { %v365_v11 = vld [vmem:[%s610_s26] sm:$0xff]  ;;  %v265_v13 = vmul.f32 %v598_v0, %v226_v8  ;;  %v266_v14 = vmul.f32 %v598_v0, %v227_v9  ;;  %v366_v16 = vld [vmem:[%s610_s26 + $0x8] sm:$0xff]  ;;  %v267_v18 = vmul.f32 %v598_v0, %v228_v15  ;;  %v229_v19 = vld [vmem:[%s604_s23 + $0x30] sm:$0xff] }
  0x13   : > { %v301_v10 = vadd.f32 %v616_v2, %v262_v4  ;;  %v302_v12 = vadd.f32 %v616_v2, %v263_v5  ;;  %v303_v17 = vadd.f32 %v616_v2, %v264_v7  ;;  %v230_v20 = vld [vmem:[%s604_s23 + $0x38] sm:$0xff]  ;;  %v367_v23 = vld [vmem:[%s610_s26 + $0x10] sm:$0xff]  ;;  %v369_v28 = vld [vmem:[%s610_s26 + $0x20] sm:$0xff]  ;;  %v268_v30 = vmul.f32 %v598_v0, %v229_v19 }
  0x14   : > { %v304_v24 = vadd.f32 %v616_v2, %v265_v13  ;;  %v368_v25 = vld [vmem:[%s610_s26 + $0x18] sm:$0xff]  ;;  %v305_v26 = vadd.f32 %v616_v2, %v266_v14  ;;  %v306_v29 = vadd.f32 %v616_v2, %v267_v18  ;;  %v269_v31 = vmul.f32 %v598_v0, %v230_v20  ;;  %v231_v32 = vld [vmem:[%s604_s23 + $0x40] sm:$0xff]  ;;  %v232_v33 = vld [vmem:[%s604_s23 + $0x48] sm:$0xff] }
  0x15   : > { %v333_v21 = vmax.f32 %v301_v10, 0.0  ;;  %v334_v22 = vmax.f32 %v302_v12, 0.0  ;;  %v335_v27 = vmax.f32 %v303_v17, 0.0  ;;  %v370_v38 = vld [vmem:[%s610_s26 + $0x28] sm:$0xff]  ;;  %v233_v39 = vld [vmem:[%s604_s23 + $0x50] sm:$0xff]  ;;  %v307_v42 = vadd.f32 %v616_v2, %v268_v30  ;;  %v234_v44 = vld [vmem:[%s604_s23 + $0x58] sm:$0xff] }
  0x16   : > { %v336_v36 = vmax.f32 %v304_v24, 0.0  ;;  %v337_v37 = vmax.f32 %v305_v26, 0.0  ;;  %v338_v41 = vmax.f32 %v306_v29, 0.0  ;;  %v308_v43 = vadd.f32 %v616_v2, %v269_v31  ;;  %v235_v45 = vld [vmem:[%s604_s23 + $0x60] sm:$0xff]  ;;  %v371_v48 = vld [vmem:[%s610_s26 + $0x30] sm:$0xff]  ;;  %v372_v49 = vld [vmem:[%s610_s26 + $0x38] sm:$0xff] }
  0x17   : > { %v397_v34 = vadd.f32 %v365_v11, %v333_v21  ;;  %v398_v35 = vadd.f32 %v366_v16, %v334_v22  ;;  %v399_v40 = vadd.f32 %v367_v23, %v335_v27  ;;  %v270_v50 = vmul.f32 %v598_v0, %v231_v32  ;;  %v236_v52 = vld [vmem:[%s604_s23 + $0x68] sm:$0xff]  ;;  %v237_v61 = vld [vmem:[%s604_s23 + $0x70] sm:$0xff]  ;;  %v238_v62 = vld [vmem:[%s604_s23 + $0x78] sm:$0xff] }
  0x18   : > { %v400_v46 = vadd.f32 %v368_v25, %v336_v36  ;;  %v401_v47 = vadd.f32 %v369_v28, %v337_v37  ;;  %v271_v51 = vmul.f32 %v598_v0, %v232_v33  ;;  %v402_v53 = vadd.f32 %v370_v38, %v338_v41  ;;  %v373_v3 = vld [vmem:[%s610_s26 + $0x40] sm:$0xff]  ;;  %v374_v4 = vld [vmem:[%s610_s26 + $0x48] sm:$0xff]  ;;  %v375_v9 = vld [vmem:[%s610_s26 + $0x50] sm:$0xff] }
  0x19   : > { %429 = vst [vmem:[%s644_s5] sm:$0xff] %v397_v34  ;;  %430 = vst [vmem:[%s644_s5 + $0x8] sm:$0xff] %v398_v35  ;;  %v339_v54 = vmax.f32 %v307_v42, 0.0  ;;  %v340_v55 = vmax.f32 %v308_v43, 0.0  ;;  %v272_v56 = vmul.f32 %v598_v0, %v233_v39  ;;  %v309_v57 = vadd.f32 %v616_v2, %v270_v50  ;;  %v376_v11 = vld [vmem:[%s610_s26 + $0x58] sm:$0xff]  ;;  %v377_v14 = vld [vmem:[%s610_s26 + $0x60] sm:$0xff] }
  0x1a   : > { %431 = vst [vmem:[%s644_s5 + $0x10] sm:$0xff] %v399_v40  ;;  %432 = vst [vmem:[%s644_s5 + $0x18] sm:$0xff] %v400_v46  ;;  %v310_v58 = vadd.f32 %v616_v2, %v271_v51  ;;  %v273_v59 = vmul.f32 %v598_v0, %v234_v44  ;;  %v274_v60 = vmul.f32 %v598_v0, %v235_v45  ;;  %v239_v18 = vld [vmem:[%s604_s23 + $0x80] sm:$0xff]  ;;  %v240_v19 = vld [vmem:[%s604_s23 + $0x88] sm:$0xff] }
  0x1b   : > { %433 = vst [vmem:[%s644_s5 + $0x20] sm:$0xff] %v401_v47  ;;  %434 = vst [vmem:[%s644_s5 + $0x28] sm:$0xff] %v402_v53  ;;  %v403_v63 = vadd.f32 %v371_v48, %v339_v54  ;;  %v404_v1 = vadd.f32 %v372_v49, %v340_v55  ;;  %v311_v5 = vadd.f32 %v616_v2, %v272_v56  ;;  %v341_v7 = vmax.f32 %v309_v57, 0.0  ;;  %v378_v24 = vld [vmem:[%s610_s26 + $0x68] sm:$0xff]  ;;  %v241_v25 = vld [vmem:[%s604_s23 + $0x90] sm:$0xff] }
  0x1c   : > { %v275_v6 = vmul.f32 %v598_v0, %v236_v52  ;;  %v342_v8 = vmax.f32 %v310_v58, 0.0  ;;  %v312_v10 = vadd.f32 %v616_v2, %v273_v59  ;;  %v313_v12 = vadd.f32 %v616_v2, %v274_v60  ;;  %v242_v30 = vld [vmem:[%s604_s23 + $0x98] sm:$0xff]  ;;  %v243_v31 = vld [vmem:[%s604_s23 + $0xa0] sm:$0xff]  ;;  %v379_v34 = vld [vmem:[%s610_s26 + $0x70] sm:$0xff] }
  0x1d   : > { %435 = vst [vmem:[%s644_s5 + $0x30] sm:$0xff] %v403_v63  ;;  %436 = vst [vmem:[%s644_s5 + $0x38] sm:$0xff] %v404_v1  ;;  %v343_v13 = vmax.f32 %v311_v5, 0.0  ;;  %v276_v16 = vmul.f32 %v598_v0, %v237_v61  ;;  %v277_v17 = vmul.f32 %v598_v0, %v238_v62  ;;  %v405_v20 = vadd.f32 %v373_v3, %v341_v7  ;;  %v380_v35 = vld [vmem:[%s610_s26 + $0x78] sm:$0xff]  ;;  %v244_v38 = vld [vmem:[%s604_s23 + $0xa8] sm:$0xff] }
  0x1e   : > { %v314_v15 = vadd.f32 %v616_v2, %v275_v6  ;;  %v406_v21 = vadd.f32 %v374_v4, %v342_v8  ;;  %v344_v22 = vmax.f32 %v312_v10, 0.0  ;;  %v345_v23 = vmax.f32 %v313_v12, 0.0  ;;  %v245_v47 = vld [vmem:[%s604_s23 + $0xb0] sm:$0xff]  ;;  %v246_v48 = vld [vmem:[%s604_s23 + $0xb8] sm:$0xff]  ;;  %v381_v51 = vld [vmem:[%s610_s26 + $0x80] sm:$0xff] }
  0x1f   : > { %v407_v26 = vadd.f32 %v375_v9, %v343_v13  ;;  %v315_v28 = vadd.f32 %v616_v2, %v276_v16  ;;  %v316_v29 = vadd.f32 %v616_v2, %v277_v17  ;;  %437 = vst [vmem:[%s644_s5 + $0x40] sm:$0xff] %v405_v20  ;;  %v278_v36 = vmul.f32 %v598_v0, %v239_v18  ;;  %v382_v52 = vld [vmem:[%s610_s26 + $0x88] sm:$0xff]  ;;  %v383_v57 = vld [vmem:[%s610_s26 + $0x90] sm:$0xff]  ;;  %v384_v59 = vld [vmem:[%s610_s26 + $0x98] sm:$0xff] }
  0x20   : > { %v346_v27 = vmax.f32 %v314_v15, 0.0  ;;  %438 = vst [vmem:[%s644_s5 + $0x48] sm:$0xff] %v406_v21  ;;  %v408_v32 = vadd.f32 %v376_v11, %v344_v22  ;;  %v409_v33 = vadd.f32 %v377_v14, %v345_v23  ;;  %v279_v37 = vmul.f32 %v598_v0, %v240_v19  ;;  %v385_v62 = vld [vmem:[%s610_s26 + $0xa0] sm:$0xff]  ;;  %v248_v5 = vld [vmem:[%s604_s23 + $0xc8] sm:$0xff]  ;;  %v249_v11 = vld [vmem:[%s604_s23 + $0xd0] sm:$0xff] }
  0x21   : > { %439 = vst [vmem:[%s644_s5 + $0x50] sm:$0xff] %v407_v26  ;;  %v347_v40 = vmax.f32 %v315_v28, 0.0  ;;  %v348_v41 = vmax.f32 %v316_v29, 0.0  ;;  %v280_v42 = vmul.f32 %v598_v0, %v241_v25  ;;  %v317_v43 = vadd.f32 %v616_v2, %v278_v36  ;;  %v247_v4 = vld [vmem:[%s604_s23 + $0xc0] sm:$0xff]  ;;  %v386_v10 = vld [vmem:[%s610_s26 + $0xa8] sm:$0xff]  ;;  %v250_v16 = vld [vmem:[%s604_s23 + $0xd8] sm:$0xff] }
  0x22   : > { %v410_v39 = vadd.f32 %v378_v24, %v346_v27  ;;  %440 = vst [vmem:[%s644_s5 + $0x58] sm:$0xff] %v408_v32  ;;  %441 = vst [vmem:[%s644_s5 + $0x60] sm:$0xff] %v409_v33  ;;  %v318_v44 = vadd.f32 %v616_v2, %v279_v37  ;;  %v281_v45 = vmul.f32 %v598_v0, %v242_v30  ;;  %v251_v17 = vld [vmem:[%s604_s23 + $0xe0] sm:$0xff]  ;;  %v387_v20 = vld [vmem:[%s610_s26 + $0xb0] sm:$0xff] }
  0x23   : > { %v282_v46 = vmul.f32 %v598_v0, %v243_v31  ;;  %v411_v49 = vadd.f32 %v379_v34, %v347_v40  ;;  %v412_v50 = vadd.f32 %v380_v35, %v348_v41  ;;  %v319_v53 = vadd.f32 %v616_v2, %v280_v42  ;;  %v388_v21 = vld [vmem:[%s610_s26 + $0xb8] sm:$0xff]  ;;  %v252_v24 = vld [vmem:[%s604_s23 + $0xe8] sm:$0xff]  ;;  %v253_v33 = vld [vmem:[%s604_s23 + $0xf0] sm:$0xff] }
  0x24   : > { %442 = vst [vmem:[%s644_s5 + $0x68] sm:$0xff] %v410_v39  ;;  %v283_v54 = vmul.f32 %v598_v0, %v244_v38  ;;  %v349_v55 = vmax.f32 %v317_v43, 0.0  ;;  %v350_v56 = vmax.f32 %v318_v44, 0.0  ;;  %v320_v58 = vadd.f32 %v616_v2, %v281_v45  ;;  %v254_v34 = vld [vmem:[%s604_s23 + $0xf8] sm:$0xff]  ;;  %v389_v37 = vld [vmem:[%s610_s26 + $0xc0] sm:$0xff]  ;;  %v390_v38 = vld [vmem:[%s610_s26 + $0xc8] sm:$0xff] }
  0x25   : > { %v321_v60 = vadd.f32 %v616_v2, %v282_v46  ;;  %443 = vst [vmem:[%s644_s5 + $0x70] sm:$0xff] %v411_v49  ;;  %444 = vst [vmem:[%s644_s5 + $0x78] sm:$0xff] %v412_v50  ;;  %v351_v61 = vmax.f32 %v319_v53, 0.0  ;;  %v284_v1 = vmul.f32 %v598_v0, %v245_v47  ;;  %v285_v3 = vmul.f32 %v598_v0, %v246_v48  ;;  %v391_v43 = vld [vmem:[%s610_s26 + $0xd0] sm:$0xff]  ;;  %v392_v47 = vld [vmem:[%s610_s26 + $0xd8] sm:$0xff] }
  0x26   : > { %v322_v63 = vadd.f32 %v616_v2, %v283_v54  ;;  %v413_v6 = vadd.f32 %v381_v51, %v349_v55  ;;  %v414_v7 = vadd.f32 %v382_v52, %v350_v56  ;;  %v352_v8 = vmax.f32 %v320_v58, 0.0  ;;  %v393_v48 = vld [vmem:[%s610_s26 + $0xe0] sm:$0xff]  ;;  %v394_v56 = vld [vmem:[%s610_s26 + $0xe8] sm:$0xff] }
  0x27   : > { %v353_v9 = vmax.f32 %v321_v60, 0.0  ;;  %v415_v12 = vadd.f32 %v383_v57, %v351_v61  ;;  %v323_v14 = vadd.f32 %v616_v2, %v284_v1  ;;  %v324_v15 = vadd.f32 %v616_v2, %v285_v3 }
  0x28   : > { %v354_v13 = vmax.f32 %v322_v63, 0.0  ;;  %445 = vst [vmem:[%s644_s5 + $0x80] sm:$0xff] %v413_v6  ;;  %446 = vst [vmem:[%s644_s5 + $0x88] sm:$0xff] %v414_v7  ;;  %v416_v18 = vadd.f32 %v384_v59, %v352_v8  ;;  %v286_v22 = vmul.f32 %v598_v0, %v247_v4  ;;  %v287_v23 = vmul.f32 %v598_v0, %v248_v5  ;;  %v396_v63 = vld [vmem:[%s610_s26 + $0xf8] sm:$0xff] }
  0x29   : > { %v417_v19 = vadd.f32 %v385_v62, %v353_v9  ;;  %447 = vst [vmem:[%s644_s5 + $0x90] sm:$0xff] %v415_v12  ;;  %v355_v26 = vmax.f32 %v323_v14, 0.0  ;;  %v356_v27 = vmax.f32 %v324_v15, 0.0  ;;  %v288_v28 = vmul.f32 %v598_v0, %v249_v11  ;;  %v395_v62 = vld [vmem:[%s610_s26 + $0xf0] sm:$0xff] }
  0x2a   : > { %v418_v25 = vadd.f32 %v386_v10, %v354_v13  ;;  %448 = vst [vmem:[%s644_s5 + $0x98] sm:$0xff] %v416_v18  ;;  %v325_v29 = vadd.f32 %v616_v2, %v286_v22  ;;  %v326_v30 = vadd.f32 %v616_v2, %v287_v23  ;;  %v289_v31 = vmul.f32 %v598_v0, %v250_v16 }
  0x2b   : > { %449 = vst [vmem:[%s644_s5 + $0xa0] sm:$0xff] %v417_v19  ;;  %v290_v32 = vmul.f32 %v598_v0, %v251_v17  ;;  %v419_v35 = vadd.f32 %v387_v20, %v355_v26  ;;  %v420_v36 = vadd.f32 %v388_v21, %v356_v27  ;;  %v327_v39 = vadd.f32 %v616_v2, %v288_v28 }
  0x2c   : > { %450 = vst [vmem:[%s644_s5 + $0xa8] sm:$0xff] %v418_v25  ;;  %v291_v40 = vmul.f32 %v598_v0, %v252_v24  ;;  %v357_v41 = vmax.f32 %v325_v29, 0.0  ;;  %v358_v42 = vmax.f32 %v326_v30, 0.0  ;;  %v328_v44 = vadd.f32 %v616_v2, %v289_v31 }
  0x2d   : > { %v329_v45 = vadd.f32 %v616_v2, %v290_v32  ;;  %451 = vst [vmem:[%s644_s5 + $0xb0] sm:$0xff] %v419_v35  ;;  %452 = vst [vmem:[%s644_s5 + $0xb8] sm:$0xff] %v420_v36  ;;  %v359_v46 = vmax.f32 %v327_v39, 0.0  ;;  %v292_v50 = vmul.f32 %v598_v0, %v253_v33  ;;  %v293_v51 = vmul.f32 %v598_v0, %v254_v34 }
  0x2e   : > { %v330_v49 = vadd.f32 %v616_v2, %v291_v40  ;;  %v421_v52 = vadd.f32 %v389_v37, %v357_v41  ;;  %v422_v53 = vadd.f32 %v390_v38, %v358_v42  ;;  %v360_v54 = vmax.f32 %v328_v44, 0.0 }
  0x2f   : > { %v361_v55 = vmax.f32 %v329_v45, 0.0  ;;  %v423_v57 = vadd.f32 %v391_v43, %v359_v46  ;;  %v331_v59 = vadd.f32 %v616_v2, %v292_v50  ;;  %v332_v60 = vadd.f32 %v616_v2, %v293_v51 }
  0x30   : > { %v362_v58 = vmax.f32 %v330_v49, 0.0  ;;  %453 = vst [vmem:[%s644_s5 + $0xc0] sm:$0xff] %v421_v52  ;;  %454 = vst [vmem:[%s644_s5 + $0xc8] sm:$0xff] %v422_v53  ;;  %v424_v0 = vadd.f32 %v392_v47, %v360_v54 }
  0x31   : > { %v425_v61 = vadd.f32 %v393_v48, %v361_v55  ;;  %455 = vst [vmem:[%s644_s5 + $0xd0] sm:$0xff] %v423_v57  ;;  %v363_v3 = vmax.f32 %v331_v59, 0.0  ;;  %v364_v4 = vmax.f32 %v332_v60, 0.0 }
  0x32   : > { %v426_v1 = vadd.f32 %v394_v56, %v362_v58  ;;  %456 = vst [vmem:[%s644_s5 + $0xd8] sm:$0xff] %v424_v0 }
  0x33   : > { %457 = vst [vmem:[%s644_s5 + $0xe0] sm:$0xff] %v425_v61  ;;  %v427_v5 = vadd.f32 %v395_v62, %v363_v3  ;;  %v428_v6 = vadd.f32 %v396_v63, %v364_v4 }
  0x34   : > { %458 = vst [vmem:[%s644_s5 + $0xe8] sm:$0xff] %v426_v1 }
  0x35   : > { %459 = vst [vmem:[%s644_s5 + $0xf0] sm:$0xff] %v427_v5  ;;  %460 = vst [vmem:[%s644_s5 + $0xf8] sm:$0xff] %v428_v6 }
  0x36 PF: > { %s14_s15 = sadd.s32 1, %s558_s15  }
  0x37   : > { %p11_p4 = scmp.ge.s32.totalorder %s14_s15, 4  }
  0x39   :  { %13 = sbr.rel (!%p11_p4) target bundleno = 1 (0x1), region = 69 }

// kernel: yolo_forward.11
= control target key start
LH: loop header
LB: loop body
LE: loop exit
PB: predicated region body
PF: predicated region fallthrough
CT: control target
= control target key end

     0   :  { %s1061_s12 = smov 0   ;;  %s1288_s0 = inlined_call_operand.vmem [shape: bf16[512,144], index: 0, kind: input, shape index: {}]   ;;  %s1289_s1 = inlined_call_operand.vmem [shape: bf16[144,128], index: 1, kind: input, shape index: {}]   ;;  %s1290_s2 = inlined_call_operand.vmem [shape: f32[512,128], index: 2, kind: output, shape index: {0}]   ;;  %s1291_s3 = inlined_call_operand.vmem [shape: f32[16,128], index: 3, kind: output, shape index: {1}]  }
   0x1 LB: > { %s1067_s13 = sadd.s32 4294967295, %s1038_s12   ;;  %p881_p0 = scmp.ge.s32.totalorder %s1038_s12, 1  ;;  %s1038_s12 = sphi %s1061_s12, %s14_s12  }
   0x2   : > { %p142_p1 = scmp.lt.s32.totalorder %s1038_s12, 3 }
   0x4   : > { %p143_p2 = pnand %p881_p0, %p142_p1 }
   0x5   : > { %v975_v0 = vld [vmem:[%s1289_s1] sm:$0xff] (!%p143_p2)   ;;  %v1040_v1 = vmov (!%p143_p2), 0   ;;  %s882_s16 = sshll.u32 (!%p143_p2), %s1067_s13, 5  ;;  %v976_v2 = vld [vmem:[%s1289_s1 + $0x8] sm:$0xff] (!%p143_p2)   ;;  %v977_v3 = vld [vmem:[%s1289_s1 + $0x10] sm:$0xff] (!%p143_p2)   ;;  %vm437_vm0 = vcmask (!%p143_p2), 130048  }
   0x6   : > { %146 = sbr.rel (%p143_p2) target bundleno = 363 (0x16b), region = 28  ;;  %486 = vmatprep.subr.bf16.mxu0 (!%p143_p2), %v1040_v1  ;;  %948 = vmatprep.subr.bf16.mxu1 (!%p143_p2), %v1040_v1  ;;  %p172_p3 = scmp.lt.s32.totalorder (!%p143_p2), %s882_s16, 63  ;;  %v978_v4 = vld [vmem:[%s1289_s1 + $0x18] sm:$0xff] (!%p143_p2)   ;;  %v979_v6 = vld [vmem:[%s1289_s1 + $0x20] sm:$0xff] (!%p143_p2)   ;;  %v980_v8 = vld [vmem:[%s1289_s1 + $0x28] sm:$0xff] (!%p143_p2)   ;;  %vm785_vm1 = vcmask (!%p143_p2), 1040384  }
   0x7   : > { %487 = vmatpush1.bf16.msra.mxu0 (!%p143_p2), %v975_v0  ;;  %957 = vmatpush1.bf16.msra.mxu1 (!%p143_p2), %v975_v0  ;;  %v981_v9 = vld [vmem:[%s1289_s1 + $0x30] sm:$0xff] (!%p143_p2)   ;;  %v982_v10 = vld [vmem:[%s1289_s1 + $0x38] sm:$0xff] (!%p143_p2)   ;;  %v983_v11 = vld [vmem:[%s1289_s1 + $0x40] sm:$0xff] (!%p143_p2)   ;;  %p184_p4 = scmp.lt.s32.totalorder (!%p143_p2), %s1067_s13, 1  ;;  %vm787_vm2 = vcmask (!%p143_p2), 1041408  }
   0x8   : > { %488 = vmatprep.subr.bf16.mxu0 (!%p143_p2), %v1040_v1  ;;  %949 = vmatprep.subr.bf16.mxu1 (!%p143_p2), %v1040_v1 }
   0xb   : > { %489 = vmatpush1.bf16.msra.mxu0 (!%p143_p2), %v976_v2  ;;  %958 = vmatpush1.bf16.msra.mxu1 (!%p143_p2), %v976_v2 }
   0xc   : > { %490 = vmatprep.subr.bf16.mxu0 (!%p143_p2), %v1040_v1  ;;  %950 = vmatprep.subr.bf16.mxu1 (!%p143_p2), %v1040_v1 }
   0xd   : > { %s1293_s16 = smov (!%p172_p3, %s882_s16), 63  ;;  %s1295_s13 = smov (!%p184_p4, %s1067_s13), 1 }
   0xe   : > { %s947_s21 = sshll.u32 %s1293_s16, 3  ;;  %s887_s15 = sshll.u32 %s1295_s13, 3 }
   0xf   : > { %s1089_s24 = scalar_lea.vmem %s1288_s0, %s947_s21  ;;  %491 = vmatpush1.bf16.msra.mxu0 %v977_v3  ;;  %959 = vmatpush1.bf16.msra.mxu1 %v977_v3  ;;  %s1162_s14 = scalar_lea.vmem %s1290_s2, %s947_s21 }
  0x10   : > { %v986_v5 = vld [vmem:[%s1089_s24 + $0x4] ss:$8 sps:$4 sm:$0xff]   ;;  %492 = vmatprep.subr.bf16.mxu0 %v1040_v1  ;;  %951 = vmatprep.subr.bf16.mxu1 %v1040_v1  ;;  %v984_v12 = vld [vmem:[%s1089_s24] ss:$8 sps:$4 sm:$0xff]   ;;  %v987_v14 = vld [vmem:[%s1089_s24 + $0x14] ss:$8 sps:$4 sm:$0xff]   ;;  %s187_s18 = scalar_lea.vmem %s1291_s3, %s887_s15 }
  0x11   : > { %929 = vmatprep.mubr.msk.bf16.mxu0 %vm437_vm0, %v986_v5  ;;  %v998_v7 = vld [vmem:[%s1089_s24 + $0x84] ss:$8 sps:$4 sm:$0xff]   ;;  %v996_v13 = vld [vmem:[%s1089_s24 + $0x80] ss:$8 sps:$4 sm:$0xff]   ;;  %v1002_v15 = vld [vmem:[%s1089_s24 + $0x94] ss:$8 sps:$4 sm:$0xff]  }
  0x12   : > { %937 = vmatprep.mubr.msk.bf16.mxu1 %vm437_vm0, %v998_v7  ;;  %v989_v16 = vld [vmem:[%s1089_s24 + $0x10] ss:$8 sps:$4 sm:$0xff]   ;;  %v990_v18 = vld [vmem:[%s1089_s24 + $0x24] ss:$8 sps:$4 sm:$0xff]   ;;  %v992_v20 = vld [vmem:[%s1089_s24 + $0x20] ss:$8 sps:$4 sm:$0xff]  }
  0x13   : > { %493 = vmatpush1.bf16.msra.mxu0 %v978_v4  ;;  %960 = vmatpush1.bf16.msra.mxu1 %v978_v4  ;;  %v1004_v17 = vld [vmem:[%s1089_s24 + $0x90] ss:$8 sps:$4 sm:$0xff]   ;;  %v1008_v19 = vld [vmem:[%s1089_s24 + $0xa4] ss:$8 sps:$4 sm:$0xff]   ;;  %v1010_v21 = vld [vmem:[%s1089_s24 + $0xa0] ss:$8 sps:$4 sm:$0xff]  }
  0x14   : > { %494 = vmatprep.subr.bf16.mxu0 %v1040_v1  ;;  %952 = vmatprep.subr.bf16.mxu1 %v1040_v1  ;;  %v993_v22 = vld [vmem:[%s1089_s24 + $0x34] ss:$8 sps:$4 sm:$0xff]   ;;  %v995_v24 = vld [vmem:[%s1089_s24 + $0x30] ss:$8 sps:$4 sm:$0xff]   ;;  %v999_v26 = vld [vmem:[%s1089_s24 + $0x44] ss:$8 sps:$4 sm:$0xff]  }
  0x15   : > { %v1014_v23 = vld [vmem:[%s1089_s24 + $0xb4] ss:$8 sps:$4 sm:$0xff]   ;;  %v1016_v25 = vld [vmem:[%s1089_s24 + $0xb0] ss:$8 sps:$4 sm:$0xff]   ;;  %v1020_v27 = vld [vmem:[%s1089_s24 + $0xc4] ss:$8 sps:$4 sm:$0xff]  }
  0x16   : > { %v1001_v28 = vld [vmem:[%s1089_s24 + $0x40] ss:$8 sps:$4 sm:$0xff]   ;;  %v1005_v30 = vld [vmem:[%s1089_s24 + $0x54] ss:$8 sps:$4 sm:$0xff]   ;;  %v1007_v32 = vld [vmem:[%s1089_s24 + $0x50] ss:$8 sps:$4 sm:$0xff]  }
  0x17   : > { %495 = vmatpush1.bf16.msra.mxu0 %v979_v6  ;;  %961 = vmatpush1.bf16.msra.mxu1 %v979_v6  ;;  %v1022_v29 = vld [vmem:[%s1089_s24 + $0xc0] ss:$8 sps:$4 sm:$0xff]   ;;  %v1023_v31 = vld [vmem:[%s1089_s24 + $0xd4] ss:$8 sps:$4 sm:$0xff]   ;;  %v1025_v33 = vld [vmem:[%s1089_s24 + $0xd0] ss:$8 sps:$4 sm:$0xff]  }
  0x18   : > { %496 = vmatprep.subr.bf16.mxu0 %v1040_v1  ;;  %953 = vmatprep.subr.bf16.mxu1 %v1040_v1  ;;  %v1011_v34 = vld [vmem:[%s1089_s24 + $0x64] ss:$8 sps:$4 sm:$0xff]   ;;  %v1013_v36 = vld [vmem:[%s1089_s24 + $0x60] ss:$8 sps:$4 sm:$0xff]   ;;  %v1017_v38 = vld [vmem:[%s1089_s24 + $0x74] ss:$8 sps:$4 sm:$0xff]  }
  0x19   : > { %v1026_v35 = vld [vmem:[%s1089_s24 + $0xe4] ss:$8 sps:$4 sm:$0xff]   ;;  %v1028_v37 = vld [vmem:[%s1089_s24 + $0xe0] ss:$8 sps:$4 sm:$0xff]   ;;  %v1029_v39 = vld [vmem:[%s1089_s24 + $0xf4] ss:$8 sps:$4 sm:$0xff]  }
  0x1a   : > { %v1019_v40 = vld [vmem:[%s1089_s24 + $0x70] ss:$8 sps:$4 sm:$0xff]  }
  0x1b   : > { %497 = vmatpush1.bf16.msra.mxu0 %v980_v8  ;;  %962 = vmatpush1.bf16.msra.mxu1 %v980_v8  ;;  %v1031_v41 = vld [vmem:[%s1089_s24 + $0xf0] ss:$8 sps:$4 sm:$0xff]  }
  0x1c   : > { %498 = vmatprep.subr.bf16.mxu0 %v1040_v1  ;;  %954 = vmatprep.subr.bf16.mxu1 %v1040_v1 }
  0x1f   : > { %499 = vmatpush1.bf16.msra.mxu0 %v981_v9  ;;  %963 = vmatpush1.bf16.msra.mxu1 %v981_v9 }
  0x20   : > { %500 = vmatprep.subr.bf16.mxu0 %v1040_v1  ;;  %955 = vmatprep.subr.bf16.mxu1 %v1040_v1 }
  0x23   : > { %501 = vmatpush1.bf16.msra.mxu0 %v982_v10  ;;  %964 = vmatpush1.bf16.msra.mxu1 %v982_v10 }
  0x24   : > { %502 = vmatprep.subr.bf16.mxu0 %v1040_v1  ;;  %956 = vmatprep.subr.bf16.mxu1 %v1040_v1 }
  0x27   : > { %503 = vmatpush1.bf16.msra.mxu0 %v983_v11  ;;  %965 = vmatpush1.bf16.msra.mxu1 %v983_v11 }
  0x2a   : > { %519 = vmatmul.mubr.bf16.vlgmr.msra.gmra.mrb[0].mxu0 %v984_v12  ;;  %583 = vmatmul.mubr.bf16.vlgmr.msra.gmra.mrb[0].mxu1 %v996_v13 }
  0x2b   : > { %930 = vmatprep.mubr.msk.bf16.mxu0 %vm437_vm0, %v987_v14  ;;  %938 = vmatprep.mubr.msk.bf16.mxu1 %vm437_vm0, %v1002_v15 }
  0x32   : > { %527 = vmatmul.mubr.bf16.gmra.mrb[4].mxu0 %v989_v16  ;;  %591 = vmatmul.mubr.bf16.gmra.mrb[4].mxu1 %v1004_v17 }
  0x33   : > { %931 = vmatprep.mubr.msk.bf16.mxu0 %vm437_vm0, %v990_v18  ;;  %939 = vmatprep.mubr.msk.bf16.mxu1 %vm437_vm0, %v1008_v19 }
  0x3a   : > { %535 = vmatmul.mubr.bf16.gmra.mrb[8].mxu0 %v992_v20  ;;  %599 = vmatmul.mubr.bf16.gmra.mrb[8].mxu1 %v1010_v21 }
  0x3b   : > { %932 = vmatprep.mubr.msk.bf16.mxu0 %vm437_vm0, %v993_v22  ;;  %940 = vmatprep.mubr.msk.bf16.mxu1 %vm437_vm0, %v1014_v23 }
  0x42   : > { %543 = vmatmul.mubr.bf16.gmra.mrb[12].mxu0 %v995_v24  ;;  %607 = vmatmul.mubr.bf16.gmra.mrb[12].mxu1 %v1016_v25 }
  0x43   : > { %933 = vmatprep.mubr.msk.bf16.mxu0 %vm437_vm0, %v999_v26  ;;  %941 = vmatprep.mubr.msk.bf16.mxu1 %vm437_vm0, %v1020_v27 }
  0x4a   : > { %551 = vmatmul.mubr.bf16.gmra.mrb[16].mxu0 %v1001_v28  ;;  %615 = vmatmul.mubr.bf16.gmra.mrb[16].mxu1 %v1022_v29 }
  0x4b   : > { %934 = vmatprep.mubr.msk.bf16.mxu0 %vm437_vm0, %v1005_v30  ;;  %942 = vmatprep.mubr.msk.bf16.mxu1 %vm437_vm0, %v1023_v31 }
  0x52   : > { %559 = vmatmul.mubr.bf16.gmra.mrb[20].mxu0 %v1007_v32  ;;  %623 = vmatmul.mubr.bf16.gmra.mrb[20].mxu1 %v1025_v33 }
  0x53   : > { %935 = vmatprep.mubr.msk.bf16.mxu0 %vm437_vm0, %v1011_v34  ;;  %943 = vmatprep.mubr.msk.bf16.mxu1 %vm437_vm0, %v1026_v35 }
  0x5a   : > { %567 = vmatmul.mubr.bf16.gmra.mrb[24].mxu0 %v1013_v36  ;;  %631 = vmatmul.mubr.bf16.gmra.mrb[24].mxu1 %v1028_v37 }
  0x5b   : > { %936 = vmatprep.mubr.msk.bf16.mxu0 %vm437_vm0, %v1017_v38  ;;  %944 = vmatprep.mubr.msk.bf16.mxu1 %vm437_vm0, %v1029_v39 }
  0x62   : > { %575 = vmatmul.mubr.bf16.gmra.mrb[28].mxu0 %v1019_v40  ;;  %639 = vmatmul.mubr.bf16.gmra.mrb[28].mxu1 %v1031_v41 }
  0xfd   : > { %v520_v42 = vpop.f32.mrb[0].mxu0  ;;  %v1164_v43 = vpop.f32.mrb[0].mxu1 }
  0xfe   : > { %647 = vst [vmem:[%s1162_s14] sm:$0xff] %v520_v42  ;;  %v522_v44 = vpop.f32.mrb[1].mxu0  ;;  %663 = vst [vmem:[%s1162_s14 + $0x80] sm:$0xff] %v1164_v43  ;;  %v586_v45 = vpop.f32.mrb[1].mxu1  ;;  %v716_v48 = vmul.f32 %v520_v42, %v520_v42 }
  0xff   : > { %v523_v46 = vpop.f32.mrb[2].mxu0  ;;  %v1169_v47 = vpop.f32.mrb[2].mxu1 }
 0x100   : > { %648 = vst [vmem:[%s1162_s14 + $0x8] sm:$0xff] %v523_v46  ;;  %v679_v49 = vadd.f32 %v523_v46, %v520_v42  ;;  %v717_v50 = vmul.f32 %v523_v46, %v523_v46  ;;  %v525_v51 = vpop.f32.mrb[3].mxu0  ;;  %664 = vst [vmem:[%s1162_s14 + $0x88] sm:$0xff] %v1169_v47  ;;  %v589_v52 = vpop.f32.mrb[3].mxu1 }
 0x102   : > { %v748_v53 = vadd.f32 %v717_v50, %v716_v48 }
 0x105   : > { %v528_v54 = vpop.f32.mrb[4].mxu0  ;;  %v1174_v55 = vpop.f32.mrb[4].mxu1 }
 0x106   : > { %649 = vst [vmem:[%s1162_s14 + $0x10] sm:$0xff] %v528_v54  ;;  %v680_v56 = vadd.f32 %v679_v49, %v528_v54  ;;  %v718_v57 = vmul.f32 %v528_v54, %v528_v54  ;;  %v530_v58 = vpop.f32.mrb[5].mxu0  ;;  %665 = vst [vmem:[%s1162_s14 + $0x90] sm:$0xff] %v1174_v55  ;;  %v594_v59 = vpop.f32.mrb[5].mxu1 }
 0x107   : > { %v531_v60 = vpop.f32.mrb[6].mxu0  ;;  %v1179_v61 = vpop.f32.mrb[6].mxu1 }
 0x108   : > { %v749_v62 = vadd.f32 %v748_v53, %v718_v57  ;;  %650 = vst [vmem:[%s1162_s14 + $0x18] sm:$0xff] %v531_v60  ;;  %v681_v63 = vadd.f32 %v680_v56, %v531_v60  ;;  %v719_v0 = vmul.f32 %v531_v60, %v531_v60  ;;  %v533_v1 = vpop.f32.mrb[7].mxu0  ;;  %666 = vst [vmem:[%s1162_s14 + $0x98] sm:$0xff] %v1179_v61  ;;  %v597_v2 = vpop.f32.mrb[7].mxu1 }
 0x10a   : > { %v750_v3 = vadd.f32 %v749_v62, %v719_v0 }
 0x10d   : > { %v536_v4 = vpop.f32.mrb[8].mxu0  ;;  %v1184_v5 = vpop.f32.mrb[8].mxu1 }
 0x10e   : > { %651 = vst [vmem:[%s1162_s14 + $0x20] sm:$0xff] %v536_v4  ;;  %v682_v6 = vadd.f32 %v681_v63, %v536_v4  ;;  %v720_v7 = vmul.f32 %v536_v4, %v536_v4  ;;  %v538_v8 = vpop.f32.mrb[9].mxu0  ;;  %667 = vst [vmem:[%s1162_s14 + $0xa0] sm:$0xff] %v1184_v5  ;;  %v602_v9 = vpop.f32.mrb[9].mxu1 }
 0x10f   : > { %v539_v10 = vpop.f32.mrb[10].mxu0  ;;  %v1189_v11 = vpop.f32.mrb[10].mxu1 }
 0x110   : > { %v751_v12 = vadd.f32 %v750_v3, %v720_v7  ;;  %652 = vst [vmem:[%s1162_s14 + $0x28] sm:$0xff] %v539_v10  ;;  %v683_v13 = vadd.f32 %v682_v6, %v539_v10  ;;  %v721_v14 = vmul.f32 %v539_v10, %v539_v10  ;;  %v541_v15 = vpop.f32.mrb[11].mxu0  ;;  %668 = vst [vmem:[%s1162_s14 + $0xa8] sm:$0xff] %v1189_v11  ;;  %v605_v16 = vpop.f32.mrb[11].mxu1 }
 0x112   : > { %v752_v17 = vadd.f32 %v751_v12, %v721_v14 }
 0x115   : > { %v544_v18 = vpop.f32.mrb[12].mxu0  ;;  %v1194_v19 = vpop.f32.mrb[12].mxu1 }
 0x116   : > { %653 = vst [vmem:[%s1162_s14 + $0x30] sm:$0xff] %v544_v18  ;;  %v684_v20 = vadd.f32 %v683_v13, %v544_v18  ;;  %v722_v21 = vmul.f32 %v544_v18, %v544_v18  ;;  %v546_v22 = vpop.f32.mrb[13].mxu0  ;;  %669 = vst [vmem:[%s1162_s14 + $0xb0] sm:$0xff] %v1194_v19  ;;  %v610_v23 = vpop.f32.mrb[13].mxu1 }
 0x117   : > { %v547_v24 = vpop.f32.mrb[14].mxu0  ;;  %v1199_v25 = vpop.f32.mrb[14].mxu1 }
 0x118   : > { %v753_v26 = vadd.f32 %v752_v17, %v722_v21  ;;  %654 = vst [vmem:[%s1162_s14 + $0x38] sm:$0xff] %v547_v24  ;;  %v685_v27 = vadd.f32 %v684_v20, %v547_v24  ;;  %v723_v28 = vmul.f32 %v547_v24, %v547_v24  ;;  %v549_v29 = vpop.f32.mrb[15].mxu0  ;;  %670 = vst [vmem:[%s1162_s14 + $0xb8] sm:$0xff] %v1199_v25  ;;  %v613_v30 = vpop.f32.mrb[15].mxu1 }
 0x11a   : > { %v754_v31 = vadd.f32 %v753_v26, %v723_v28 }
 0x11d   : > { %v552_v32 = vpop.f32.mrb[16].mxu0  ;;  %v1204_v33 = vpop.f32.mrb[16].mxu1 }
 0x11e   : > { %655 = vst [vmem:[%s1162_s14 + $0x40] sm:$0xff] %v552_v32  ;;  %v686_v34 = vadd.f32 %v685_v27, %v552_v32  ;;  %v724_v35 = vmul.f32 %v552_v32, %v552_v32  ;;  %v554_v36 = vpop.f32.mrb[17].mxu0  ;;  %671 = vst [vmem:[%s1162_s14 + $0xc0] sm:$0xff] %v1204_v33  ;;  %v618_v37 = vpop.f32.mrb[17].mxu1 }
 0x11f   : > { %v555_v38 = vpop.f32.mrb[18].mxu0  ;;  %v1209_v39 = vpop.f32.mrb[18].mxu1 }
 0x120   : > { %v755_v40 = vadd.f32 %v754_v31, %v724_v35  ;;  %656 = vst [vmem:[%s1162_s14 + $0x48] sm:$0xff] %v555_v38  ;;  %v687_v41 = vadd.f32 %v686_v34, %v555_v38  ;;  %v725_v42 = vmul.f32 %v555_v38, %v555_v38  ;;  %v557_v44 = vpop.f32.mrb[19].mxu0  ;;  %672 = vst [vmem:[%s1162_s14 + $0xc8] sm:$0xff] %v1209_v39  ;;  %v621_v45 = vpop.f32.mrb[19].mxu1 }
 0x121   : > { %v732_v31 = vmul.f32 %v1164_v43, %v1164_v43  ;;  %v733_v35 = vmul.f32 %v1169_v47, %v1169_v47  ;;  %v734_v38 = vmul.f32 %v1174_v55, %v1174_v55 }
 0x122   : > { %v756_v46 = vadd.f32 %v755_v40, %v725_v42  ;;  %v735_v42 = vmul.f32 %v1179_v61, %v1179_v61 }
 0x125   : > { %v560_v48 = vpop.f32.mrb[20].mxu0  ;;  %v1214_v49 = vpop.f32.mrb[20].mxu1 }
 0x126   : > { %657 = vst [vmem:[%s1162_s14 + $0x50] sm:$0xff] %v560_v48  ;;  %v688_v50 = vadd.f32 %v687_v41, %v560_v48  ;;  %v726_v51 = vmul.f32 %v560_v48, %v560_v48  ;;  %v562_v52 = vpop.f32.mrb[21].mxu0  ;;  %673 = vst [vmem:[%s1162_s14 + $0xd0] sm:$0xff] %v1214_v49  ;;  %v626_v53 = vpop.f32.mrb[21].mxu1 }
 0x127   : > { %v563_v54 = vpop.f32.mrb[22].mxu0  ;;  %v1219_v56 = vpop.f32.mrb[22].mxu1 }
 0x128   : > { %v757_v57 = vadd.f32 %v756_v46, %v726_v51  ;;  %658 = vst [vmem:[%s1162_s14 + $0x58] sm:$0xff] %v563_v54  ;;  %v689_v58 = vadd.f32 %v688_v50, %v563_v54  ;;  %v727_v59 = vmul.f32 %v563_v54, %v563_v54  ;;  %v565_v60 = vpop.f32.mrb[23].mxu0  ;;  %674 = vst [vmem:[%s1162_s14 + $0xd8] sm:$0xff] %v1219_v56  ;;  %v629_v62 = vpop.f32.mrb[23].mxu1 }
 0x129   : > { %v741_v62 = vmul.f32 %v1209_v39, %v1209_v39 }
 0x12a   : > { %v758_v63 = vadd.f32 %v757_v57, %v727_v59 }
 0x12d   : > { %v568_v0 = vpop.f32.mrb[24].mxu0  ;;  %v1224_v1 = vpop.f32.mrb[24].mxu1 }
 0x12e   : > { %659 = vst [vmem:[%s1162_s14 + $0x60] sm:$0xff] %v568_v0  ;;  %v690_v2 = vadd.f32 %v689_v58, %v568_v0  ;;  %v728_v3 = vmul.f32 %v568_v0, %v568_v0  ;;  %v570_v4 = vpop.f32.mrb[25].mxu0  ;;  %675 = vst [vmem:[%s1162_s14 + $0xe0] sm:$0xff] %v1224_v1  ;;  %v634_v6 = vpop.f32.mrb[25].mxu1  ;;  %v740_v58 = vmul.f32 %v1204_v33, %v1204_v33 }
 0x12f   : > { %v571_v7 = vpop.f32.mrb[26].mxu0  ;;  %v1229_v8 = vpop.f32.mrb[26].mxu1  ;;  %v742_v0 = vmul.f32 %v1214_v49, %v1214_v49  ;;  %v744_v6 = vmul.f32 %v1224_v1, %v1224_v1 }
 0x130   : > { %v759_v9 = vadd.f32 %v758_v63, %v728_v3  ;;  %660 = vst [vmem:[%s1162_s14 + $0x68] sm:$0xff] %v571_v7  ;;  %v691_v10 = vadd.f32 %v690_v2, %v571_v7  ;;  %v729_v12 = vmul.f32 %v571_v7, %v571_v7  ;;  %v573_v13 = vpop.f32.mrb[27].mxu0  ;;  %676 = vst [vmem:[%s1162_s14 + $0xe8] sm:$0xff] %v1229_v8  ;;  %v637_v14 = vpop.f32.mrb[27].mxu1 }
 0x132   : > { %v760_v15 = vadd.f32 %v759_v9, %v729_v12 }
 0x135   : > { %v576_v16 = vpop.f32.mrb[28].mxu0  ;;  %v640_v17 = vpop.f32.mrb[28].mxu1 }
 0x136   : > { %661 = vst [vmem:[%s1162_s14 + $0x70] sm:$0xff] %v576_v16  ;;  %v692_v18 = vadd.f32 %v691_v10, %v576_v16  ;;  %v730_v20 = vmul.f32 %v576_v16, %v576_v16  ;;  %v578_v21 = vpop.f32.mrb[29].mxu0  ;;  %677 = vst [vmem:[%s1162_s14 + $0xf0] sm:$0xff] %v640_v17  ;;  %v642_v22 = vpop.f32.mrb[29].mxu1  ;;  %v746_v9 = vmul.f32 %v640_v17, %v640_v17 }
 0x137   : > { %v579_v23 = vpop.f32.mrb[30].mxu0  ;;  %v643_v24 = vpop.f32.mrb[30].mxu1 }
 0x138   : > { %v761_v26 = vadd.f32 %v760_v15, %v730_v20  ;;  %662 = vst [vmem:[%s1162_s14 + $0x78] sm:$0xff] %v579_v23  ;;  %v693_v27 = vadd.f32 %v692_v18, %v579_v23  ;;  %v731_v28 = vmul.f32 %v579_v23, %v579_v23  ;;  %v581_v29 = vpop.f32.mrb[31].mxu0  ;;  %678 = vst [vmem:[%s1162_s14 + $0xf8] sm:$0xff] %v643_v24  ;;  %v645_v30 = vpop.f32.mrb[31].mxu1 }
 0x139   : > { %v747_v15 = vmul.f32 %v643_v24, %v643_v24 }
 0x13a   : > { %v694_v32 = vadd.f32 %v693_v27, %v1164_v43  ;;  %v762_v34 = vadd.f32 %v761_v26, %v731_v28  ;;  %v736_v43 = vmul.f32 %v1184_v5, %v1184_v5 }
 0x13c   : > { %v695_v36 = vadd.f32 %v694_v32, %v1169_v47  ;;  %v763_v37 = vadd.f32 %v762_v34, %v732_v31  ;;  %v737_v47 = vmul.f32 %v1189_v11, %v1189_v11 }
 0x13e   : > { %v696_v40 = vadd.f32 %v695_v36, %v1174_v55  ;;  %v764_v41 = vadd.f32 %v763_v37, %v733_v35  ;;  %v738_v55 = vmul.f32 %v1194_v19, %v1194_v19 }
 0x140   : > { %v697_v44 = vadd.f32 %v696_v40, %v1179_v61  ;;  %v765_v45 = vadd.f32 %v764_v41, %v734_v38  ;;  %v739_v61 = vmul.f32 %v1199_v25, %v1199_v25 }
 0x142   : > { %v766_v46 = vadd.f32 %v765_v45, %v735_v42  ;;  %v698_v48 = vadd.f32 %v697_v44, %v1184_v5 }
 0x144   : > { %v699_v50 = vadd.f32 %v698_v48, %v1189_v11  ;;  %v767_v51 = vadd.f32 %v766_v46, %v736_v43 }
 0x146   : > { %v700_v52 = vadd.f32 %v699_v50, %v1194_v19  ;;  %v768_v53 = vadd.f32 %v767_v51, %v737_v47 }
 0x148   : > { %v701_v54 = vadd.f32 %v700_v52, %v1199_v25  ;;  %v769_v57 = vadd.f32 %v768_v53, %v738_v55 }
 0x14a   : > { %v702_v5 = vadd.f32 %v701_v54, %v1204_v33  ;;  %v770_v59 = vadd.f32 %v769_v57, %v739_v61  ;;  %v743_v33 = vmul.f32 %v1219_v56, %v1219_v56 }
 0x14c   : > { %v771_v11 = vadd.f32 %v770_v59, %v740_v58  ;;  %v703_v60 = vadd.f32 %v702_v5, %v1209_v39 }
 0x14e   : > { %v772_v19 = vadd.f32 %v771_v11, %v741_v62  ;;  %v704_v63 = vadd.f32 %v703_v60, %v1214_v49  ;;  %v745_v49 = vmul.f32 %v1229_v8, %v1229_v8 }
 0x150   : > { %v773_v25 = vadd.f32 %v772_v19, %v742_v0  ;;  %v705_v2 = vadd.f32 %v704_v63, %v1219_v56 }
 0x152   : > { %v774_v3 = vadd.f32 %v773_v25, %v743_v33  ;;  %v706_v4 = vadd.f32 %v705_v2, %v1224_v1 }
 0x154   : > { %v775_v39 = vadd.f32 %v774_v3, %v744_v6  ;;  %v707_v7 = vadd.f32 %v706_v4, %v1229_v8 }
 0x156   : > { %v776_v10 = vadd.f32 %v775_v39, %v745_v49  ;;  %v708_v12 = vadd.f32 %v707_v7, %v640_v17 }
 0x158   : > { %v777_v13 = vadd.f32 %v776_v10, %v746_v9  ;;  %v709_v14 = vadd.f32 %v708_v12, %v643_v24 }
 0x15a   : > { %v710_v56 = vrot.slane %v709_v14, 4  ;;  %v778_v16 = vadd.f32 %v777_v13, %v747_v15 }
 0x15c   : > { %v711_v18 = vadd.f32 %v710_v56, %v709_v14  ;;  %v779_v20 = vrot.slane %v778_v16, 4 }
 0x15e   : > { %v712_v21 = vrot.slane %v711_v18, 2  ;;  %v780_v1 = vadd.f32 %v779_v20, %v778_v16 }
 0x160   : > { %v713_v22 = vadd.f32 %v712_v21, %v711_v18  ;;  %v781_v23 = vrot.slane %v780_v1, 2 }
 0x162   : > { %v714_v26 = vrot.slane %v713_v22, 1  ;;  %v782_v27 = vadd.f32 %v781_v23, %v780_v1 }
 0x164   : > { %v783_v8 = vrot.slane %v782_v27, 1  ;;  %v715_v28 = vadd.f32 %v714_v26, %v713_v22 }
 0x166   : > { %v784_v17 = vadd.f32 %v783_v8, %v782_v27 }
 0x168   : > { %v786_v24 = vsel %vm785_vm1, %v715_v28, %v784_v17 }
 0x169   : > { %v788_v29 = vsel %vm787_vm2, %v786_v24, 0.0 }
 0x16a   : > { %789 = vst [vmem:[%s187_s18] sm:$0xff] %v788_v29 }
 0x16b PF: > { %s14_s12 = sadd.s32 1, %s1038_s12  }
 0x16c   : > { %p11_p5 = scmp.ge.s32.totalorder %s14_s12, 4  }
 0x16e   :  { %13 = sbr.rel (!%p11_p5) target bundleno = 1 (0x1), region = 70 }

// kernel: yolo_forward.13
= control target key start
LH: loop header
LB: loop body
LE: loop exit
PB: predicated region body
PF: predicated region fallthrough
CT: control target
= control target key end

     0   :  { %v468_v0 = vmov 0   ;;  %vm174_vm0 = vcmask 130048   ;;  %vm370_vm1 = vcmask 1040384   ;;  %vm372_vm2 = vcmask 1041408   ;;  %s635_s1 = inlined_call_operand.vmem [shape: bf16[144,128], index: 1, kind: input, shape index: {}]   ;;  %s636_s0 = inlined_call_operand.vmem [shape: bf16[128,144], index: 0, kind: input, shape index: {}]   ;;  %s637_s2 = inlined_call_operand.vmem [shape: f32[128,128], index: 2, kind: output, shape index: {0}]   ;;  %s638_s3 = inlined_call_operand.vmem [shape: f32[8,128], index: 3, kind: output, shape index: {1}]  }
   0x1   :  { %199 = vmatprep.subr.bf16.mxu0 %v468_v0  ;;  %v435_v1 = vld [vmem:[%s635_s1] sm:$0xff]   ;;  %416 = vmatprep.subr.bf16.mxu1 %v468_v0  ;;  %v436_v2 = vld [vmem:[%s635_s1 + $0x8] sm:$0xff]   ;;  %v437_v3 = vld [vmem:[%s635_s1 + $0x10] sm:$0xff]  }
   0x2   :  { %200 = vmatpush1.bf16.msra.mxu0 %v435_v1  ;;  %425 = vmatpush1.bf16.msra.mxu1 %v435_v1  ;;  %v438_v4 = vld [vmem:[%s635_s1 + $0x18] sm:$0xff]   ;;  %v446_v5 = vld [vmem:[%s636_s0 + $0x4] ss:$8 sps:$4 sm:$0xff]   ;;  %v441_v9 = vld [vmem:[%s635_s1 + $0x30] sm:$0xff]  }
   0x3   :  { %201 = vmatprep.subr.bf16.mxu0 %v468_v0  ;;  %417 = vmatprep.subr.bf16.mxu1 %v468_v0  ;;  %v452_v6 = vld [vmem:[%s636_s0 + $0x44] ss:$8 sps:$4 sm:$0xff]   ;;  %v442_v10 = vld [vmem:[%s635_s1 + $0x38] sm:$0xff]   ;;  %v444_v12 = vld [vmem:[%s636_s0] ss:$8 sps:$4 sm:$0xff]  }
   0x4   :  { %408 = vmatprep.mubr.msk.bf16.mxu0 %vm174_vm0, %v446_v5  ;;  %v439_v7 = vld [vmem:[%s635_s1 + $0x20] sm:$0xff]   ;;  %412 = vmatprep.mubr.msk.bf16.mxu1 %vm174_vm0, %v452_v6  ;;  %v440_v8 = vld [vmem:[%s635_s1 + $0x28] sm:$0xff]   ;;  %v447_v14 = vld [vmem:[%s636_s0 + $0x14] ss:$8 sps:$4 sm:$0xff]  }
   0x5   :  { %v443_v11 = vld [vmem:[%s635_s1 + $0x40] sm:$0xff]   ;;  %v456_v15 = vld [vmem:[%s636_s0 + $0x54] ss:$8 sps:$4 sm:$0xff]   ;;  %v449_v16 = vld [vmem:[%s636_s0 + $0x10] ss:$8 sps:$4 sm:$0xff]  }
   0x6   :  { %202 = vmatpush1.bf16.msra.mxu0 %v436_v2  ;;  %426 = vmatpush1.bf16.msra.mxu1 %v436_v2  ;;  %v450_v13 = vld [vmem:[%s636_s0 + $0x40] ss:$8 sps:$4 sm:$0xff]   ;;  %v458_v17 = vld [vmem:[%s636_s0 + $0x50] ss:$8 sps:$4 sm:$0xff]   ;;  %v453_v18 = vld [vmem:[%s636_s0 + $0x24] ss:$8 sps:$4 sm:$0xff]  }
   0x7   :  { %203 = vmatprep.subr.bf16.mxu0 %v468_v0  ;;  %418 = vmatprep.subr.bf16.mxu1 %v468_v0  ;;  %v462_v19 = vld [vmem:[%s636_s0 + $0x64] ss:$8 sps:$4 sm:$0xff]   ;;  %v455_v20 = vld [vmem:[%s636_s0 + $0x20] ss:$8 sps:$4 sm:$0xff]   ;;  %v459_v22 = vld [vmem:[%s636_s0 + $0x34] ss:$8 sps:$4 sm:$0xff]  }
   0x8   :  { %v464_v21 = vld [vmem:[%s636_s0 + $0x60] ss:$8 sps:$4 sm:$0xff]   ;;  %v465_v23 = vld [vmem:[%s636_s0 + $0x74] ss:$8 sps:$4 sm:$0xff]   ;;  %v461_v24 = vld [vmem:[%s636_s0 + $0x30] ss:$8 sps:$4 sm:$0xff]  }
   0x9   :  { %v467_v25 = vld [vmem:[%s636_s0 + $0x70] ss:$8 sps:$4 sm:$0xff]  }
   0xa   :  { %204 = vmatpush1.bf16.msra.mxu0 %v437_v3  ;;  %427 = vmatpush1.bf16.msra.mxu1 %v437_v3 }
   0xb   :  { %205 = vmatprep.subr.bf16.mxu0 %v468_v0  ;;  %419 = vmatprep.subr.bf16.mxu1 %v468_v0 }
   0xe   :  { %206 = vmatpush1.bf16.msra.mxu0 %v438_v4  ;;  %428 = vmatpush1.bf16.msra.mxu1 %v438_v4 }
   0xf   :  { %207 = vmatprep.subr.bf16.mxu0 %v468_v0  ;;  %420 = vmatprep.subr.bf16.mxu1 %v468_v0 }
  0x12   :  { %208 = vmatpush1.bf16.msra.mxu0 %v439_v7  ;;  %429 = vmatpush1.bf16.msra.mxu1 %v439_v7 }
  0x13   :  { %209 = vmatprep.subr.bf16.mxu0 %v468_v0  ;;  %421 = vmatprep.subr.bf16.mxu1 %v468_v0 }
  0x16   :  { %210 = vmatpush1.bf16.msra.mxu0 %v440_v8  ;;  %430 = vmatpush1.bf16.msra.mxu1 %v440_v8 }
  0x17   :  { %211 = vmatprep.subr.bf16.mxu0 %v468_v0  ;;  %422 = vmatprep.subr.bf16.mxu1 %v468_v0 }
  0x1a   :  { %212 = vmatpush1.bf16.msra.mxu0 %v441_v9  ;;  %431 = vmatpush1.bf16.msra.mxu1 %v441_v9 }
  0x1b   :  { %213 = vmatprep.subr.bf16.mxu0 %v468_v0  ;;  %423 = vmatprep.subr.bf16.mxu1 %v468_v0 }
  0x1e   :  { %214 = vmatpush1.bf16.msra.mxu0 %v442_v10  ;;  %432 = vmatpush1.bf16.msra.mxu1 %v442_v10 }
  0x1f   :  { %215 = vmatprep.subr.bf16.mxu0 %v468_v0  ;;  %424 = vmatprep.subr.bf16.mxu1 %v468_v0 }
  0x22   :  { %216 = vmatpush1.bf16.msra.mxu0 %v443_v11  ;;  %433 = vmatpush1.bf16.msra.mxu1 %v443_v11 }
  0x25   :  { %232 = vmatmul.mubr.bf16.vlgmr.msra.gmra.mrb[0].mxu0 %v444_v12  ;;  %264 = vmatmul.mubr.bf16.vlgmr.msra.gmra.mrb[0].mxu1 %v450_v13 }
  0x26   :  { %409 = vmatprep.mubr.msk.bf16.mxu0 %vm174_vm0, %v447_v14  ;;  %413 = vmatprep.mubr.msk.bf16.mxu1 %vm174_vm0, %v456_v15 }
  0x2d   :  { %240 = vmatmul.mubr.bf16.gmra.mrb[4].mxu0 %v449_v16  ;;  %272 = vmatmul.mubr.bf16.gmra.mrb[4].mxu1 %v458_v17 }
  0x2e   :  { %410 = vmatprep.mubr.msk.bf16.mxu0 %vm174_vm0, %v453_v18  ;;  %414 = vmatprep.mubr.msk.bf16.mxu1 %vm174_vm0, %v462_v19 }
  0x35   :  { %248 = vmatmul.mubr.bf16.gmra.mrb[8].mxu0 %v455_v20  ;;  %280 = vmatmul.mubr.bf16.gmra.mrb[8].mxu1 %v464_v21 }
  0x36   :  { %411 = vmatprep.mubr.msk.bf16.mxu0 %vm174_vm0, %v459_v22  ;;  %415 = vmatprep.mubr.msk.bf16.mxu1 %vm174_vm0, %v465_v23 }
  0x3d   :  { %256 = vmatmul.mubr.bf16.gmra.mrb[12].mxu0 %v461_v24  ;;  %288 = vmatmul.mubr.bf16.gmra.mrb[12].mxu1 %v467_v25 }
  0xf8   :  { %v233_v26 = vpop.f32.mrb[0].mxu0  ;;  %v572_v27 = vpop.f32.mrb[0].mxu1 }
  0xf9   :  { %296 = vst [vmem:[%s637_s2] sm:$0xff] %v233_v26  ;;  %v235_v28 = vpop.f32.mrb[1].mxu0  ;;  %304 = vst [vmem:[%s637_s2 + $0x40] sm:$0xff] %v572_v27  ;;  %v267_v29 = vpop.f32.mrb[1].mxu1  ;;  %v333_v32 = vmul.f32 %v233_v26, %v233_v26  ;;  %v341_v15 = vmul.f32 %v572_v27, %v572_v27 }
  0xfa   :  { %v236_v30 = vpop.f32.mrb[2].mxu0  ;;  %v581_v31 = vpop.f32.mrb[2].mxu1 }
  0xfb   :  { %297 = vst [vmem:[%s637_s2 + $0x8] sm:$0xff] %v236_v30  ;;  %v312_v33 = vadd.f32 %v236_v30, %v233_v26  ;;  %v334_v34 = vmul.f32 %v236_v30, %v236_v30  ;;  %v238_v35 = vpop.f32.mrb[3].mxu0  ;;  %305 = vst [vmem:[%s637_s2 + $0x48] sm:$0xff] %v581_v31  ;;  %v270_v36 = vpop.f32.mrb[3].mxu1  ;;  %v342_v18 = vmul.f32 %v581_v31, %v581_v31 }
  0xfd   :  { %v349_v37 = vadd.f32 %v334_v34, %v333_v32 }
 0x100   :  { %v241_v38 = vpop.f32.mrb[4].mxu0  ;;  %v273_v39 = vpop.f32.mrb[4].mxu1 }
 0x101   :  { %298 = vst [vmem:[%s637_s2 + $0x10] sm:$0xff] %v241_v38  ;;  %v313_v40 = vadd.f32 %v312_v33, %v241_v38  ;;  %v335_v41 = vmul.f32 %v241_v38, %v241_v38  ;;  %v243_v42 = vpop.f32.mrb[5].mxu0  ;;  %306 = vst [vmem:[%s637_s2 + $0x50] sm:$0xff] %v273_v39  ;;  %v275_v43 = vpop.f32.mrb[5].mxu1  ;;  %v343_v21 = vmul.f32 %v273_v39, %v273_v39 }
 0x102   :  { %v244_v44 = vpop.f32.mrb[6].mxu0  ;;  %v276_v45 = vpop.f32.mrb[6].mxu1 }
 0x103   :  { %v350_v46 = vadd.f32 %v349_v37, %v335_v41  ;;  %299 = vst [vmem:[%s637_s2 + $0x18] sm:$0xff] %v244_v44  ;;  %v314_v47 = vadd.f32 %v313_v40, %v244_v44  ;;  %v336_v48 = vmul.f32 %v244_v44, %v244_v44  ;;  %v246_v49 = vpop.f32.mrb[7].mxu0  ;;  %307 = vst [vmem:[%s637_s2 + $0x58] sm:$0xff] %v276_v45  ;;  %v278_v50 = vpop.f32.mrb[7].mxu1 }
 0x104   :  { %v344_v24 = vmul.f32 %v276_v45, %v276_v45 }
 0x105   :  { %v351_v51 = vadd.f32 %v350_v46, %v336_v48 }
 0x108   :  { %v249_v52 = vpop.f32.mrb[8].mxu0  ;;  %v281_v53 = vpop.f32.mrb[8].mxu1 }
 0x109   :  { %300 = vst [vmem:[%s637_s2 + $0x20] sm:$0xff] %v249_v52  ;;  %v315_v54 = vadd.f32 %v314_v47, %v249_v52  ;;  %v337_v55 = vmul.f32 %v249_v52, %v249_v52  ;;  %v251_v56 = vpop.f32.mrb[9].mxu0  ;;  %308 = vst [vmem:[%s637_s2 + $0x60] sm:$0xff] %v281_v53  ;;  %v283_v57 = vpop.f32.mrb[9].mxu1  ;;  %v345_v29 = vmul.f32 %v281_v53, %v281_v53 }
 0x10a   :  { %v252_v58 = vpop.f32.mrb[10].mxu0  ;;  %v284_v59 = vpop.f32.mrb[10].mxu1 }
 0x10b   :  { %v352_v60 = vadd.f32 %v351_v51, %v337_v55  ;;  %301 = vst [vmem:[%s637_s2 + $0x28] sm:$0xff] %v252_v58  ;;  %v316_v61 = vadd.f32 %v315_v54, %v252_v58  ;;  %v338_v62 = vmul.f32 %v252_v58, %v252_v58  ;;  %v254_v63 = vpop.f32.mrb[11].mxu0  ;;  %309 = vst [vmem:[%s637_s2 + $0x68] sm:$0xff] %v284_v59  ;;  %v286_v0 = vpop.f32.mrb[11].mxu1 }
 0x10c   :  { %v346_v34 = vmul.f32 %v284_v59, %v284_v59 }
 0x10d   :  { %v353_v1 = vadd.f32 %v352_v60, %v338_v62 }
 0x110   :  { %v257_v2 = vpop.f32.mrb[12].mxu0  ;;  %v289_v3 = vpop.f32.mrb[12].mxu1 }
 0x111   :  { %302 = vst [vmem:[%s637_s2 + $0x30] sm:$0xff] %v257_v2  ;;  %v317_v4 = vadd.f32 %v316_v61, %v257_v2  ;;  %v339_v5 = vmul.f32 %v257_v2, %v257_v2  ;;  %v259_v6 = vpop.f32.mrb[13].mxu0  ;;  %310 = vst [vmem:[%s637_s2 + $0x70] sm:$0xff] %v289_v3  ;;  %v291_v7 = vpop.f32.mrb[13].mxu1 }
 0x112   :  { %v260_v8 = vpop.f32.mrb[14].mxu0  ;;  %v292_v9 = vpop.f32.mrb[14].mxu1 }
 0x113   :  { %v354_v10 = vadd.f32 %v353_v1, %v339_v5  ;;  %303 = vst [vmem:[%s637_s2 + $0x38] sm:$0xff] %v260_v8  ;;  %v318_v11 = vadd.f32 %v317_v4, %v260_v8  ;;  %v340_v12 = vmul.f32 %v260_v8, %v260_v8  ;;  %v262_v13 = vpop.f32.mrb[15].mxu0  ;;  %311 = vst [vmem:[%s637_s2 + $0x78] sm:$0xff] %v292_v9  ;;  %v294_v14 = vpop.f32.mrb[15].mxu1 }
 0x114   :  { %v348_v40 = vmul.f32 %v292_v9, %v292_v9 }
 0x115   :  { %v319_v16 = vadd.f32 %v318_v11, %v572_v27  ;;  %v355_v17 = vadd.f32 %v354_v10, %v340_v12  ;;  %v347_v27 = vmul.f32 %v289_v3, %v289_v3 }
 0x117   :  { %v320_v19 = vadd.f32 %v319_v16, %v581_v31  ;;  %v356_v20 = vadd.f32 %v355_v17, %v341_v15 }
 0x119   :  { %v357_v22 = vadd.f32 %v356_v20, %v342_v18  ;;  %v321_v23 = vadd.f32 %v320_v19, %v273_v39 }
 0x11b   :  { %v322_v25 = vadd.f32 %v321_v23, %v276_v45  ;;  %v358_v26 = vadd.f32 %v357_v22, %v343_v21 }
 0x11d   :  { %v323_v28 = vadd.f32 %v322_v25, %v281_v53  ;;  %v359_v30 = vadd.f32 %v358_v26, %v344_v24 }
 0x11f   :  { %v360_v32 = vadd.f32 %v359_v30, %v345_v29  ;;  %v324_v33 = vadd.f32 %v323_v28, %v284_v59 }
 0x121   :  { %v361_v35 = vadd.f32 %v360_v32, %v346_v34  ;;  %v325_v36 = vadd.f32 %v324_v33, %v289_v3 }
 0x123   :  { %v362_v37 = vadd.f32 %v361_v35, %v347_v27  ;;  %v326_v38 = vadd.f32 %v325_v36, %v292_v9 }
 0x125   :  { %v327_v31 = vrot.slane %v326_v38, 4  ;;  %v363_v41 = vadd.f32 %v362_v37, %v348_v40 }
 0x127   :  { %v328_v42 = vadd.f32 %v327_v31, %v326_v38  ;;  %v364_v43 = vrot.slane %v363_v41, 4 }
 0x129   :  { %v329_v39 = vrot.slane %v328_v42, 2  ;;  %v365_v44 = vadd.f32 %v364_v43, %v363_v41 }
 0x12b   :  { %v330_v45 = vadd.f32 %v329_v39, %v328_v42  ;;  %v366_v46 = vrot.slane %v365_v44, 2 }
 0x12d   :  { %v331_v47 = vrot.slane %v330_v45, 1  ;;  %v367_v48 = vadd.f32 %v366_v46, %v365_v44 }
 0x12f   :  { %v368_v49 = vrot.slane %v367_v48, 1  ;;  %v332_v50 = vadd.f32 %v331_v47, %v330_v45 }
 0x131   :  { %v369_v51 = vadd.f32 %v368_v49, %v367_v48 }
 0x133   :  { %v371_v52 = vsel %vm370_vm1, %v332_v50, %v369_v51 }
 0x134   :  { %v373_v53 = vsel %vm372_vm2, %v371_v52, 0.0 }
 0x135   :  { %374 = vst [vmem:[%s638_s3] sm:$0xff] %v373_v53 }

// kernel: yolo_forward.14
= control target key start
LH: loop header
LB: loop body
LE: loop exit
PB: predicated region body
PF: predicated region fallthrough
CT: control target
= control target key end

     0   :  { %s254_s0 = inlined_call_operand.vmem [shape: f32[128,128], index: 0, kind: input, shape index: {}]   ;;  %s255_s1 = inlined_call_operand.vmem [shape: f32[1,128], index: 1, kind: input, shape index: {}]   ;;  %s256_s2 = inlined_call_operand.vmem [shape: f32[1,128], index: 2, kind: input, shape index: {}]   ;;  %s257_s3 = inlined_call_operand.vmem [shape: f32[128,128], index: 3, kind: output, shape index: {}]  }
   0x1   :  { %v14_v0 = vld [vmem:[%s254_s0] sm:$0xff]  ;;  %v15_v4 = vld [vmem:[%s254_s0 + $0x8] sm:$0xff]  ;;  %v16_v5 = vld [vmem:[%s254_s0 + $0x10] sm:$0xff] }
   0x2   :  { %v112_v1 = vld [vmem:[%s255_s1] ss:$0 sm:$0xff]  ;;  %v17_v6 = vld [vmem:[%s254_s0 + $0x18] sm:$0xff]  ;;  %v19_v11 = vld [vmem:[%s254_s0 + $0x28] sm:$0xff] }
   0x3   :  { %v143_v2 = vld [vmem:[%s256_s2] ss:$0 sm:$0xff]  ;;  %v37_v3 = vmul.f32 %v112_v1, %v14_v0  ;;  %v38_v7 = vmul.f32 %v112_v1, %v15_v4  ;;  %v39_v8 = vmul.f32 %v112_v1, %v16_v5  ;;  %v40_v9 = vmul.f32 %v112_v1, %v17_v6  ;;  %v20_v12 = vld [vmem:[%s254_s0 + $0x30] sm:$0xff]  ;;  %v21_v17 = vld [vmem:[%s254_s0 + $0x38] sm:$0xff] }
   0x4   :  { %v18_v10 = vld [vmem:[%s254_s0 + $0x20] sm:$0xff]  ;;  %v42_v15 = vmul.f32 %v112_v1, %v19_v11  ;;  %v43_v16 = vmul.f32 %v112_v1, %v20_v12  ;;  %v44_v21 = vmul.f32 %v112_v1, %v21_v17  ;;  %v23_v27 = vld [vmem:[%s254_s0 + $0x48] sm:$0xff]  ;;  %v24_v28 = vld [vmem:[%s254_s0 + $0x50] sm:$0xff] }
   0x5   :  { %v60_v13 = vadd.f32 %v143_v2, %v37_v3  ;;  %v41_v14 = vmul.f32 %v112_v1, %v18_v10  ;;  %v61_v18 = vadd.f32 %v143_v2, %v38_v7  ;;  %v62_v19 = vadd.f32 %v143_v2, %v39_v8  ;;  %v22_v22 = vld [vmem:[%s254_s0 + $0x40] sm:$0xff]  ;;  %v25_v29 = vld [vmem:[%s254_s0 + $0x58] sm:$0xff]  ;;  %v27_v35 = vld [vmem:[%s254_s0 + $0x68] sm:$0xff] }
   0x6   :  { %v63_v20 = vadd.f32 %v143_v2, %v40_v9  ;;  %v65_v25 = vadd.f32 %v143_v2, %v42_v15  ;;  %v66_v26 = vadd.f32 %v143_v2, %v43_v16  ;;  %v67_v33 = vadd.f32 %v143_v2, %v44_v21  ;;  %v26_v34 = vld [vmem:[%s254_s0 + $0x60] sm:$0xff]  ;;  %v28_v36 = vld [vmem:[%s254_s0 + $0x70] sm:$0xff]  ;;  %v29_v41 = vld [vmem:[%s254_s0 + $0x78] sm:$0xff] }
   0x7   :  { %v76_v23 = vmax.f32 %v60_v13, 0.0  ;;  %v64_v24 = vadd.f32 %v143_v2, %v41_v14  ;;  %v77_v30 = vmax.f32 %v61_v18, 0.0  ;;  %v78_v31 = vmax.f32 %v62_v19, 0.0 }
   0x8   :  { %v79_v32 = vmax.f32 %v63_v20, 0.0  ;;  %v81_v38 = vmax.f32 %v65_v25, 0.0  ;;  %v82_v39 = vmax.f32 %v66_v26, 0.0  ;;  %v45_v40 = vmul.f32 %v112_v1, %v22_v22 }
   0x9   :  { %92 = vst [vmem:[%s257_s3] sm:$0xff] %v76_v23  ;;  %v80_v37 = vmax.f32 %v64_v24, 0.0  ;;  %93 = vst [vmem:[%s257_s3 + $0x8] sm:$0xff] %v77_v30  ;;  %v83_v42 = vmax.f32 %v67_v33, 0.0  ;;  %v46_v43 = vmul.f32 %v112_v1, %v23_v27  ;;  %v47_v44 = vmul.f32 %v112_v1, %v24_v28 }
   0xa   :  { %94 = vst [vmem:[%s257_s3 + $0x10] sm:$0xff] %v78_v31  ;;  %95 = vst [vmem:[%s257_s3 + $0x18] sm:$0xff] %v79_v32  ;;  %v48_v45 = vmul.f32 %v112_v1, %v25_v29  ;;  %v68_v46 = vadd.f32 %v143_v2, %v45_v40  ;;  %v49_v47 = vmul.f32 %v112_v1, %v26_v34 }
   0xb   :  { %96 = vst [vmem:[%s257_s3 + $0x20] sm:$0xff] %v80_v37  ;;  %97 = vst [vmem:[%s257_s3 + $0x28] sm:$0xff] %v81_v38  ;;  %v50_v48 = vmul.f32 %v112_v1, %v27_v35  ;;  %v51_v49 = vmul.f32 %v112_v1, %v28_v36  ;;  %v69_v50 = vadd.f32 %v143_v2, %v46_v43 }
   0xc   :  { %98 = vst [vmem:[%s257_s3 + $0x30] sm:$0xff] %v82_v39  ;;  %99 = vst [vmem:[%s257_s3 + $0x38] sm:$0xff] %v83_v42  ;;  %v70_v51 = vadd.f32 %v143_v2, %v47_v44  ;;  %v71_v52 = vadd.f32 %v143_v2, %v48_v45  ;;  %v52_v53 = vmul.f32 %v112_v1, %v29_v41  ;;  %v84_v54 = vmax.f32 %v68_v46, 0.0 }
   0xd   :  { %v72_v55 = vadd.f32 %v143_v2, %v49_v47  ;;  %v73_v56 = vadd.f32 %v143_v2, %v50_v48  ;;  %v74_v57 = vadd.f32 %v143_v2, %v51_v49  ;;  %v85_v58 = vmax.f32 %v69_v50, 0.0 }
   0xe   :  { %v86_v59 = vmax.f32 %v70_v51, 0.0  ;;  %v87_v60 = vmax.f32 %v71_v52, 0.0  ;;  %v75_v61 = vadd.f32 %v143_v2, %v52_v53  ;;  %100 = vst [vmem:[%s257_s3 + $0x40] sm:$0xff] %v84_v54 }
   0xf   :  { %v88_v62 = vmax.f32 %v72_v55, 0.0  ;;  %v89_v63 = vmax.f32 %v73_v56, 0.0  ;;  %v90_v0 = vmax.f32 %v74_v57, 0.0  ;;  %101 = vst [vmem:[%s257_s3 + $0x48] sm:$0xff] %v85_v58 }
  0x10   :  { %102 = vst [vmem:[%s257_s3 + $0x50] sm:$0xff] %v86_v59  ;;  %103 = vst [vmem:[%s257_s3 + $0x58] sm:$0xff] %v87_v60  ;;  %v91_v1 = vmax.f32 %v75_v61, 0.0 }
  0x11   :  { %104 = vst [vmem:[%s257_s3 + $0x60] sm:$0xff] %v88_v62  ;;  %105 = vst [vmem:[%s257_s3 + $0x68] sm:$0xff] %v89_v63 }
  0x12   :  { %106 = vst [vmem:[%s257_s3 + $0x70] sm:$0xff] %v90_v0  ;;  %107 = vst [vmem:[%s257_s3 + $0x78] sm:$0xff] %v91_v1 }

// kernel: yolo_forward.16
= control target key start
LH: loop header
LB: loop body
LE: loop exit
PB: predicated region body
PF: predicated region fallthrough
CT: control target
= control target key end

     0   :  { %s360_s0 = inlined_call_operand.vmem [shape: f32[128,128], index: 0, kind: input, shape index: {}]   ;;  %s361_s1 = inlined_call_operand.vmem [shape: f32[1,128], index: 1, kind: input, shape index: {}]   ;;  %s362_s2 = inlined_call_operand.vmem [shape: f32[1,128], index: 2, kind: input, shape index: {}]   ;;  %s363_s3 = inlined_call_operand.vmem [shape: f32[128,128], index: 3, kind: input, shape index: {}]   ;;  %s364_s4 = inlined_call_operand.vmem [shape: f32[128,128], index: 4, kind: output, shape index: {}]  }
   0x1   :  { %v17_v0 = vld [vmem:[%s360_s0] sm:$0xff]  ;;  %v18_v4 = vld [vmem:[%s360_s0 + $0x8] sm:$0xff]  ;;  %v19_v6 = vld [vmem:[%s360_s0 + $0x10] sm:$0xff] }
   0x2   :  { %v180_v1 = vld [vmem:[%s361_s1] ss:$0 sm:$0xff]  ;;  %v20_v7 = vld [vmem:[%s360_s0 + $0x18] sm:$0xff]  ;;  %v22_v15 = vld [vmem:[%s360_s0 + $0x28] sm:$0xff] }
   0x3   :  { %v185_v2 = vld [vmem:[%s362_s2] ss:$0 sm:$0xff]  ;;  %v40_v3 = vmul.f32 %v180_v1, %v17_v0  ;;  %v41_v5 = vmul.f32 %v180_v1, %v18_v4  ;;  %v42_v9 = vmul.f32 %v180_v1, %v19_v6  ;;  %v43_v10 = vmul.f32 %v180_v1, %v20_v7  ;;  %v23_v16 = vld [vmem:[%s360_s0 + $0x30] sm:$0xff]  ;;  %v96_v18 = vld [vmem:[%s363_s3 + $0x8] sm:$0xff] }
   0x4   :  { %v21_v11 = vld [vmem:[%s360_s0 + $0x20] sm:$0xff]  ;;  %v45_v21 = vmul.f32 %v180_v1, %v22_v15  ;;  %v24_v22 = vld [vmem:[%s360_s0 + $0x38] sm:$0xff]  ;;  %v97_v24 = vld [vmem:[%s363_s3 + $0x10] sm:$0xff]  ;;  %v46_v27 = vmul.f32 %v180_v1, %v23_v16 }
   0x5   :  { %v63_v8 = vadd.f32 %v185_v2, %v40_v3  ;;  %v95_v12 = vld [vmem:[%s363_s3] sm:$0xff]  ;;  %v64_v13 = vadd.f32 %v185_v2, %v41_v5  ;;  %v44_v14 = vmul.f32 %v180_v1, %v21_v11  ;;  %v65_v19 = vadd.f32 %v185_v2, %v42_v9  ;;  %v98_v25 = vld [vmem:[%s363_s3 + $0x18] sm:$0xff]  ;;  %v26_v35 = vld [vmem:[%s360_s0 + $0x48] sm:$0xff] }
   0x6   :  { %v66_v20 = vadd.f32 %v185_v2, %v43_v10  ;;  %v47_v28 = vmul.f32 %v180_v1, %v24_v22  ;;  %v25_v29 = vld [vmem:[%s360_s0 + $0x40] sm:$0xff]  ;;  %v68_v34 = vadd.f32 %v185_v2, %v45_v21  ;;  %v100_v38 = vld [vmem:[%s363_s3 + $0x28] sm:$0xff]  ;;  %v69_v39 = vadd.f32 %v185_v2, %v46_v27  ;;  %v27_v41 = vld [vmem:[%s360_s0 + $0x50] sm:$0xff] }
   0x7   :  { %v79_v17 = vmax.f32 %v63_v8, 0.0  ;;  %v80_v23 = vmax.f32 %v64_v13, 0.0  ;;  %v67_v26 = vadd.f32 %v185_v2, %v44_v14  ;;  %v81_v31 = vmax.f32 %v65_v19, 0.0  ;;  %v99_v33 = vld [vmem:[%s363_s3 + $0x20] sm:$0xff]  ;;  %v28_v42 = vld [vmem:[%s360_s0 + $0x58] sm:$0xff]  ;;  %v101_v46 = vld [vmem:[%s363_s3 + $0x30] sm:$0xff] }
   0x8   :  { %v82_v32 = vmax.f32 %v66_v20, 0.0  ;;  %v70_v40 = vadd.f32 %v185_v2, %v47_v28  ;;  %v84_v45 = vmax.f32 %v68_v34, 0.0  ;;  %v102_v47 = vld [vmem:[%s363_s3 + $0x38] sm:$0xff]  ;;  %v48_v48 = vmul.f32 %v180_v1, %v25_v29  ;;  %v29_v49 = vld [vmem:[%s360_s0 + $0x60] sm:$0xff]  ;;  %v30_v54 = vld [vmem:[%s360_s0 + $0x68] sm:$0xff] }
   0x9   :  { %v111_v30 = vadd.f32 %v95_v12, %v79_v17  ;;  %v112_v36 = vadd.f32 %v96_v18, %v80_v23  ;;  %v83_v37 = vmax.f32 %v67_v26, 0.0  ;;  %v113_v43 = vadd.f32 %v97_v24, %v81_v31  ;;  %v31_v59 = vld [vmem:[%s360_s0 + $0x70] sm:$0xff]  ;;  %v32_v60 = vld [vmem:[%s360_s0 + $0x78] sm:$0xff]  ;;  %v103_v63 = vld [vmem:[%s363_s3 + $0x40] sm:$0xff] }
   0xa   :  { %v114_v44 = vadd.f32 %v98_v25, %v82_v32  ;;  %v85_v51 = vmax.f32 %v69_v39, 0.0  ;;  %v86_v52 = vmax.f32 %v70_v40, 0.0  ;;  %v49_v53 = vmul.f32 %v180_v1, %v26_v35  ;;  %v104_v5 = vld [vmem:[%s363_s3 + $0x48] sm:$0xff]  ;;  %v105_v10 = vld [vmem:[%s363_s3 + $0x50] sm:$0xff]  ;;  %v106_v11 = vld [vmem:[%s363_s3 + $0x58] sm:$0xff] }
   0xb   :  { %127 = vst [vmem:[%s364_s4] sm:$0xff] %v111_v30  ;;  %128 = vst [vmem:[%s364_s4 + $0x8] sm:$0xff] %v112_v36  ;;  %v115_v50 = vadd.f32 %v99_v33, %v83_v37  ;;  %v116_v55 = vadd.f32 %v100_v38, %v84_v45  ;;  %v71_v56 = vadd.f32 %v185_v2, %v48_v48  ;;  %v107_v18 = vld [vmem:[%s363_s3 + $0x60] sm:$0xff]  ;;  %v108_v22 = vld [vmem:[%s363_s3 + $0x68] sm:$0xff] }
   0xc   :  { %129 = vst [vmem:[%s364_s4 + $0x10] sm:$0xff] %v113_v43  ;;  %130 = vst [vmem:[%s364_s4 + $0x18] sm:$0xff] %v114_v44  ;;  %v50_v57 = vmul.f32 %v180_v1, %v27_v41  ;;  %v51_v58 = vmul.f32 %v180_v1, %v28_v42  ;;  %v117_v61 = vadd.f32 %v101_v46, %v85_v51  ;;  %v109_v27 = vld [vmem:[%s363_s3 + $0x70] sm:$0xff]  ;;  %v110_v28 = vld [vmem:[%s363_s3 + $0x78] sm:$0xff] }
   0xd   :  { %131 = vst [vmem:[%s364_s4 + $0x20] sm:$0xff] %v115_v50  ;;  %v118_v62 = vadd.f32 %v102_v47, %v86_v52  ;;  %v72_v0 = vadd.f32 %v185_v2, %v49_v53  ;;  %v52_v3 = vmul.f32 %v180_v1, %v29_v49  ;;  %132 = vst [vmem:[%s364_s4 + $0x28] sm:$0xff] %v116_v55  ;;  %v87_v4 = vmax.f32 %v71_v56, 0.0 }
   0xe   :  { %v73_v6 = vadd.f32 %v185_v2, %v50_v57  ;;  %v74_v7 = vadd.f32 %v185_v2, %v51_v58  ;;  %v53_v8 = vmul.f32 %v180_v1, %v30_v54  ;;  %133 = vst [vmem:[%s364_s4 + $0x30] sm:$0xff] %v117_v61  ;;  %v54_v13 = vmul.f32 %v180_v1, %v31_v59 }
   0xf   :  { %134 = vst [vmem:[%s364_s4 + $0x38] sm:$0xff] %v118_v62  ;;  %v88_v9 = vmax.f32 %v72_v0, 0.0  ;;  %v75_v12 = vadd.f32 %v185_v2, %v52_v3  ;;  %v55_v14 = vmul.f32 %v180_v1, %v32_v60  ;;  %v119_v15 = vadd.f32 %v103_v63, %v87_v4 }
  0x10   :  { %v89_v16 = vmax.f32 %v73_v6, 0.0  ;;  %v90_v17 = vmax.f32 %v74_v7, 0.0  ;;  %v76_v19 = vadd.f32 %v185_v2, %v53_v8  ;;  %v77_v23 = vadd.f32 %v185_v2, %v54_v13 }
  0x11   :  { %v120_v20 = vadd.f32 %v104_v5, %v88_v9  ;;  %v91_v21 = vmax.f32 %v75_v12, 0.0  ;;  %v78_v24 = vadd.f32 %v185_v2, %v55_v14  ;;  %135 = vst [vmem:[%s364_s4 + $0x40] sm:$0xff] %v119_v15 }
  0x12   :  { %v121_v1 = vadd.f32 %v105_v10, %v89_v16  ;;  %v122_v25 = vadd.f32 %v106_v11, %v90_v17  ;;  %v92_v26 = vmax.f32 %v76_v19, 0.0  ;;  %v93_v29 = vmax.f32 %v77_v23, 0.0 }
  0x13   :  { %136 = vst [vmem:[%s364_s4 + $0x48] sm:$0xff] %v120_v20  ;;  %v123_v2 = vadd.f32 %v107_v18, %v91_v21  ;;  %v94_v30 = vmax.f32 %v78_v24, 0.0 }
  0x14   :  { %137 = vst [vmem:[%s364_s4 + $0x50] sm:$0xff] %v121_v1  ;;  %138 = vst [vmem:[%s364_s4 + $0x58] sm:$0xff] %v122_v25  ;;  %v124_v31 = vadd.f32 %v108_v22, %v92_v26  ;;  %v125_v32 = vadd.f32 %v109_v27, %v93_v29 }
  0x15   :  { %139 = vst [vmem:[%s364_s4 + $0x60] sm:$0xff] %v123_v2  ;;  %v126_v33 = vadd.f32 %v110_v28, %v94_v30 }
  0x16   :  { %140 = vst [vmem:[%s364_s4 + $0x68] sm:$0xff] %v124_v31  ;;  %141 = vst [vmem:[%s364_s4 + $0x70] sm:$0xff] %v125_v32 }
  0x17   :  { %142 = vst [vmem:[%s364_s4 + $0x78] sm:$0xff] %v126_v33 }

// kernel: yolo_forward.15
= control target key start
LH: loop header
LB: loop body
LE: loop exit
PB: predicated region body
PF: predicated region fallthrough
CT: control target
= control target key end

     0   :  { %vm310_vm0 = vcmask 261120   ;;  %vm603_vm1 = vcmask 1040384   ;;  %vm605_vm2 = vcmask 1041408   ;;  %s1043_s1 = inlined_call_operand.vmem [shape: bf16[288,128], index: 1, kind: input, shape index: {}]   ;;  %s1044_s0 = inlined_call_operand.vmem [shape: bf16[128,288], index: 0, kind: input, shape index: {}]   ;;  %s1045_s2 = inlined_call_operand.vmem [shape: f32[128,128], index: 2, kind: output, shape index: {0}]   ;;  %s1046_s3 = inlined_call_operand.vmem [shape: f32[8,128], index: 3, kind: output, shape index: {1}]  }
   0x1   :  { %v776_v0 = vld [vmem:[%s1043_s1 + $0x40] sm:$0xff]   ;;  %v778_v2 = vld [vmem:[%s1043_s1 + $0x48] sm:$0xff]   ;;  %v780_v4 = vld [vmem:[%s1043_s1 + $0x50] sm:$0xff]  }
   0x2   :  { %v777_v1 = vld [vmem:[%s1043_s1] sm:$0xff]   ;;  %666 = vmatprep.subr.bf16.mxu0 %v776_v0  ;;  %760 = vmatprep.subr.bf16.mxu1 %v776_v0  ;;  %v779_v3 = vld [vmem:[%s1043_s1 + $0x8] sm:$0xff]   ;;  %v781_v5 = vld [vmem:[%s1043_s1 + $0x10] sm:$0xff]  }
   0x3   :  { %667 = vmatpush3.bf16.msra.mxu0 %v777_v1  ;;  %768 = vmatpush3.bf16.msra.mxu1 %v777_v1  ;;  %v782_v6 = vld [vmem:[%s1043_s1 + $0x58] sm:$0xff]   ;;  %v784_v8 = vld [vmem:[%s1043_s1 + $0x60] sm:$0xff]   ;;  %v786_v10 = vld [vmem:[%s1043_s1 + $0x68] sm:$0xff]  }
   0x4   :  { %668 = vmatprep.subr.bf16.mxu0 %v778_v2  ;;  %761 = vmatprep.subr.bf16.mxu1 %v778_v2  ;;  %v783_v7 = vld [vmem:[%s1043_s1 + $0x18] sm:$0xff]   ;;  %v785_v9 = vld [vmem:[%s1043_s1 + $0x20] sm:$0xff]   ;;  %v787_v13 = vld [vmem:[%s1043_s1 + $0x28] sm:$0xff]  }
   0x5   :  { %v794_v11 = vld [vmem:[%s1044_s0 + $0x4] ss:$12 sps:$4 sm:$0xff]   ;;  %v797_v12 = vld [vmem:[%s1044_s0 + $0x94] ss:$12 sps:$4 sm:$0xff]   ;;  %v790_v16 = vld [vmem:[%s1043_s1 + $0x78] sm:$0xff]  }
   0x6   :  { %v788_v14 = vld [vmem:[%s1043_s1 + $0x70] sm:$0xff]   ;;  %367 = vmatprep.mubr.bf16.mxu0 %v794_v11  ;;  %415 = vmatprep.mubr.bf16.mxu1 %v797_v12  ;;  %v791_v17 = vld [vmem:[%s1043_s1 + $0x38] sm:$0xff]   ;;  %v792_v18 = vld [vmem:[%s1044_s0] ss:$12 sps:$4 sm:$0xff]  }
   0x7   :  { %669 = vmatpush3.bf16.msra.mxu0 %v779_v3  ;;  %769 = vmatpush3.bf16.msra.mxu1 %v779_v3  ;;  %v789_v15 = vld [vmem:[%s1043_s1 + $0x30] sm:$0xff]   ;;  %v798_v19 = vld [vmem:[%s1043_s1 + $0x80] sm:$0xff]   ;;  %v799_v21 = vld [vmem:[%s1044_s0 + $0x1c] ss:$12 sps:$4 sm:$0xff]  }
   0x8   :  { %670 = vmatprep.subr.bf16.mxu0 %v780_v4  ;;  %762 = vmatprep.subr.bf16.mxu1 %v780_v4  ;;  %v795_v20 = vld [vmem:[%s1044_s0 + $0x90] ss:$12 sps:$4 sm:$0xff]   ;;  %v801_v22 = vld [vmem:[%s1044_s0 + $0xac] ss:$12 sps:$4 sm:$0xff]   ;;  %v804_v25 = vld [vmem:[%s1044_s0 + $0xa8] ss:$12 sps:$4 sm:$0xff]  }
   0x9   :  { %v805_v23 = vld [vmem:[%s1043_s1 + $0x88] sm:$0xff]   ;;  %v803_v24 = vld [vmem:[%s1044_s0 + $0x18] ss:$12 sps:$4 sm:$0xff]   ;;  %v806_v26 = vld [vmem:[%s1044_s0 + $0x34] ss:$12 sps:$4 sm:$0xff]  }
   0xa   :  { %v808_v27 = vld [vmem:[%s1044_s0 + $0x8] ss:$12 sps:$4 sm:$0xff]   ;;  %v809_v28 = vld [vmem:[%s1044_s0 + $0x30] ss:$12 sps:$4 sm:$0xff]   ;;  %v810_v29 = vld [vmem:[%s1044_s0 + $0x20] ss:$12 sps:$4 sm:$0xff]  }
   0xb   :  { %671 = vmatpush3.bf16.msra.mxu0 %v781_v5  ;;  %770 = vmatpush3.bf16.msra.mxu1 %v781_v5  ;;  %v811_v30 = vld [vmem:[%s1044_s0 + $0x4c] ss:$12 sps:$4 sm:$0xff]   ;;  %v814_v32 = vld [vmem:[%s1044_s0 + $0x48] ss:$12 sps:$4 sm:$0xff]   ;;  %v815_v33 = vld [vmem:[%s1044_s0 + $0x50] ss:$12 sps:$4 sm:$0xff]  }
   0xc   :  { %672 = vmatprep.subr.bf16.mxu0 %v782_v6  ;;  %763 = vmatprep.subr.bf16.mxu1 %v782_v6  ;;  %v813_v31 = vld [vmem:[%s1044_s0 + $0x38] ss:$12 sps:$4 sm:$0xff]   ;;  %v818_v35 = vld [vmem:[%s1044_s0 + $0x68] ss:$12 sps:$4 sm:$0xff]   ;;  %v819_v36 = vld [vmem:[%s1044_s0 + $0x60] ss:$12 sps:$4 sm:$0xff]  }
   0xd   :  { %v816_v34 = vld [vmem:[%s1044_s0 + $0x64] ss:$12 sps:$4 sm:$0xff]   ;;  %v820_v37 = vld [vmem:[%s1044_s0 + $0x80] ss:$12 sps:$4 sm:$0xff]   ;;  %v821_v38 = vld [vmem:[%s1044_s0 + $0x7c] ss:$12 sps:$4 sm:$0xff]  }
   0xe   :  { %v823_v39 = vld [vmem:[%s1044_s0 + $0x98] ss:$12 sps:$4 sm:$0xff]   ;;  %v825_v41 = vld [vmem:[%s1044_s0 + $0xb0] ss:$12 sps:$4 sm:$0xff]  }
   0xf   :  { %673 = vmatpush3.bf16.msra.mxu0 %v783_v7  ;;  %771 = vmatpush3.bf16.msra.mxu1 %v783_v7  ;;  %v824_v40 = vld [vmem:[%s1044_s0 + $0x78] ss:$12 sps:$4 sm:$0xff]  }
  0x10   :  { %674 = vmatprep.subr.bf16.mxu0 %v784_v8  ;;  %764 = vmatprep.subr.bf16.mxu1 %v784_v8 }
  0x13   :  { %675 = vmatpush3.bf16.msra.mxu0 %v785_v9  ;;  %772 = vmatpush3.bf16.msra.mxu1 %v785_v9 }
  0x14   :  { %676 = vmatprep.subr.bf16.mxu0 %v786_v10  ;;  %765 = vmatprep.subr.bf16.mxu1 %v786_v10 }
  0x17   :  { %677 = vmatpush3.bf16.msra.mxu0 %v787_v13  ;;  %773 = vmatpush3.bf16.msra.mxu1 %v787_v13 }
  0x18   :  { %678 = vmatprep.subr.bf16.mxu0 %v788_v14  ;;  %766 = vmatprep.subr.bf16.mxu1 %v788_v14 }
  0x1b   :  { %679 = vmatpush3.bf16.msra.mxu0 %v789_v15  ;;  %774 = vmatpush3.bf16.msra.mxu1 %v789_v15 }
  0x1c   :  { %680 = vmatprep.subr.bf16.mxu0 %v790_v16  ;;  %767 = vmatprep.subr.bf16.mxu1 %v790_v16 }
  0x1f   :  { %681 = vmatpush3.bf16.msra.mxu0 %v791_v17  ;;  %775 = vmatpush3.bf16.msra.mxu1 %v791_v17 }
  0x20   :  { %740 = vmatprep.subr.bf16.mxu1 %v798_v19 }
  0x22   :  { %368 = vmatmul.mubr.bf16.vlgmr.msra.gmra.mrb[0].mxu0 %v792_v18  ;;  %416 = vmatmul.mubr.bf16.vlgmr.msra.gmra.mrb[0].mxu1 %v795_v20 }
  0x23   :  { %741 = vmatpush3.bf16.msra.mxu1 %v798_v19  ;;  %375 = vmatprep.mubr.bf16.mxu0 %v799_v21 }
  0x24   :  { %423 = vmatprep.mubr.bf16.mxu1 %v801_v22  ;;  %742 = vmatprep.subr.bf16.mxu1 %v805_v23 }
  0x27   :  { %743 = vmatpush3.bf16.msra.mxu1 %v805_v23 }
  0x2a   :  { %376 = vmatmul.mubr.bf16.gmra.mrb[4].mxu0 %v803_v24  ;;  %424 = vmatmul.mubr.bf16.gmra.mrb[4].mxu1 %v804_v25 }
  0x2b   :  { %383 = vmatprep.mubr.bf16.mxu0 %v806_v26  ;;  %744 = vmatprep.mubr.msk.bf16.mxu1 %vm310_vm0, %v808_v27 }
  0x32   :  { %384 = vmatmul.mubr.bf16.gmra.mrb[8].mxu0 %v809_v28  ;;  %745 = vmatmul.mubr.msk.bf16.vlgmr.msra.gmra.mrb[8].mxu1 %vm310_vm0, %v810_v29 }
  0x33   :  { %391 = vmatprep.mubr.bf16.mxu0 %v811_v30  ;;  %748 = vmatprep.mubr.msk.bf16.mxu1 %vm310_vm0, %v813_v31 }
  0x3a   :  { %392 = vmatmul.mubr.bf16.gmra.mrb[12].mxu0 %v814_v32  ;;  %749 = vmatmul.mubr.msk.bf16.gmra.mrb[12].mxu1 %vm310_vm0, %v815_v33 }
  0x3b   :  { %399 = vmatprep.mubr.bf16.mxu0 %v816_v34  ;;  %752 = vmatprep.mubr.msk.bf16.mxu1 %vm310_vm0, %v818_v35 }
  0x42   :  { %400 = vmatmul.mubr.bf16.gmra.mrb[16].mxu0 %v819_v36  ;;  %753 = vmatmul.mubr.msk.bf16.gmra.mrb[16].mxu1 %vm310_vm0, %v820_v37 }
  0x43   :  { %407 = vmatprep.mubr.bf16.mxu0 %v821_v38  ;;  %756 = vmatprep.mubr.msk.bf16.mxu1 %vm310_vm0, %v823_v39 }
  0x4a   :  { %408 = vmatmul.mubr.bf16.gmra.mrb[20].mxu0 %v824_v40  ;;  %757 = vmatmul.mubr.msk.bf16.gmra.mrb[20].mxu1 %vm310_vm0, %v825_v41 }
  0xf5   :  { %v682_v42 = vpop.f32.mrb[0].mxu0  ;;  %v718_v43 = vpop.f32.mrb[0].mxu1 }
  0xf6   :  { %v683_v44 = vpop.f32.mrb[1].mxu0  ;;  %v719_v45 = vpop.f32.mrb[1].mxu1 }
  0xf7   :  { %v684_v46 = vadd.f32 %v683_v44, %v682_v42  ;;  %v685_v47 = vpop.f32.mrb[2].mxu0  ;;  %v980_v48 = vadd.f32 %v719_v45, %v718_v43  ;;  %v721_v49 = vpop.f32.mrb[2].mxu1 }
  0xf8   :  { %v686_v50 = vpop.f32.mrb[3].mxu0  ;;  %v722_v51 = vpop.f32.mrb[3].mxu1 }
  0xf9   :  { %v687_v52 = vadd.f32 %v686_v50, %v685_v47  ;;  %v982_v53 = vadd.f32 %v722_v51, %v721_v49 }
  0xfd   :  { %v688_v54 = vpop.f32.mrb[4].mxu0  ;;  %v724_v55 = vpop.f32.mrb[4].mxu1 }
  0xfe   :  { %v689_v56 = vpop.f32.mrb[5].mxu0  ;;  %v725_v57 = vpop.f32.mrb[5].mxu1 }
  0xff   :  { %v690_v58 = vadd.f32 %v689_v56, %v688_v54  ;;  %v691_v59 = vpop.f32.mrb[6].mxu0  ;;  %v984_v60 = vadd.f32 %v725_v57, %v724_v55  ;;  %v727_v61 = vpop.f32.mrb[6].mxu1 }
 0x100   :  { %v692_v62 = vpop.f32.mrb[7].mxu0  ;;  %v728_v63 = vpop.f32.mrb[7].mxu1 }
 0x101   :  { %v693_v0 = vadd.f32 %v692_v62, %v691_v59  ;;  %v986_v1 = vadd.f32 %v728_v63, %v727_v61 }
 0x105   :  { %v694_v2 = vpop.f32.mrb[8].mxu0  ;;  %v746_v3 = vpop.f32.mrb[8].mxu1 }
 0x106   :  { %v475_v4 = vadd.f32 %v746_v3, %v690_v58  ;;  %v695_v5 = vpop.f32.mrb[9].mxu0  ;;  %v466_v6 = vpop.f32.mrb[9].mxu1 }
 0x107   :  { %v696_v7 = vadd.f32 %v695_v5, %v694_v2  ;;  %v467_v8 = vadd.f32 %v684_v46, %v466_v6  ;;  %v697_v9 = vpop.f32.mrb[10].mxu0  ;;  %v747_v10 = vpop.f32.mrb[10].mxu1 }
 0x108   :  { %531 = vst [vmem:[%s1045_s2 + $0x10] sm:$0xff] %v475_v4  ;;  %v478_v11 = vadd.f32 %v747_v10, %v693_v0  ;;  %v698_v12 = vpop.f32.mrb[11].mxu0  ;;  %v469_v13 = vpop.f32.mrb[11].mxu1  ;;  %v568_v19 = vmul.f32 %v475_v4, %v475_v4 }
 0x109   :  { %529 = vst [vmem:[%s1045_s2] sm:$0xff] %v467_v8  ;;  %v699_v14 = vadd.f32 %v698_v12, %v697_v9  ;;  %v470_v15 = vadd.f32 %v687_v52, %v469_v13  ;;  %v566_v16 = vmul.f32 %v467_v8, %v467_v8 }
 0x10a   :  { %532 = vst [vmem:[%s1045_s2 + $0x18] sm:$0xff] %v478_v11  ;;  %v569_v24 = vmul.f32 %v478_v11, %v478_v11 }
 0x10b   :  { %530 = vst [vmem:[%s1045_s2 + $0x8] sm:$0xff] %v470_v15  ;;  %v545_v17 = vadd.f32 %v470_v15, %v467_v8  ;;  %v567_v18 = vmul.f32 %v470_v15, %v470_v15 }
 0x10d   :  { %v546_v20 = vadd.f32 %v545_v17, %v475_v4  ;;  %v582_v21 = vadd.f32 %v567_v18, %v566_v16  ;;  %v700_v22 = vpop.f32.mrb[12].mxu0  ;;  %v750_v23 = vpop.f32.mrb[12].mxu1 }
 0x10e   :  { %v701_v25 = vpop.f32.mrb[13].mxu0  ;;  %v482_v26 = vpop.f32.mrb[13].mxu1 }
 0x10f   :  { %v583_v27 = vadd.f32 %v582_v21, %v568_v19  ;;  %v702_v28 = vadd.f32 %v701_v25, %v700_v22  ;;  %v483_v29 = vadd.f32 %v696_v7, %v482_v26  ;;  %v547_v30 = vadd.f32 %v546_v20, %v478_v11  ;;  %v703_v31 = vpop.f32.mrb[14].mxu0  ;;  %v751_v32 = vpop.f32.mrb[14].mxu1 }
 0x110   :  { %v704_v33 = vpop.f32.mrb[15].mxu0  ;;  %v485_v34 = vpop.f32.mrb[15].mxu1 }
 0x111   :  { %v491_v35 = vadd.f32 %v750_v23, %v702_v28  ;;  %533 = vst [vmem:[%s1045_s2 + $0x20] sm:$0xff] %v483_v29  ;;  %v548_v36 = vadd.f32 %v547_v30, %v483_v29  ;;  %v570_v37 = vmul.f32 %v483_v29, %v483_v29  ;;  %v584_v38 = vadd.f32 %v583_v27, %v569_v24 }
 0x112   :  { %v705_v39 = vadd.f32 %v704_v33, %v703_v31  ;;  %v486_v40 = vadd.f32 %v699_v14, %v485_v34 }
 0x113   :  { %535 = vst [vmem:[%s1045_s2 + $0x30] sm:$0xff] %v491_v35  ;;  %v585_v41 = vadd.f32 %v584_v38, %v570_v37  ;;  %v572_v47 = vmul.f32 %v491_v35, %v491_v35 }
 0x114   :  { %v494_v42 = vadd.f32 %v751_v32, %v705_v39  ;;  %534 = vst [vmem:[%s1045_s2 + $0x28] sm:$0xff] %v486_v40  ;;  %v549_v43 = vadd.f32 %v548_v36, %v486_v40  ;;  %v571_v44 = vmul.f32 %v486_v40, %v486_v40 }
 0x115   :  { %v706_v45 = vpop.f32.mrb[16].mxu0  ;;  %v754_v46 = vpop.f32.mrb[16].mxu1 }
 0x116   :  { %536 = vst [vmem:[%s1045_s2 + $0x38] sm:$0xff] %v494_v42  ;;  %v550_v49 = vadd.f32 %v549_v43, %v491_v35  ;;  %v586_v50 = vadd.f32 %v585_v41, %v571_v44  ;;  %v707_v51 = vpop.f32.mrb[17].mxu0  ;;  %v498_v52 = vpop.f32.mrb[17].mxu1  ;;  %v573_v57 = vmul.f32 %v494_v42, %v494_v42 }
 0x117   :  { %v708_v54 = vadd.f32 %v707_v51, %v706_v45  ;;  %v709_v55 = vpop.f32.mrb[18].mxu0  ;;  %v755_v56 = vpop.f32.mrb[18].mxu1 }
 0x118   :  { %v587_v58 = vadd.f32 %v586_v50, %v572_v47  ;;  %v710_v59 = vpop.f32.mrb[19].mxu0  ;;  %v551_v61 = vadd.f32 %v550_v49, %v494_v42  ;;  %v501_v62 = vpop.f32.mrb[19].mxu1 }
 0x119   :  { %v711_v63 = vadd.f32 %v710_v59, %v709_v55  ;;  %v499_v0 = vadd.f32 %v708_v54, %v498_v52 }
 0x11a   :  { %v588_v2 = vadd.f32 %v587_v58, %v573_v57 }
 0x11b   :  { %537 = vst [vmem:[%s1045_s2 + $0x40] sm:$0xff] %v499_v0  ;;  %v552_v3 = vadd.f32 %v551_v61, %v499_v0  ;;  %v574_v4 = vmul.f32 %v499_v0, %v499_v0  ;;  %v502_v5 = vadd.f32 %v711_v63, %v501_v62 }
 0x11d   :  { %v589_v6 = vadd.f32 %v588_v2, %v574_v4  ;;  %538 = vst [vmem:[%s1045_s2 + $0x48] sm:$0xff] %v502_v5  ;;  %v553_v7 = vadd.f32 %v552_v3, %v502_v5  ;;  %v575_v8 = vmul.f32 %v502_v5, %v502_v5  ;;  %v712_v9 = vpop.f32.mrb[20].mxu0  ;;  %v758_v10 = vpop.f32.mrb[20].mxu1 }
 0x11e   :  { %v523_v11 = vadd.f32 %v758_v10, %v984_v60  ;;  %v713_v12 = vpop.f32.mrb[21].mxu0  ;;  %v514_v13 = vpop.f32.mrb[21].mxu1 }
 0x11f   :  { %v590_v14 = vadd.f32 %v589_v6, %v575_v8  ;;  %v714_v15 = vadd.f32 %v713_v12, %v712_v9  ;;  %v515_v16 = vadd.f32 %v980_v48, %v514_v13  ;;  %v715_v17 = vpop.f32.mrb[22].mxu0  ;;  %v759_v18 = vpop.f32.mrb[22].mxu1 }
 0x120   :  { %543 = vst [vmem:[%s1045_s2 + $0x70] sm:$0xff] %v523_v11  ;;  %v526_v19 = vadd.f32 %v759_v18, %v986_v1  ;;  %v716_v20 = vpop.f32.mrb[23].mxu0  ;;  %v517_v21 = vpop.f32.mrb[23].mxu1  ;;  %v580_v33 = vmul.f32 %v523_v11, %v523_v11 }
 0x121   :  { %v507_v22 = vadd.f32 %v754_v46, %v714_v15  ;;  %541 = vst [vmem:[%s1045_s2 + $0x60] sm:$0xff] %v515_v16  ;;  %v717_v60 = vadd.f32 %v716_v20, %v715_v17  ;;  %v518_v23 = vadd.f32 %v982_v53, %v517_v21  ;;  %v578_v27 = vmul.f32 %v515_v16, %v515_v16 }
 0x122   :  { %544 = vst [vmem:[%s1045_s2 + $0x78] sm:$0xff] %v526_v19  ;;  %v581_v36 = vmul.f32 %v526_v19, %v526_v19 }
 0x123   :  { %539 = vst [vmem:[%s1045_s2 + $0x50] sm:$0xff] %v507_v22  ;;  %v554_v48 = vadd.f32 %v553_v7, %v507_v22  ;;  %v576_v1 = vmul.f32 %v507_v22, %v507_v22  ;;  %v510_v24 = vadd.f32 %v755_v56, %v717_v60  ;;  %542 = vst [vmem:[%s1045_s2 + $0x68] sm:$0xff] %v518_v23 }
 0x124   :  { %v579_v31 = vmul.f32 %v518_v23, %v518_v23 }
 0x125   :  { %v591_v25 = vadd.f32 %v590_v14, %v576_v1  ;;  %540 = vst [vmem:[%s1045_s2 + $0x58] sm:$0xff] %v510_v24  ;;  %v555_v53 = vadd.f32 %v554_v48, %v510_v24  ;;  %v577_v26 = vmul.f32 %v510_v24, %v510_v24 }
 0x127   :  { %v592_v28 = vadd.f32 %v591_v25, %v577_v26  ;;  %v556_v29 = vadd.f32 %v555_v53, %v515_v16 }
 0x129   :  { %v557_v30 = vadd.f32 %v556_v29, %v518_v23  ;;  %v593_v32 = vadd.f32 %v592_v28, %v578_v27 }
 0x12b   :  { %v558_v34 = vadd.f32 %v557_v30, %v523_v11  ;;  %v594_v35 = vadd.f32 %v593_v32, %v579_v31 }
 0x12d   :  { %v559_v37 = vadd.f32 %v558_v34, %v526_v19  ;;  %v595_v38 = vadd.f32 %v594_v35, %v580_v33 }
 0x12f   :  { %v560_v39 = vrot.slane %v559_v37, 4  ;;  %v596_v40 = vadd.f32 %v595_v38, %v581_v36 }
 0x131   :  { %v561_v41 = vadd.f32 %v560_v39, %v559_v37  ;;  %v597_v42 = vrot.slane %v596_v40, 4 }
 0x133   :  { %v562_v43 = vrot.slane %v561_v41, 2  ;;  %v598_v44 = vadd.f32 %v597_v42, %v596_v40 }
 0x135   :  { %v563_v45 = vadd.f32 %v562_v43, %v561_v41  ;;  %v599_v46 = vrot.slane %v598_v44, 2 }
 0x137   :  { %v564_v47 = vrot.slane %v563_v45, 1  ;;  %v600_v49 = vadd.f32 %v599_v46, %v598_v44 }
 0x139   :  { %v601_v50 = vrot.slane %v600_v49, 1  ;;  %v565_v51 = vadd.f32 %v564_v47, %v563_v45 }
 0x13b   :  { %v602_v52 = vadd.f32 %v601_v50, %v600_v49 }
 0x13d   :  { %v604_v54 = vsel %vm603_vm1, %v565_v51, %v602_v52 }
 0x13e   :  { %v606_v55 = vsel %vm605_vm2, %v604_v54, 0.0 }
 0x13f   :  { %607 = vst [vmem:[%s1046_s3] sm:$0xff] %v606_v55 }

// kernel: yolo_forward.17
= control target key start
LH: loop header
LB: loop body
LE: loop exit
PB: predicated region body
PF: predicated region fallthrough
CT: control target
= control target key end

     0   :  { %vm94_vm0 = vcmask 261120   ;;  %v216_v59 = vlaneseq  ;;  %s840_s1 = inlined_call_operand.vmem [shape: bf16[32,128], index: 1, kind: input, shape index: {}]   ;;  %s841_s0 = inlined_call_operand.vmem [shape: bf16[128,32], index: 0, kind: input, shape index: {}]   ;;  %s842_s2 = inlined_call_operand.vmem [shape: f32[1,128], index: 2, kind: input, shape index: {}]   ;;  %s843_s3 = inlined_call_operand.vmem [shape: f32[128,128], index: 3, kind: output, shape index: {}]  }
   0x1   :  { %v453_v0 = vld [vmem:[%s840_s1] sm:$0xff]   ;;  %v454_v1 = vld [vmem:[%s840_s1 + $0x8] sm:$0xff]   ;;  %v459_v6 = vld [vmem:[%s841_s0 + $0x10] sm:$0xff]  }
   0x2   :  { %429 = vmatprep.subr.bf16.mxu0 %v453_v0  ;;  %449 = vmatprep.subr.bf16.mxu1 %v453_v0  ;;  %v455_v2 = vld [vmem:[%s841_s0] sm:$0xff]   ;;  %v457_v4 = vld [vmem:[%s841_s0 + $0x8] sm:$0xff]   ;;  %v460_v7 = vld [vmem:[%s841_s0 + $0x30] sm:$0xff]  }
   0x3   :  { %430 = vmatpush3.bf16.msra.mxu0 %v453_v0  ;;  %451 = vmatpush3.bf16.msra.mxu1 %v453_v0  ;;  %v456_v3 = vld [vmem:[%s841_s0 + $0x20] sm:$0xff]   ;;  %v458_v5 = vld [vmem:[%s841_s0 + $0x28] sm:$0xff]   ;;  %v461_v8 = vld [vmem:[%s841_s0 + $0x18] sm:$0xff]  }
   0x4   :  { %431 = vmatprep.subr.bf16.mxu0 %v454_v1  ;;  %450 = vmatprep.subr.bf16.mxu1 %v454_v1  ;;  %v462_v9 = vld [vmem:[%s841_s0 + $0x38] sm:$0xff]   ;;  %v620_v10 = vld [vmem:[%s842_s2] ss:$0 sm:$0xff] }
   0x5   :  { %433 = vmatprep.mubr.msk.bf16.mxu0 %vm94_vm0, %v455_v2  ;;  %441 = vmatprep.mubr.msk.bf16.mxu1 %vm94_vm0, %v456_v3 }
   0x7   :  { %432 = vmatpush3.bf16.msra.mxu0 %v454_v1  ;;  %452 = vmatpush3.bf16.msra.mxu1 %v454_v1 }
   0xa   :  { %434 = vmatmul.mubr.msk.bf16.vlgmr.msra.gmra.mrb[0].mxu0 %vm94_vm0, %v457_v4  ;;  %442 = vmatmul.mubr.msk.bf16.vlgmr.msra.gmra.mrb[0].mxu1 %vm94_vm0, %v458_v5  ;;  %v672_v4 = vand.u32 127, %v216_v59 }
   0xb   :  { %437 = vmatprep.mubr.msk.bf16.mxu0 %vm94_vm0, %v459_v6  ;;  %445 = vmatprep.mubr.msk.bf16.mxu1 %vm94_vm0, %v460_v7 }
   0xc   :  { %vm347_vm1 = vcmp.lt.s32.totalorder %v672_v4, 96  ;;  %vm346_vm2 = vcmp.lt.s32.totalorder %v672_v4, 94 }
  0x12   :  { %438 = vmatmul.mubr.msk.bf16.gmra.mrb[4].mxu0 %vm94_vm0, %v461_v8  ;;  %446 = vmatmul.mubr.msk.bf16.gmra.mrb[4].mxu1 %vm94_vm0, %v462_v9 }
  0xdd   :  { %v435_v11 = vpop.f32.mrb[0].mxu0  ;;  %v443_v12 = vpop.f32.mrb[0].mxu1 }
  0xde   :  { %v623_v13 = vadd.f32 %v435_v11, %v620_v10  ;;  %v626_v14 = vadd.f32 %v443_v12, %v620_v10  ;;  %v153_v15 = vpop.f32.mrb[1].mxu0  ;;  %v185_v16 = vpop.f32.mrb[1].mxu1 }
  0xdf   :  { %v629_v17 = vadd.f32 %v620_v10, %v153_v15  ;;  %v632_v18 = vadd.f32 %v620_v10, %v185_v16  ;;  %v436_v19 = vpop.f32.mrb[2].mxu0  ;;  %v444_v20 = vpop.f32.mrb[2].mxu1 }
  0xe0   :  { %v220_v21 = vsub.f32 0.0, %v623_v13  ;;  %v302_v22 = vmul.f32 1.442695, %v623_v13  ;;  %v228_v23 = vsub.f32 0.0, %v626_v14  ;;  %v318_v24 = vmul.f32 1.442695, %v626_v14 }
  0xe1   :  { %v218_v25 = vsub.f32 0.0, %v629_v17  ;;  %v226_v26 = vsub.f32 0.0, %v632_v18  ;;  %v641_v29 = vadd.f32 %v436_v19, %v620_v10  ;;  %v156_v30 = vpop.f32.mrb[3].mxu0  ;;  %v188_v31 = vpop.f32.mrb[3].mxu1  ;;  %v298_v33 = vmul.f32 1.442695, %v629_v17 }
  0xe2   :  { %v238_v27 = vmul.f32 1.442695, %v220_v21  ;;  %463 = vpow2.f32 %v302_v22  ;;  %v254_v28 = vmul.f32 1.442695, %v228_v23  ;;  %v645_v34 = vadd.f32 %v444_v20, %v620_v10 }
  0xe3   :  { %465 = vpow2.f32 %v318_v24  ;;  %v234_v32 = vmul.f32 1.442695, %v218_v25  ;;  %v250_v35 = vmul.f32 1.442695, %v226_v26  ;;  %v221_v36 = vsub.f32 0.0, %v641_v29 }
  0xe4   :  { %467 = vpow2.f32 %v238_v27  ;;  %v649_v37 = vadd.f32 %v620_v10, %v156_v30  ;;  %v314_v38 = vmul.f32 1.442695, %v632_v18  ;;  %v229_v39 = vsub.f32 0.0, %v645_v34 }
  0xe5   :  { %469 = vpow2.f32 %v254_v28  ;;  %v654_v40 = vadd.f32 %v620_v10, %v188_v31  ;;  %v439_v41 = vpop.f32.mrb[4].mxu0  ;;  %v447_v42 = vpop.f32.mrb[4].mxu1  ;;  %v240_v43 = vmul.f32 1.442695, %v221_v36  ;;  %v304_v46 = vmul.f32 1.442695, %v641_v29 }
  0xe6   :  { %471 = vpow2.f32 %v234_v32  ;;  %v219_v44 = vsub.f32 0.0, %v649_v37  ;;  %v169_v45 = vpop.f32.mrb[5].mxu0  ;;  %v201_v47 = vpop.f32.mrb[5].mxu1  ;;  %v256_v48 = vmul.f32 1.442695, %v229_v39  ;;  %v665_v56 = vadd.f32 %v439_v41, %v620_v10 }
  0xe7   :  { %473 = vpow2.f32 %v298_v33  ;;  %v227_v49 = vsub.f32 0.0, %v654_v40  ;;  %v440_v50 = vpop.f32.mrb[6].mxu0  ;;  %v448_v51 = vpop.f32.mrb[6].mxu1  ;;  %v320_v52 = vmul.f32 1.442695, %v645_v34  ;;  %v669_v62 = vadd.f32 %v447_v42, %v620_v10 }
  0xe8   :  { %475 = vpow2.f32 %v250_v35  ;;  %v660_v53 = vpop.f32.mrb[7].mxu0  ;;  %v662_v54 = vpop.f32.mrb[7].mxu1  ;;  %v236_v55 = vmul.f32 1.442695, %v219_v44  ;;  %v300_v57 = vmul.f32 1.442695, %v649_v37  ;;  %v677_v11 = vadd.f32 %v620_v10, %v169_v45 }
  0xe9   :  { %477 = vpow2.f32 %v314_v38  ;;  %v252_v60 = vmul.f32 1.442695, %v227_v49  ;;  %v224_v0 = vsub.f32 0.0, %v665_v56  ;;  %v316_v6 = vmul.f32 1.442695, %v654_v40 }
  0xea   :  { %479 = vpow2.f32 %v240_v43  ;;  %v232_v9 = vsub.f32 0.0, %v669_v62  ;;  %v680_v16 = vadd.f32 %v620_v10, %v201_v47  ;;  %v222_v25 = vsub.f32 0.0, %v677_v11 }
  0xeb   :  { %481 = vpow2.f32 %v304_v46  ;;  %v246_v15 = vmul.f32 1.442695, %v224_v0  ;;  %v686_v30 = vadd.f32 %v440_v50, %v620_v10  ;;  %v310_v36 = vmul.f32 1.442695, %v665_v56 }
  0xec   :  { %v464_v58 = vpop.eup %463  ;;  %483 = vpow2.f32 %v256_v48  ;;  %v262_v24 = vmul.f32 1.442695, %v232_v9  ;;  %v230_v28 = vsub.f32 0.0, %v680_v16  ;;  %v326_v38 = vmul.f32 1.442695, %v669_v62 }
  0xed   :  { %v466_v61 = vpop.eup %465  ;;  %485 = vpow2.f32 %v320_v52  ;;  %v332_v27 = vmul.f32 0.3, %v464_v58  ;;  %v306_v39 = vmul.f32 1.442695, %v677_v11  ;;  %v693_v41 = vadd.f32 %v448_v51, %v620_v10 }
  0xee   :  { %v468_v63 = vpop.eup %467  ;;  %487 = vpow2.f32 %v236_v55  ;;  %v340_v32 = vmul.f32 0.3, %v466_v61  ;;  %v242_v45 = vmul.f32 1.442695, %v222_v25  ;;  %v258_v48 = vmul.f32 1.442695, %v230_v28 }
  0xef   :  { %v470_v1 = vpop.eup %469  ;;  %v268_v2 = vadd.f32 1.0, %v468_v63  ;;  %489 = vpow2.f32 %v300_v57  ;;  %v350_v47 = vsel %vm347_vm1, %v332_v27, %v623_v13  ;;  %v225_v49 = vsub.f32 0.0, %v686_v30 }
  0xf0   :  { %v472_v3 = vpop.eup %471  ;;  %v276_v5 = vadd.f32 1.0, %v470_v1  ;;  %491 = vpow2.f32 %v252_v60  ;;  %v358_v51 = vsel %vm347_vm1, %v340_v32, %v626_v14  ;;  %v233_v59 = vsub.f32 0.0, %v693_v41 }
  0xf1   :  { %v474_v7 = vpop.eup %473  ;;  %493 = vrcp.f32 %v268_v2  ;;  %v266_v8 = vadd.f32 1.0, %v472_v3  ;;  %v707_v13 = vadd.f32 %v620_v10, %v660_v53  ;;  %v248_v1 = vmul.f32 1.442695, %v225_v49 }
  0xf2   :  { %v476_v12 = vpop.eup %475  ;;  %495 = vrcp.f32 %v276_v5  ;;  %v330_v43 = vmul.f32 0.3, %v474_v7  ;;  %v724_v2 = vadd.f32 %v620_v10, %v662_v54  ;;  %v264_v10 = vmul.f32 1.442695, %v233_v59 }
  0xf3   :  { %v478_v19 = vpop.eup %477  ;;  %497 = vrcp.f32 %v266_v8  ;;  %v274_v20 = vadd.f32 1.0, %v476_v12  ;;  %v223_v54 = vsub.f32 0.0, %v707_v13 }
  0xf4   :  { %v480_v21 = vpop.eup %479  ;;  %499 = vpow2.f32 %v316_v6  ;;  %v338_v52 = vmul.f32 0.3, %v478_v19  ;;  %v348_v61 = vsel %vm347_vm1, %v330_v43, %v629_v17  ;;  %v322_v6 = vmul.f32 1.442695, %v680_v16 }
  0xf5   :  { %v482_v22 = vpop.eup %481  ;;  %501 = vrcp.f32 %v274_v20  ;;  %v269_v23 = vadd.f32 1.0, %v480_v21  ;;  %v312_v20 = vmul.f32 1.442695, %v686_v30  ;;  %v231_v21 = vsub.f32 0.0, %v724_v2 }
  0xf6   :  { %v484_v26 = vpop.eup %483  ;;  %503 = vpow2.f32 %v246_v15  ;;  %v333_v63 = vmul.f32 0.3, %v482_v22  ;;  %v356_v17 = vsel %vm347_vm1, %v338_v52, %v632_v18  ;;  %v324_v49 = vmul.f32 1.442695, %v724_v2 }
  0xf7   :  { %v486_v31 = vpop.eup %485  ;;  %505 = vrcp.f32 %v269_v23  ;;  %v277_v33 = vadd.f32 1.0, %v484_v26  ;;  %v244_v26 = vmul.f32 1.442695, %v223_v54 }
  0xf8   :  { %v488_v35 = vpop.eup %487  ;;  %v341_v5 = vmul.f32 0.3, %v486_v31  ;;  %v351_v18 = vsel %vm347_vm1, %v333_v63, %v641_v29 }
  0xf9   :  { %v490_v42 = vpop.eup %489  ;;  %507 = vrcp.f32 %v277_v33  ;;  %v267_v44 = vadd.f32 1.0, %v488_v35  ;;  %v260_v35 = vmul.f32 1.442695, %v231_v21 }
  0xfa   :  { %v492_v46 = vpop.eup %491  ;;  %509 = vpow2.f32 %v262_v24  ;;  %v331_v12 = vmul.f32 0.3, %v490_v42  ;;  %v359_v29 = vsel %vm347_vm1, %v341_v5, %v645_v34  ;;  %v328_v34 = vmul.f32 1.442695, %v693_v41 }
  0xfb   :  { %v494_v50 = vpop.eup %493  ;;  %511 = vrcp.f32 %v267_v44  ;;  %v275_v55 = vadd.f32 1.0, %v492_v46  ;;  %v308_v46 = vmul.f32 1.442695, %v707_v13 }
  0xfc   :  { %v496_v57 = vpop.eup %495  ;;  %v366_v58 = vsel %vm346_vm2, %v494_v50, %v350_v47  ;;  %513 = vpow2.f32 %v310_v36  ;;  %v349_v28 = vsel %vm347_vm1, %v331_v12, %v649_v37 }
  0xfd   :  { %v498_v60 = vpop.eup %497  ;;  %382 = vst [vmem:[%s843_s3 + $0x10] sm:$0xff] %v366_v58  ;;  %v374_v14 = vsel %vm346_vm2, %v496_v57, %v358_v51  ;;  %515 = vrcp.f32 %v275_v55 }
  0xfe   :  { %v500_v0 = vpop.eup %499  ;;  %390 = vst [vmem:[%s843_s3 + $0x50] sm:$0xff] %v374_v14  ;;  %v364_v53 = vsel %vm346_vm2, %v498_v60, %v348_v61  ;;  %517 = vpow2.f32 %v242_v45 }
  0xff   :  { %v502_v3 = vpop.eup %501  ;;  %380 = vst [vmem:[%s843_s3] sm:$0xff] %v364_v53  ;;  %519 = vpow2.f32 %v326_v38  ;;  %v339_v23 = vmul.f32 0.3, %v500_v0 }
 0x100   :  { %v504_v7 = vpop.eup %503  ;;  %v372_v8 = vsel %vm346_vm2, %v502_v3, %v356_v17  ;;  %521 = vpow2.f32 %v258_v48 }
 0x101   :  { %v506_v9 = vpop.eup %505  ;;  %388 = vst [vmem:[%s843_s3 + $0x40] sm:$0xff] %v372_v8  ;;  %v272_v15 = vadd.f32 1.0, %v504_v7  ;;  %523 = vpow2.f32 %v306_v39  ;;  %v357_v38 = vsel %vm347_vm1, %v339_v23, %v654_v40 }
 0x102   :  { %v367_v19 = vsel %vm346_vm2, %v506_v9, %v351_v18  ;;  %525 = vpow2.f32 %v248_v1 }
 0x103   :  { %v508_v22 = vpop.eup %507  ;;  %383 = vst [vmem:[%s843_s3 + $0x18] sm:$0xff] %v367_v19  ;;  %527 = vrcp.f32 %v272_v15 }
 0x104   :  { %v510_v24 = vpop.eup %509  ;;  %v375_v25 = vsel %vm346_vm2, %v508_v22, %v359_v29  ;;  %529 = vpow2.f32 %v322_v6 }
 0x105   :  { %v512_v27 = vpop.eup %511  ;;  %391 = vst [vmem:[%s843_s3 + $0x58] sm:$0xff] %v375_v25  ;;  %v280_v31 = vadd.f32 1.0, %v510_v24  ;;  %531 = vpow2.f32 %v264_v10 }
 0x106   :  { %v514_v32 = vpop.eup %513  ;;  %v365_v33 = vsel %vm346_vm2, %v512_v27, %v349_v28  ;;  %533 = vpow2.f32 %v312_v20 }
 0x107   :  { %v516_v36 = vpop.eup %515  ;;  %381 = vst [vmem:[%s843_s3 + $0x8] sm:$0xff] %v365_v33  ;;  %535 = vrcp.f32 %v280_v31  ;;  %v336_v43 = vmul.f32 0.3, %v514_v32 }
 0x108   :  { %v518_v37 = vpop.eup %517  ;;  %v373_v39 = vsel %vm346_vm2, %v516_v36, %v357_v38  ;;  %537 = vpow2.f32 %v244_v26 }
 0x109   :  { %v520_v42 = vpop.eup %519  ;;  %389 = vst [vmem:[%s843_s3 + $0x48] sm:$0xff] %v373_v39  ;;  %v270_v44 = vadd.f32 1.0, %v518_v37  ;;  %539 = vpow2.f32 %v328_v34  ;;  %v354_v51 = vsel %vm347_vm1, %v336_v43, %v665_v56 }
 0x10a   :  { %v522_v45 = vpop.eup %521  ;;  %541 = vpow2.f32 %v260_v35  ;;  %v344_v52 = vmul.f32 0.3, %v520_v42 }
 0x10b   :  { %v524_v47 = vpop.eup %523  ;;  %543 = vrcp.f32 %v270_v44  ;;  %v278_v40 = vadd.f32 1.0, %v522_v45 }
 0x10c   :  { %v526_v48 = vpop.eup %525  ;;  %v362_v56 = vsel %vm347_vm1, %v344_v52, %v669_v62  ;;  %v334_v63 = vmul.f32 0.3, %v524_v47 }
 0x10d   :  { %v528_v50 = vpop.eup %527  ;;  %545 = vrcp.f32 %v278_v40  ;;  %v273_v55 = vadd.f32 1.0, %v526_v48 }
 0x10e   :  { %v530_v57 = vpop.eup %529  ;;  %v370_v58 = vsel %vm346_vm2, %v528_v50, %v354_v51  ;;  %547 = vpow2.f32 %v308_v46  ;;  %v352_v7 = vsel %vm347_vm1, %v334_v63, %v677_v11 }
 0x10f   :  { %v532_v59 = vpop.eup %531  ;;  %386 = vst [vmem:[%s843_s3 + $0x30] sm:$0xff] %v370_v58  ;;  %549 = vrcp.f32 %v273_v55  ;;  %v342_v3 = vmul.f32 0.3, %v530_v57 }
 0x110   :  { %v534_v60 = vpop.eup %533  ;;  %v281_v14 = vadd.f32 1.0, %v532_v59  ;;  %551 = vpow2.f32 %v324_v49 }
 0x111   :  { %v536_v61 = vpop.eup %535  ;;  %v337_v62 = vmul.f32 0.3, %v534_v60  ;;  %v360_v9 = vsel %vm347_vm1, %v342_v3, %v680_v16 }
 0x112   :  { %v538_v0 = vpop.eup %537  ;;  %v378_v53 = vsel %vm346_vm2, %v536_v61, %v362_v56  ;;  %553 = vrcp.f32 %v281_v14 }
 0x113   :  { %v540_v1 = vpop.eup %539  ;;  %394 = vst [vmem:[%s843_s3 + $0x70] sm:$0xff] %v378_v53  ;;  %v271_v17 = vadd.f32 1.0, %v538_v0  ;;  %v355_v19 = vsel %vm347_vm1, %v337_v62, %v686_v30 }
 0x114   :  { %v542_v5 = vpop.eup %541  ;;  %v345_v12 = vmul.f32 0.3, %v540_v1 }
 0x115   :  { %v544_v6 = vpop.eup %543  ;;  %555 = vrcp.f32 %v271_v17  ;;  %v279_v8 = vadd.f32 1.0, %v542_v5 }
 0x116   :  { %v368_v10 = vsel %vm346_vm2, %v544_v6, %v352_v7  ;;  %v363_v29 = vsel %vm347_vm1, %v345_v12, %v693_v41 }
 0x117   :  { %v546_v54 = vpop.eup %545  ;;  %384 = vst [vmem:[%s843_s3 + $0x20] sm:$0xff] %v368_v10  ;;  %557 = vrcp.f32 %v279_v8 }
 0x118   :  { %v548_v18 = vpop.eup %547  ;;  %v376_v11 = vsel %vm346_vm2, %v546_v54, %v360_v9 }
 0x119   :  { %v550_v15 = vpop.eup %549  ;;  %392 = vst [vmem:[%s843_s3 + $0x60] sm:$0xff] %v376_v11  ;;  %v335_v16 = vmul.f32 0.3, %v548_v18 }
 0x11a   :  { %v552_v20 = vpop.eup %551  ;;  %v371_v21 = vsel %vm346_vm2, %v550_v15, %v355_v19 }
 0x11b   :  { %387 = vst [vmem:[%s843_s3 + $0x38] sm:$0xff] %v371_v21  ;;  %v343_v24 = vmul.f32 0.3, %v552_v20  ;;  %v353_v25 = vsel %vm347_vm1, %v335_v16, %v707_v13 }
 0x11c   :  { %v554_v22 = vpop.eup %553 }
 0x11d   :  { %v379_v23 = vsel %vm346_vm2, %v554_v22, %v363_v29  ;;  %v361_v41 = vsel %vm347_vm1, %v343_v24, %v724_v2 }
 0x11e   :  { %395 = vst [vmem:[%s843_s3 + $0x78] sm:$0xff] %v379_v23 }
 0x11f   :  { %v556_v30 = vpop.eup %555 }
 0x120   :  { %v369_v26 = vsel %vm346_vm2, %v556_v30, %v353_v25 }
 0x121   :  { %v558_v27 = vpop.eup %557  ;;  %385 = vst [vmem:[%s843_s3 + $0x28] sm:$0xff] %v369_v26 }
 0x122   :  { %v377_v28 = vsel %vm346_vm2, %v558_v27, %v361_v41 }
 0x123   :  { %393 = vst [vmem:[%s843_s3 + $0x68] sm:$0xff] %v377_v28 }

</bundles_post_ra>
